<compile_context>
chip_gen: v7x
topology: tpu7x:2x2x1
jax: 0.10.0
libtpu: 0.0.40
codegen_flags: <defaults>
</compile_context>

<pallas_src>
import functools

import jax
import jax.numpy as jnp
from jax.experimental import pallas as pl
from jax.experimental.pallas import tpu as pltpu

hidden_channels = 64
image_channels = 3
latent_dim = 100
BN_EPS = 1e-5


def _round_up(x, m):
    return ((x + m - 1) // m) * m


# ----------------------------------------------------------------------------
# Batched (per-phase) tiled matmul:  (P, M, K) @ (P, K, N) -> (P, M, N)
# bf16 inputs, f32 MXU accumulation, optional fused tanh epilogue.
# ----------------------------------------------------------------------------
def _bmm_kernel(a_ref, b_ref, o_ref, acc_ref, *, apply_tanh):
    @pl.when(pl.program_id(3) == 0)
    def _():
        acc_ref[...] = jnp.zeros_like(acc_ref)

    acc_ref[...] += jnp.dot(a_ref[0], b_ref[0],
                            preferred_element_type=jnp.float32)

    @pl.when(pl.program_id(3) == pl.num_programs(3) - 1)
    def _():
        r = acc_ref[...]
        if apply_tanh:
            r = jnp.tanh(r)
        o_ref[0, :, :] = r.astype(o_ref.dtype)


def bmm_pallas(a, b, *, apply_tanh=False):
    """Returns the PADDED (P, Mp, Np) float32 result; caller slices."""
    P, M, K = a.shape
    P2, K2, N = b.shape
    assert P == P2 and K == K2

    # Per-problem tile sizes (avoid padding tiny dims up to 128/512).
    tm = min(512, _round_up(M, 8))
    tk = min(512, _round_up(K, 128))
    tn = min(256, _round_up(N, 128))
    Mp, Kp, Np = _round_up(M, tm), _round_up(K, tk), _round_up(N, tn)

    a_p = a.astype(jnp.bfloat16)
    b_p = b.astype(jnp.bfloat16)
    if (Mp, Kp) != (M, K):
        a_p = jnp.pad(a_p, ((0, 0), (0, Mp - M), (0, Kp - K)))
    if (Kp, Np) != (K, N):
        b_p = jnp.pad(b_p, ((0, 0), (0, Kp - K), (0, Np - N)))

    grid = (P, Mp // tm, Np // tn, Kp // tk)
    return pl.pallas_call(
        functools.partial(_bmm_kernel, apply_tanh=apply_tanh),
        out_shape=jax.ShapeDtypeStruct((P, Mp, Np), jnp.float32),
        grid_spec=pltpu.PrefetchScalarGridSpec(
            num_scalar_prefetch=0,
            grid=grid,
            in_specs=[
                pl.BlockSpec((1, tm, tk), lambda p, i, j, k: (p, i, k)),
                pl.BlockSpec((1, tk, tn), lambda p, i, j, k: (p, k, j)),
            ],
            out_specs=pl.BlockSpec((1, tm, tn), lambda p, i, j, k: (p, i, j)),
            scratch_shapes=[pltpu.VMEM((tm, tn), jnp.float32)],
        ),
        compiler_params=pltpu.CompilerParams(
            dimension_semantics=("parallel", "parallel", "parallel",
                                 "arbitrary")),
    )(a_p, b_p)


# ----------------------------------------------------------------------------
# Fused BatchNorm-apply (precomputed per-channel scale/shift) + ReLU.
# Operates on the padded, lane-dense (P, Mp, Np) matmul output; emits bf16.
# ----------------------------------------------------------------------------
def _bn_relu_kernel(x_ref, s_ref, t_ref, o_ref):
    y = x_ref[...] * s_ref[...] + t_ref[...]          # f32 math (v5e-safe)
    o_ref[...] = jnp.maximum(y, 0.0).astype(o_ref.dtype)


def bn_relu_pallas(x, scale, shift):
    P, M, N = x.shape
    rm = min(512, M)
    assert M % rm == 0 and N % 128 == 0
    s = scale.reshape(1, 1, N).astype(jnp.float32)
    t = shift.reshape(1, 1, N).astype(jnp.float32)
    return pl.pallas_call(
        _bn_relu_kernel,
        out_shape=jax.ShapeDtypeStruct((P, M, N), jnp.bfloat16),
        grid=(P, M // rm),
        in_specs=[
            pl.BlockSpec((1, rm, N), lambda p, i: (p, i, 0)),
            pl.BlockSpec((1, 1, N), lambda p, i: (0, 0, 0)),
            pl.BlockSpec((1, 1, N), lambda p, i: (0, 0, 0)),
        ],
        out_specs=pl.BlockSpec((1, rm, N), lambda p, i: (p, i, 0)),
        compiler_params=pltpu.CompilerParams(
            dimension_semantics=("parallel", "parallel")),
    )(x, s, t)


# ----------------------------------------------------------------------------
# Phase-decomposed im2col for ConvTranspose2d(kernel=4, stride=2, padding=1).
# Output pixel (2*ty+py, 2*tx+px) only touches 2x2 taps of the 4x4 kernel:
#   out_p[n,ty,tx,co] = sum_{a,b,ci} xpad[n,ty+py+a,tx+px+b,ci] * w[ci,co,3-py-2a,3-px-2b]
# ----------------------------------------------------------------------------
def _phase_im2col(x_nhwc, w_bf16):
    N, H, W, Cin = x_nhwc.shape
    Cout = w_bf16.shape[1]
    xp = jnp.pad(x_nhwc, ((0, 0), (1, 1), (1, 1), (0, 0)))
    a_phases, b_phases = [], []
    for py in range(2):
        for px in range(2):
            taps = [xp[:, py + a:py + a + H, px + b:px + b + W, :]
                    for a in range(2) for b in range(2)]
            a_phases.append(
                jnp.concatenate(taps, axis=-1).reshape(N * H * W, 4 * Cin))
            wtaps = [w_bf16[:, :, 3 - py - 2 * a, 3 - px - 2 * b]
                     for a in range(2) for b in range(2)]
            b_phases.append(jnp.stack(wtaps, axis=0).reshape(4 * Cin, Cout))
    return jnp.stack(a_phases, axis=0), jnp.stack(b_phases, axis=0)


def _bn_scale_shift(y_real, gamma, beta, reduce_axes):
    mean = jnp.mean(y_real, axis=reduce_axes)
    var = jnp.var(y_real, axis=reduce_axes)        # biased, like BatchNorm2d
    scale = gamma / jnp.sqrt(var + BN_EPS)
    shift = beta - mean * scale
    return scale, shift


# ----------------------------------------------------------------------------
# Generator forward (NHWC internally; NCHW only at the boundary).
# ----------------------------------------------------------------------------
def generator_forward(params, z):
    N = z.shape[0]

    # ---- layer 0: ConvT(latent->512, k=4, s=1, p=0) on a 1x1 input == matmul
    z_b = z.reshape(N, latent_dim).astype(jnp.bfloat16)
    w0 = params["w0"].astype(jnp.bfloat16)                    # (latent, C0, 4, 4)
    C0 = w0.shape[1]
    w0_mat = jnp.transpose(w0, (0, 2, 3, 1)).reshape(latent_dim, 16 * C0)
    y = bmm_pallas(z_b[None], w0_mat[None])                   # (1, Mp, Np) f32
    Np = y.shape[2]
    y_real = y[:, :N, :16 * C0].reshape(N, 4, 4, C0)
    scale, shift = _bn_scale_shift(y_real, params["gamma0"], params["beta0"],
                                   (0, 1, 2))
    sc_full = jnp.pad(jnp.tile(scale, 16), (0, Np - 16 * C0))
    sh_full = jnp.pad(jnp.tile(shift, 16), (0, Np - 16 * C0))
    yb = bn_relu_pallas(y, sc_full, sh_full)                  # bf16
    x = yb[:, :N, :16 * C0].reshape(N, 4, 4, C0)              # NHWC bf16

    # ---- layers 1..3: ConvT(k=4, s=2, p=1) + BN + ReLU -----------------------
    for li in range(1, 4):
        w = params[f"w{li}"].astype(jnp.bfloat16)             # (Cin, Cout, 4, 4)
        Nn, H, W, Cin = x.shape
        Cout = w.shape[1]
        A, B = _phase_im2col(x, w)                            # (4, M, 4Cin), (4, 4Cin, Cout)
        y = bmm_pallas(A, B)                                  # (4, Mp, Np) f32
        M, Np = Nn * H * W, y.shape[2]
        scale, shift = _bn_scale_shift(y[:, :M, :Cout],
                                       params[f"gamma{li}"], params[f"beta{li}"],
                                       (0, 1))
        yb = bn_relu_pallas(y, jnp.pad(scale, (0, Np - Cout)),
                            jnp.pad(shift, (0, Np - Cout)))   # bf16
        yb = yb[:, :M, :Cout]
        # interleave the 4 phases:  out[n, 2ty+py, 2tx+px, c]
        x = yb.reshape(2, 2, Nn, H, W, Cout).transpose(2, 3, 0, 4, 1, 5) \
              .reshape(Nn, 2 * H, 2 * W, Cout)

    # ---- layer 4: ConvT(k=4, s=2, p=1) + Tanh (fused into matmul epilogue) ---
    w = params["w4"].astype(jnp.bfloat16)
    Nn, H, W, Cin = x.shape
    Cout = w.shape[1]
    A, B = _phase_im2col(x, w)
    y = bmm_pallas(A, B, apply_tanh=True)                     # (4, Mp, Np) f32
    M = Nn * H * W
    yt = y[:, :M, :Cout]
    # interleave phases and convert to NCHW in one transpose
    out = yt.reshape(2, 2, Nn, H, W, Cout).transpose(2, 5, 3, 0, 4, 1) \
            .reshape(Nn, Cout, 2 * H, 2 * W)
    return out


def init_params(key):
    chans = [latent_dim, hidden_channels * 8, hidden_channels * 4,
             hidden_channels * 2, hidden_channels, image_channels]
    keys = jax.random.split(key, 5)
    params = {}
    for i in range(5):
        cin, cout = chans[i], chans[i + 1]
        # deterministic synthetic init (DCGAN-style N(0, 0.02))
        params[f"w{i}"] = 0.02 * jax.random.normal(keys[i], (cin, cout, 4, 4),
                                                   jnp.float32)
        if i < 4:
            params[f"gamma{i}"] = jnp.ones((cout,), jnp.float32)
            params[f"beta{i}"] = jnp.zeros((cout,), jnp.float32)
    return params


if __name__ == "__main__":
    key = jax.random.PRNGKey(0)
    pkey, zkey = jax.random.split(key)
    params = init_params(pkey)
    z = jax.random.normal(zkey, (2, latent_dim), jnp.float32)   # batch = 2

    out = jax.jit(generator_forward)(params, z)
    out = jax.block_until_ready(out)

    assert out.shape == (2, image_channels, 64, 64), out.shape
    assert bool(jnp.all(jnp.isfinite(out)))
    assert bool(jnp.all(jnp.abs(out) <= 1.0 + 1e-6))            # tanh range
    print("KERNEL_OK")
</pallas_src>

<mosaic_0001>
module attributes {stable_mosaic.version = 11 : i64} {
  func.func @_bmm_kernel(%arg0: i32, %arg1: i32, %arg2: i32, %arg3: i32, %arg4: memref<1x8x128xbf16, #tpu.memory_space<vmem>>, %arg5: memref<1x128x256xbf16, #tpu.memory_space<vmem>>, %arg6: memref<1x8x256xf32, #tpu.memory_space<vmem>>, %arg7: memref<8x256xf32, #tpu.memory_space<vmem>>) attributes {dimension_semantics = [#tpu.dimension_semantics<parallel>, #tpu.dimension_semantics<parallel>, #tpu.dimension_semantics<parallel>, #tpu.dimension_semantics<arbitrary>], iteration_bounds = array<i64: 1, 1, 32, 1>, scalar_prefetch = 0 : i64, scratch_operands = 1 : i64, tpu.core_type = #tpu.core_type<tc>, window_params = [{transform_indices = @transform_0, window_bounds = array<i64: 1, 8, 128>}, {transform_indices = @transform_1, window_bounds = array<i64: 1, 128, 256>}, {transform_indices = @transform_2, window_bounds = array<i64: 1, 8, 256>}]} {
    %c0_i32 = arith.constant 0 : i32
    %0 = arith.cmpi eq, %arg3, %c0_i32 : i32
    %1 = arith.extui %0 : i1 to i32
    %c0_i32_0 = arith.constant 0 : i32
    %2 = arith.cmpi ne, %1, %c0_i32_0 : i32
    scf.if %2 {
      %cst_12 = arith.constant 0.000000e+00 : f32
      %14 = vector.broadcast %cst_12 : f32 to vector<8x256xf32>
      %c0_13 = arith.constant 0 : index
      %c0_14 = arith.constant 0 : index
      %15 = vector.load %arg7[%c0_13, %c0_14] : memref<8x256xf32, #tpu.memory_space<vmem>>, vector<8x256xf32>
      tpu.vector_store %arg7[%c0_13, %c0_14], %14 {strides = array<i32>} : memref<8x256xf32, #tpu.memory_space<vmem>>, vector<8x256xf32>,
    } else {
    }
    %c0 = arith.constant 0 : index
    %c0_1 = arith.constant 0 : index
    %3 = vector.load %arg7[%c0, %c0_1] : memref<8x256xf32, #tpu.memory_space<vmem>>, vector<8x256xf32>
    %c0_2 = arith.constant 0 : index
    %c0_3 = arith.constant 0 : index
    %c0_4 = arith.constant 0 : index
    %4 = vector.load %arg4[%c0_2, %c0_3, %c0_4] : memref<1x8x128xbf16, #tpu.memory_space<vmem>>, vector<1x8x128xbf16>
    %5 = vector.shape_cast %4 : vector<1x8x128xbf16> to vector<8x128xbf16>
    %c0_5 = arith.constant 0 : index
    %c0_6 = arith.constant 0 : index
    %c0_7 = arith.constant 0 : index
    %6 = vector.load %arg5[%c0_5, %c0_6, %c0_7] : memref<1x128x256xbf16, #tpu.memory_space<vmem>>, vector<1x128x256xbf16>
    %7 = vector.shape_cast %6 : vector<1x128x256xbf16> to vector<128x256xbf16>
    %cst = arith.constant dense<0.000000e+00> : vector<8x256xf32>
    %8 = tpu.matmul %5, %7, %cst {dimension_numbers = #tpu.dot_dimension_numbers<[1], [0], [0], [1], [0, 0, 1, 1], [], []>} : vector<8x128xbf16>, vector<128x256xbf16>, vector<8x256xf32> -> vector<8x256xf32>
    %9 = arith.addf %3, %8 : vector<8x256xf32>
    %c0_8 = arith.constant 0 : index
    %c0_9 = arith.constant 0 : index
    %10 = vector.load %arg7[%c0_8, %c0_9] : memref<8x256xf32, #tpu.memory_space<vmem>>, vector<8x256xf32>
    tpu.vector_store %arg7[%c0_8, %c0_9], %9 {strides = array<i32>} : memref<8x256xf32, #tpu.memory_space<vmem>>, vector<8x256xf32>,
    %c0_i32_10 = arith.constant 0 : i32
    %11 = arith.cmpi eq, %arg3, %c0_i32_10 : i32
    %12 = arith.extui %11 : i1 to i32
    %c0_i32_11 = arith.constant 0 : i32
    %13 = arith.cmpi ne, %12, %c0_i32_11 : i32
    scf.if %13 {
      %c0_12 = arith.constant 0 : index
      %c0_13 = arith.constant 0 : index
      %14 = vector.load %arg7[%c0_12, %c0_13] : memref<8x256xf32, #tpu.memory_space<vmem>>, vector<8x256xf32>
      %c0_14 = arith.constant 0 : index
      %c0_15 = arith.constant 0 : index
      %c0_16 = arith.constant 0 : index
      %15 = vector.load %arg6[%c0_14, %c0_15, %c0_16] : memref<1x8x256xf32, #tpu.memory_space<vmem>>, vector<1x8x256xf32>
      %16 = vector.shape_cast %15 : vector<1x8x256xf32> to vector<8x256xf32>
      %17 = vector.shape_cast %14 : vector<8x256xf32> to vector<1x8x256xf32>
      tpu.vector_store %arg6[%c0_14, %c0_15, %c0_16], %17 {strides = array<i32>} : memref<1x8x256xf32, #tpu.memory_space<vmem>>, vector<1x8x256xf32>,
    } else {
    }
    return
  }
  func.func @transform_0(%arg0: i32, %arg1: i32, %arg2: i32, %arg3: i32) -> (i32, i32, i32) {
    %c0_i32 = arith.constant 0 : i32
    return %arg0, %arg1, %arg3 : i32, i32, i32
  }
  func.func @transform_1(%arg0: i32, %arg1: i32, %arg2: i32, %arg3: i32) -> (i32, i32, i32) {
    %c0_i32 = arith.constant 0 : i32
    return %arg0, %arg3, %arg2 : i32, i32, i32
  }
  func.func @transform_2(%arg0: i32, %arg1: i32, %arg2: i32, %arg3: i32) -> (i32, i32, i32) {
    %c0_i32 = arith.constant 0 : i32
    return %arg0, %arg1, %arg2 : i32, i32, i32
  }
}

module attributes {stable_mosaic.version = 11 : i64} {
  func.func @_bn_relu_kernel(%arg0: i32, %arg1: i32, %arg2: memref<1x8x8192xf32, #tpu.memory_space<vmem>>, %arg3: memref<1x1x8192xf32, #tpu.memory_space<vmem>>, %arg4: memref<1x1x8192xf32, #tpu.memory_space<vmem>>, %arg5: memref<1x8x8192xbf16, #tpu.memory_space<vmem>>) attributes {dimension_semantics = [#tpu.dimension_semantics<parallel>, #tpu.dimension_semantics<parallel>], iteration_bounds = array<i64: 1, 1>, scalar_prefetch = 0 : i64, scratch_operands = 0 : i64, tpu.core_type = #tpu.core_type<tc>, window_params = [{transform_indices = @transform_0, window_bounds = array<i64: 1, 8, 8192>}, {pipeline_mode = #tpu.pipeline_mode<synchronous>, transform_indices = @transform_1, window_bounds = array<i64: 1, 1, 8192>}, {pipeline_mode = #tpu.pipeline_mode<synchronous>, transform_indices = @transform_2, window_bounds = array<i64: 1, 1, 8192>}, {transform_indices = @transform_3, window_bounds = array<i64: 1, 8, 8192>}]} {
    %c0 = arith.constant 0 : index
    %c0_0 = arith.constant 0 : index
    %c0_1 = arith.constant 0 : index
    %0 = vector.load %arg2[%c0, %c0_0, %c0_1] : memref<1x8x8192xf32, #tpu.memory_space<vmem>>, vector<1x8x8192xf32>
    %c0_2 = arith.constant 0 : index
    %c0_3 = arith.constant 0 : index
    %c0_4 = arith.constant 0 : index
    %1 = vector.load %arg3[%c0_2, %c0_3, %c0_4] : memref<1x1x8192xf32, #tpu.memory_space<vmem>>, vector<1x1x8192xf32>
    %2 = vector.broadcast %1 : vector<1x1x8192xf32> to vector<1x8x8192xf32>
    %3 = arith.mulf %0, %2 : vector<1x8x8192xf32>
    %c0_5 = arith.constant 0 : index
    %c0_6 = arith.constant 0 : index
    %c0_7 = arith.constant 0 : index
    %4 = vector.load %arg4[%c0_5, %c0_6, %c0_7] : memref<1x1x8192xf32, #tpu.memory_space<vmem>>, vector<1x1x8192xf32>
    %5 = vector.broadcast %4 : vector<1x1x8192xf32> to vector<1x8x8192xf32>
    %6 = arith.addf %3, %5 : vector<1x8x8192xf32>
    %cst = arith.constant 0.000000e+00 : f32
    %7 = vector.broadcast %cst : f32 to vector<1x8x8192xf32>
    %8 = arith.maximumf %6, %7 : vector<1x8x8192xf32>
    %9 = arith.truncf %8 : vector<1x8x8192xf32> to vector<1x8x8192xbf16>
    %c0_8 = arith.constant 0 : index
    %c0_9 = arith.constant 0 : index
    %c0_10 = arith.constant 0 : index
    %10 = vector.load %arg5[%c0_8, %c0_9, %c0_10] : memref<1x8x8192xbf16, #tpu.memory_space<vmem>>, vector<1x8x8192xbf16>
    tpu.vector_store %arg5[%c0_8, %c0_9, %c0_10], %9 {strides = array<i32>} : memref<1x8x8192xbf16, #tpu.memory_space<vmem>>, vector<1x8x8192xbf16>,
    return
  }
  func.func @transform_0(%arg0: i32, %arg1: i32) -> (i32, i32, i32) {
    %c0_i32 = arith.constant 0 : i32
    %c0_i32_0 = arith.constant 0 : i32
    return %arg0, %arg1, %c0_i32 : i32, i32, i32
  }
  func.func @transform_1(%arg0: i32, %arg1: i32) -> (i32, i32, i32) {
    %c0_i32 = arith.constant 0 : i32
    %c0_i32_0 = arith.constant 0 : i32
    %c0_i32_1 = arith.constant 0 : i32
    %c0_i32_2 = arith.constant 0 : i32
    return %c0_i32, %c0_i32_0, %c0_i32_1 : i32, i32, i32
  }
  func.func @transform_2(%arg0: i32, %arg1: i32) -> (i32, i32, i32) {
    %c0_i32 = arith.constant 0 : i32
    %c0_i32_0 = arith.constant 0 : i32
    %c0_i32_1 = arith.constant 0 : i32
    %c0_i32_2 = arith.constant 0 : i32
    return %c0_i32, %c0_i32_0, %c0_i32_1 : i32, i32, i32
  }
  func.func @transform_3(%arg0: i32, %arg1: i32) -> (i32, i32, i32) {
    %c0_i32 = arith.constant 0 : i32
    %c0_i32_0 = arith.constant 0 : i32
    return %arg0, %arg1, %c0_i32 : i32, i32, i32
  }
}

module attributes {stable_mosaic.version = 11 : i64} {
  func.func @_bmm_kernel(%arg0: i32, %arg1: i32, %arg2: i32, %arg3: i32, %arg4: memref<1x32x512xbf16, #tpu.memory_space<vmem>>, %arg5: memref<1x512x256xbf16, #tpu.memory_space<vmem>>, %arg6: memref<1x32x256xf32, #tpu.memory_space<vmem>>, %arg7: memref<32x256xf32, #tpu.memory_space<vmem>>) attributes {dimension_semantics = [#tpu.dimension_semantics<parallel>, #tpu.dimension_semantics<parallel>, #tpu.dimension_semantics<parallel>, #tpu.dimension_semantics<arbitrary>], iteration_bounds = array<i64: 4, 1, 1, 4>, scalar_prefetch = 0 : i64, scratch_operands = 1 : i64, tpu.core_type = #tpu.core_type<tc>, window_params = [{transform_indices = @transform_0, window_bounds = array<i64: 1, 32, 512>}, {transform_indices = @transform_1, window_bounds = array<i64: 1, 512, 256>}, {transform_indices = @transform_2, window_bounds = array<i64: 1, 32, 256>}]} {
    %c0_i32 = arith.constant 0 : i32
    %0 = arith.cmpi eq, %arg3, %c0_i32 : i32
    %1 = arith.extui %0 : i1 to i32
    %c0_i32_0 = arith.constant 0 : i32
    %2 = arith.cmpi ne, %1, %c0_i32_0 : i32
    scf.if %2 {
      %cst_11 = arith.constant 0.000000e+00 : f32
      %14 = vector.broadcast %cst_11 : f32 to vector<32x256xf32>
      %c0_12 = arith.constant 0 : index
      %c0_13 = arith.constant 0 : index
      %15 = vector.load %arg7[%c0_12, %c0_13] : memref<32x256xf32, #tpu.memory_space<vmem>>, vector<32x256xf32>
      tpu.vector_store %arg7[%c0_12, %c0_13], %14 {strides = array<i32>} : memref<32x256xf32, #tpu.memory_space<vmem>>, vector<32x256xf32>,
    } else {
    }
    %c0 = arith.constant 0 : index
    %c0_1 = arith.constant 0 : index
    %3 = vector.load %arg7[%c0, %c0_1] : memref<32x256xf32, #tpu.memory_space<vmem>>, vector<32x256xf32>
    %c0_2 = arith.constant 0 : index
    %c0_3 = arith.constant 0 : index
    %c0_4 = arith.constant 0 : index
    %4 = vector.load %arg4[%c0_2, %c0_3, %c0_4] : memref<1x32x512xbf16, #tpu.memory_space<vmem>>, vector<1x32x512xbf16>
    %5 = vector.shape_cast %4 : vector<1x32x512xbf16> to vector<32x512xbf16>
    %c0_5 = arith.constant 0 : index
    %c0_6 = arith.constant 0 : index
    %c0_7 = arith.constant 0 : index
    %6 = vector.load %arg5[%c0_5, %c0_6, %c0_7] : memref<1x512x256xbf16, #tpu.memory_space<vmem>>, vector<1x512x256xbf16>
    %7 = vector.shape_cast %6 : vector<1x512x256xbf16> to vector<512x256xbf16>
    %cst = arith.constant dense<0.000000e+00> : vector<32x256xf32>
    %8 = tpu.matmul %5, %7, %cst {dimension_numbers = #tpu.dot_dimension_numbers<[1], [0], [0], [1], [0, 0, 1, 1], [], []>} : vector<32x512xbf16>, vector<512x256xbf16>, vector<32x256xf32> -> vector<32x256xf32>
    %9 = arith.addf %3, %8 : vector<32x256xf32>
    %c0_8 = arith.constant 0 : index
    %c0_9 = arith.constant 0 : index
    %10 = vector.load %arg7[%c0_8, %c0_9] : memref<32x256xf32, #tpu.memory_space<vmem>>, vector<32x256xf32>
    tpu.vector_store %arg7[%c0_8, %c0_9], %9 {strides = array<i32>} : memref<32x256xf32, #tpu.memory_space<vmem>>, vector<32x256xf32>,
    %c3_i32 = arith.constant 3 : i32
    %11 = arith.cmpi eq, %arg3, %c3_i32 : i32
    %12 = arith.extui %11 : i1 to i32
    %c0_i32_10 = arith.constant 0 : i32
    %13 = arith.cmpi ne, %12, %c0_i32_10 : i32
    scf.if %13 {
      %c0_11 = arith.constant 0 : index
      %c0_12 = arith.constant 0 : index
      %14 = vector.load %arg7[%c0_11, %c0_12] : memref<32x256xf32, #tpu.memory_space<vmem>>, vector<32x256xf32>
      %c0_13 = arith.constant 0 : index
      %c0_14 = arith.constant 0 : index
      %c0_15 = arith.constant 0 : index
      %15 = vector.load %arg6[%c0_13, %c0_14, %c0_15] : memref<1x32x256xf32, #tpu.memory_space<vmem>>, vector<1x32x256xf32>
      %16 = vector.shape_cast %15 : vector<1x32x256xf32> to vector<32x256xf32>
      %17 = vector.shape_cast %14 : vector<32x256xf32> to vector<1x32x256xf32>
      tpu.vector_store %arg6[%c0_13, %c0_14, %c0_15], %17 {strides = array<i32>} : memref<1x32x256xf32, #tpu.memory_space<vmem>>, vector<1x32x256xf32>,
    } else {
    }
    return
  }
  func.func @transform_0(%arg0: i32, %arg1: i32, %arg2: i32, %arg3: i32) -> (i32, i32, i32) {
    %c0_i32 = arith.constant 0 : i32
    return %arg0, %arg1, %arg3 : i32, i32, i32
  }
  func.func @transform_1(%arg0: i32, %arg1: i32, %arg2: i32, %arg3: i32) -> (i32, i32, i32) {
    %c0_i32 = arith.constant 0 : i32
    return %arg0, %arg3, %arg2 : i32, i32, i32
  }
  func.func @transform_2(%arg0: i32, %arg1: i32, %arg2: i32, %arg3: i32) -> (i32, i32, i32) {
    %c0_i32 = arith.constant 0 : i32
    return %arg0, %arg1, %arg2 : i32, i32, i32
  }
}

module attributes {stable_mosaic.version = 11 : i64} {
  func.func @_bn_relu_kernel(%arg0: i32, %arg1: i32, %arg2: memref<1x32x256xf32, #tpu.memory_space<vmem>>, %arg3: memref<1x1x256xf32, #tpu.memory_space<vmem>>, %arg4: memref<1x1x256xf32, #tpu.memory_space<vmem>>, %arg5: memref<1x32x256xbf16, #tpu.memory_space<vmem>>) attributes {dimension_semantics = [#tpu.dimension_semantics<parallel>, #tpu.dimension_semantics<parallel>], iteration_bounds = array<i64: 4, 1>, scalar_prefetch = 0 : i64, scratch_operands = 0 : i64, tpu.core_type = #tpu.core_type<tc>, window_params = [{transform_indices = @transform_0, window_bounds = array<i64: 1, 32, 256>}, {pipeline_mode = #tpu.pipeline_mode<synchronous>, transform_indices = @transform_1, window_bounds = array<i64: 1, 1, 256>}, {pipeline_mode = #tpu.pipeline_mode<synchronous>, transform_indices = @transform_2, window_bounds = array<i64: 1, 1, 256>}, {transform_indices = @transform_3, window_bounds = array<i64: 1, 32, 256>}]} {
    %c0 = arith.constant 0 : index
    %c0_0 = arith.constant 0 : index
    %c0_1 = arith.constant 0 : index
    %0 = vector.load %arg2[%c0, %c0_0, %c0_1] : memref<1x32x256xf32, #tpu.memory_space<vmem>>, vector<1x32x256xf32>
    %c0_2 = arith.constant 0 : index
    %c0_3 = arith.constant 0 : index
    %c0_4 = arith.constant 0 : index
    %1 = vector.load %arg3[%c0_2, %c0_3, %c0_4] : memref<1x1x256xf32, #tpu.memory_space<vmem>>, vector<1x1x256xf32>
    %2 = vector.broadcast %1 : vector<1x1x256xf32> to vector<1x32x256xf32>
    %3 = arith.mulf %0, %2 : vector<1x32x256xf32>
    %c0_5 = arith.constant 0 : index
    %c0_6 = arith.constant 0 : index
    %c0_7 = arith.constant 0 : index
    %4 = vector.load %arg4[%c0_5, %c0_6, %c0_7] : memref<1x1x256xf32, #tpu.memory_space<vmem>>, vector<1x1x256xf32>
    %5 = vector.broadcast %4 : vector<1x1x256xf32> to vector<1x32x256xf32>
    %6 = arith.addf %3, %5 : vector<1x32x256xf32>
    %cst = arith.constant 0.000000e+00 : f32
    %7 = vector.broadcast %cst : f32 to vector<1x32x256xf32>
    %8 = arith.maximumf %6, %7 : vector<1x32x256xf32>
    %9 = arith.truncf %8 : vector<1x32x256xf32> to vector<1x32x256xbf16>
    %c0_8 = arith.constant 0 : index
    %c0_9 = arith.constant 0 : index
    %c0_10 = arith.constant 0 : index
    %10 = vector.load %arg5[%c0_8, %c0_9, %c0_10] : memref<1x32x256xbf16, #tpu.memory_space<vmem>>, vector<1x32x256xbf16>
    tpu.vector_store %arg5[%c0_8, %c0_9, %c0_10], %9 {strides = array<i32>} : memref<1x32x256xbf16, #tpu.memory_space<vmem>>, vector<1x32x256xbf16>,
    return
  }
  func.func @transform_0(%arg0: i32, %arg1: i32) -> (i32, i32, i32) {
    %c0_i32 = arith.constant 0 : i32
    %c0_i32_0 = arith.constant 0 : i32
    return %arg0, %arg1, %c0_i32 : i32, i32, i32
  }
  func.func @transform_1(%arg0: i32, %arg1: i32) -> (i32, i32, i32) {
    %c0_i32 = arith.constant 0 : i32
    %c0_i32_0 = arith.constant 0 : i32
    %c0_i32_1 = arith.constant 0 : i32
    %c0_i32_2 = arith.constant 0 : i32
    return %c0_i32, %c0_i32_0, %c0_i32_1 : i32, i32, i32
  }
  func.func @transform_2(%arg0: i32, %arg1: i32) -> (i32, i32, i32) {
    %c0_i32 = arith.constant 0 : i32
    %c0_i32_0 = arith.constant 0 : i32
    %c0_i32_1 = arith.constant 0 : i32
    %c0_i32_2 = arith.constant 0 : i32
    return %c0_i32, %c0_i32_0, %c0_i32_1 : i32, i32, i32
  }
  func.func @transform_3(%arg0: i32, %arg1: i32) -> (i32, i32, i32) {
    %c0_i32 = arith.constant 0 : i32
    %c0_i32_0 = arith.constant 0 : i32
    return %arg0, %arg1, %c0_i32 : i32, i32, i32
  }
}

module attributes {stable_mosaic.version = 11 : i64} {
  func.func @_bmm_kernel(%arg0: i32, %arg1: i32, %arg2: i32, %arg3: i32, %arg4: memref<1x128x512xbf16, #tpu.memory_space<vmem>>, %arg5: memref<1x512x128xbf16, #tpu.memory_space<vmem>>, %arg6: memref<1x128x128xf32, #tpu.memory_space<vmem>>, %arg7: memref<128x128xf32, #tpu.memory_space<vmem>>) attributes {dimension_semantics = [#tpu.dimension_semantics<parallel>, #tpu.dimension_semantics<parallel>, #tpu.dimension_semantics<parallel>, #tpu.dimension_semantics<arbitrary>], iteration_bounds = array<i64: 4, 1, 1, 2>, scalar_prefetch = 0 : i64, scratch_operands = 1 : i64, tpu.core_type = #tpu.core_type<tc>, window_params = [{transform_indices = @transform_0, window_bounds = array<i64: 1, 128, 512>}, {transform_indices = @transform_1, window_bounds = array<i64: 1, 512, 128>}, {transform_indices = @transform_2, window_bounds = array<i64: 1, 128, 128>}]} {
    %c0_i32 = arith.constant 0 : i32
    %0 = arith.cmpi eq, %arg3, %c0_i32 : i32
    %1 = arith.extui %0 : i1 to i32
    %c0_i32_0 = arith.constant 0 : i32
    %2 = arith.cmpi ne, %1, %c0_i32_0 : i32
    scf.if %2 {
      %cst_11 = arith.constant 0.000000e+00 : f32
      %14 = vector.broadcast %cst_11 : f32 to vector<128x128xf32>
      %c0_12 = arith.constant 0 : index
      %c0_13 = arith.constant 0 : index
      %15 = vector.load %arg7[%c0_12, %c0_13] : memref<128x128xf32, #tpu.memory_space<vmem>>, vector<128x128xf32>
      tpu.vector_store %arg7[%c0_12, %c0_13], %14 {strides = array<i32>} : memref<128x128xf32, #tpu.memory_space<vmem>>, vector<128x128xf32>,
    } else {
    }
    %c0 = arith.constant 0 : index
    %c0_1 = arith.constant 0 : index
    %3 = vector.load %arg7[%c0, %c0_1] : memref<128x128xf32, #tpu.memory_space<vmem>>, vector<128x128xf32>
    %c0_2 = arith.constant 0 : index
    %c0_3 = arith.constant 0 : index
    %c0_4 = arith.constant 0 : index
    %4 = vector.load %arg4[%c0_2, %c0_3, %c0_4] : memref<1x128x512xbf16, #tpu.memory_space<vmem>>, vector<1x128x512xbf16>
    %5 = vector.shape_cast %4 : vector<1x128x512xbf16> to vector<128x512xbf16>
    %c0_5 = arith.constant 0 : index
    %c0_6 = arith.constant 0 : index
    %c0_7 = arith.constant 0 : index
    %6 = vector.load %arg5[%c0_5, %c0_6, %c0_7] : memref<1x512x128xbf16, #tpu.memory_space<vmem>>, vector<1x512x128xbf16>
    %7 = vector.shape_cast %6 : vector<1x512x128xbf16> to vector<512x128xbf16>
    %cst = arith.constant dense<0.000000e+00> : vector<128x128xf32>
    %8 = tpu.matmul %5, %7, %cst {dimension_numbers = #tpu.dot_dimension_numbers<[1], [0], [0], [1], [0, 0, 1, 1], [], []>} : vector<128x512xbf16>, vector<512x128xbf16>, vector<128x128xf32> -> vector<128x128xf32>
    %9 = arith.addf %3, %8 : vector<128x128xf32>
    %c0_8 = arith.constant 0 : index
    %c0_9 = arith.constant 0 : index
    %10 = vector.load %arg7[%c0_8, %c0_9] : memref<128x128xf32, #tpu.memory_space<vmem>>, vector<128x128xf32>
    tpu.vector_store %arg7[%c0_8, %c0_9], %9 {strides = array<i32>} : memref<128x128xf32, #tpu.memory_space<vmem>>, vector<128x128xf32>,
    %c1_i32 = arith.constant 1 : i32
    %11 = arith.cmpi eq, %arg3, %c1_i32 : i32
    %12 = arith.extui %11 : i1 to i32
    %c0_i32_10 = arith.constant 0 : i32
    %13 = arith.cmpi ne, %12, %c0_i32_10 : i32
    scf.if %13 {
      %c0_11 = arith.constant 0 : index
      %c0_12 = arith.constant 0 : index
      %14 = vector.load %arg7[%c0_11, %c0_12] : memref<128x128xf32, #tpu.memory_space<vmem>>, vector<128x128xf32>
      %c0_13 = arith.constant 0 : index
      %c0_14 = arith.constant 0 : index
      %c0_15 = arith.constant 0 : index
      %15 = vector.load %arg6[%c0_13, %c0_14, %c0_15] : memref<1x128x128xf32, #tpu.memory_space<vmem>>, vector<1x128x128xf32>
      %16 = vector.shape_cast %15 : vector<1x128x128xf32> to vector<128x128xf32>
      %17 = vector.shape_cast %14 : vector<128x128xf32> to vector<1x128x128xf32>
      tpu.vector_store %arg6[%c0_13, %c0_14, %c0_15], %17 {strides = array<i32>} : memref<1x128x128xf32, #tpu.memory_space<vmem>>, vector<1x128x128xf32>,
    } else {
    }
    return
  }
  func.func @transform_0(%arg0: i32, %arg1: i32, %arg2: i32, %arg3: i32) -> (i32, i32, i32) {
    %c0_i32 = arith.constant 0 : i32
    return %arg0, %arg1, %arg3 : i32, i32, i32
  }
  func.func @transform_1(%arg0: i32, %arg1: i32, %arg2: i32, %arg3: i32) -> (i32, i32, i32) {
    %c0_i32 = arith.constant 0 : i32
    return %arg0, %arg3, %arg2 : i32, i32, i32
  }
  func.func @transform_2(%arg0: i32, %arg1: i32, %arg2: i32, %arg3: i32) -> (i32, i32, i32) {
    %c0_i32 = arith.constant 0 : i32
    return %arg0, %arg1, %arg2 : i32, i32, i32
  }
}

module attributes {stable_mosaic.version = 11 : i64} {
  func.func @_bn_relu_kernel(%arg0: i32, %arg1: i32, %arg2: memref<1x128x128xf32, #tpu.memory_space<vmem>>, %arg3: memref<1x1x128xf32, #tpu.memory_space<vmem>>, %arg4: memref<1x1x128xf32, #tpu.memory_space<vmem>>, %arg5: memref<1x128x128xbf16, #tpu.memory_space<vmem>>) attributes {dimension_semantics = [#tpu.dimension_semantics<parallel>, #tpu.dimension_semantics<parallel>], iteration_bounds = array<i64: 4, 1>, scalar_prefetch = 0 : i64, scratch_operands = 0 : i64, tpu.core_type = #tpu.core_type<tc>, window_params = [{transform_indices = @transform_0, window_bounds = array<i64: 1, 128, 128>}, {pipeline_mode = #tpu.pipeline_mode<synchronous>, transform_indices = @transform_1, window_bounds = array<i64: 1, 1, 128>}, {pipeline_mode = #tpu.pipeline_mode<synchronous>, transform_indices = @transform_2, window_bounds = array<i64: 1, 1, 128>}, {transform_indices = @transform_3, window_bounds = array<i64: 1, 128, 128>}]} {
    %c0 = arith.constant 0 : index
    %c0_0 = arith.constant 0 : index
    %c0_1 = arith.constant 0 : index
    %0 = vector.load %arg2[%c0, %c0_0, %c0_1] : memref<1x128x128xf32, #tpu.memory_space<vmem>>, vector<1x128x128xf32>
    %c0_2 = arith.constant 0 : index
    %c0_3 = arith.constant 0 : index
    %c0_4 = arith.constant 0 : index
    %1 = vector.load %arg3[%c0_2, %c0_3, %c0_4] : memref<1x1x128xf32, #tpu.memory_space<vmem>>, vector<1x1x128xf32>
    %2 = vector.broadcast %1 : vector<1x1x128xf32> to vector<1x128x128xf32>
    %3 = arith.mulf %0, %2 : vector<1x128x128xf32>
    %c0_5 = arith.constant 0 : index
    %c0_6 = arith.constant 0 : index
    %c0_7 = arith.constant 0 : index
    %4 = vector.load %arg4[%c0_5, %c0_6, %c0_7] : memref<1x1x128xf32, #tpu.memory_space<vmem>>, vector<1x1x128xf32>
    %5 = vector.broadcast %4 : vector<1x1x128xf32> to vector<1x128x128xf32>
    %6 = arith.addf %3, %5 : vector<1x128x128xf32>
    %cst = arith.constant 0.000000e+00 : f32
    %7 = vector.broadcast %cst : f32 to vector<1x128x128xf32>
    %8 = arith.maximumf %6, %7 : vector<1x128x128xf32>
    %9 = arith.truncf %8 : vector<1x128x128xf32> to vector<1x128x128xbf16>
    %c0_8 = arith.constant 0 : index
    %c0_9 = arith.constant 0 : index
    %c0_10 = arith.constant 0 : index
    %10 = vector.load %arg5[%c0_8, %c0_9, %c0_10] : memref<1x128x128xbf16, #tpu.memory_space<vmem>>, vector<1x128x128xbf16>
    tpu.vector_store %arg5[%c0_8, %c0_9, %c0_10], %9 {strides = array<i32>} : memref<1x128x128xbf16, #tpu.memory_space<vmem>>, vector<1x128x128xbf16>,
    return
  }
  func.func @transform_0(%arg0: i32, %arg1: i32) -> (i32, i32, i32) {
    %c0_i32 = arith.constant 0 : i32
    %c0_i32_0 = arith.constant 0 : i32
    return %arg0, %arg1, %c0_i32 : i32, i32, i32
  }
  func.func @transform_1(%arg0: i32, %arg1: i32) -> (i32, i32, i32) {
    %c0_i32 = arith.constant 0 : i32
    %c0_i32_0 = arith.constant 0 : i32
    %c0_i32_1 = arith.constant 0 : i32
    %c0_i32_2 = arith.constant 0 : i32
    return %c0_i32, %c0_i32_0, %c0_i32_1 : i32, i32, i32
  }
  func.func @transform_2(%arg0: i32, %arg1: i32) -> (i32, i32, i32) {
    %c0_i32 = arith.constant 0 : i32
    %c0_i32_0 = arith.constant 0 : i32
    %c0_i32_1 = arith.constant 0 : i32
    %c0_i32_2 = arith.constant 0 : i32
    return %c0_i32, %c0_i32_0, %c0_i32_1 : i32, i32, i32
  }
  func.func @transform_3(%arg0: i32, %arg1: i32) -> (i32, i32, i32) {
    %c0_i32 = arith.constant 0 : i32
    %c0_i32_0 = arith.constant 0 : i32
    return %arg0, %arg1, %c0_i32 : i32, i32, i32
  }
}

module attributes {stable_mosaic.version = 11 : i64} {
  func.func @_bmm_kernel(%arg0: i32, %arg1: i32, %arg2: i32, %arg3: i32, %arg4: memref<1x512x512xbf16, #tpu.memory_space<vmem>>, %arg5: memref<1x512x128xbf16, #tpu.memory_space<vmem>>, %arg6: memref<1x512x128xf32, #tpu.memory_space<vmem>>, %arg7: memref<512x128xf32, #tpu.memory_space<vmem>>) attributes {dimension_semantics = [#tpu.dimension_semantics<parallel>, #tpu.dimension_semantics<parallel>, #tpu.dimension_semantics<parallel>, #tpu.dimension_semantics<arbitrary>], iteration_bounds = array<i64: 4, 1, 1, 1>, scalar_prefetch = 0 : i64, scratch_operands = 1 : i64, tpu.core_type = #tpu.core_type<tc>, window_params = [{transform_indices = @transform_0, window_bounds = array<i64: 1, 512, 512>}, {transform_indices = @transform_1, window_bounds = array<i64: 1, 512, 128>}, {transform_indices = @transform_2, window_bounds = array<i64: 1, 512, 128>}]} {
    %c0_i32 = arith.constant 0 : i32
    %0 = arith.cmpi eq, %arg3, %c0_i32 : i32
    %1 = arith.extui %0 : i1 to i32
    %c0_i32_0 = arith.constant 0 : i32
    %2 = arith.cmpi ne, %1, %c0_i32_0 : i32
    scf.if %2 {
      %cst_12 = arith.constant 0.000000e+00 : f32
      %14 = vector.broadcast %cst_12 : f32 to vector<512x128xf32>
      %c0_13 = arith.constant 0 : index
      %c0_14 = arith.constant 0 : index
      %15 = vector.load %arg7[%c0_13, %c0_14] : memref<512x128xf32, #tpu.memory_space<vmem>>, vector<512x128xf32>
      tpu.vector_store %arg7[%c0_13, %c0_14], %14 {strides = array<i32>} : memref<512x128xf32, #tpu.memory_space<vmem>>, vector<512x128xf32>,
    } else {
    }
    %c0 = arith.constant 0 : index
    %c0_1 = arith.constant 0 : index
    %3 = vector.load %arg7[%c0, %c0_1] : memref<512x128xf32, #tpu.memory_space<vmem>>, vector<512x128xf32>
    %c0_2 = arith.constant 0 : index
    %c0_3 = arith.constant 0 : index
    %c0_4 = arith.constant 0 : index
    %4 = vector.load %arg4[%c0_2, %c0_3, %c0_4] : memref<1x512x512xbf16, #tpu.memory_space<vmem>>, vector<1x512x512xbf16>
    %5 = vector.shape_cast %4 : vector<1x512x512xbf16> to vector<512x512xbf16>
    %c0_5 = arith.constant 0 : index
    %c0_6 = arith.constant 0 : index
    %c0_7 = arith.constant 0 : index
    %6 = vector.load %arg5[%c0_5, %c0_6, %c0_7] : memref<1x512x128xbf16, #tpu.memory_space<vmem>>, vector<1x512x128xbf16>
    %7 = vector.shape_cast %6 : vector<1x512x128xbf16> to vector<512x128xbf16>
    %cst = arith.constant dense<0.000000e+00> : vector<512x128xf32>
    %8 = tpu.matmul %5, %7, %cst {dimension_numbers = #tpu.dot_dimension_numbers<[1], [0], [0], [1], [0, 0, 1, 1], [], []>} : vector<512x512xbf16>, vector<512x128xbf16>, vector<512x128xf32> -> vector<512x128xf32>
    %9 = arith.addf %3, %8 : vector<512x128xf32>
    %c0_8 = arith.constant 0 : index
    %c0_9 = arith.constant 0 : index
    %10 = vector.load %arg7[%c0_8, %c0_9] : memref<512x128xf32, #tpu.memory_space<vmem>>, vector<512x128xf32>
    tpu.vector_store %arg7[%c0_8, %c0_9], %9 {strides = array<i32>} : memref<512x128xf32, #tpu.memory_space<vmem>>, vector<512x128xf32>,
    %c0_i32_10 = arith.constant 0 : i32
    %11 = arith.cmpi eq, %arg3, %c0_i32_10 : i32
    %12 = arith.extui %11 : i1 to i32
    %c0_i32_11 = arith.constant 0 : i32
    %13 = arith.cmpi ne, %12, %c0_i32_11 : i32
    scf.if %13 {
      %c0_12 = arith.constant 0 : index
      %c0_13 = arith.constant 0 : index
      %14 = vector.load %arg7[%c0_12, %c0_13] : memref<512x128xf32, #tpu.memory_space<vmem>>, vector<512x128xf32>
      %c0_14 = arith.constant 0 : index
      %c0_15 = arith.constant 0 : index
      %c0_16 = arith.constant 0 : index
      %15 = vector.load %arg6[%c0_14, %c0_15, %c0_16] : memref<1x512x128xf32, #tpu.memory_space<vmem>>, vector<1x512x128xf32>
      %16 = vector.shape_cast %15 : vector<1x512x128xf32> to vector<512x128xf32>
      %17 = vector.shape_cast %14 : vector<512x128xf32> to vector<1x512x128xf32>
      tpu.vector_store %arg6[%c0_14, %c0_15, %c0_16], %17 {strides = array<i32>} : memref<1x512x128xf32, #tpu.memory_space<vmem>>, vector<1x512x128xf32>,
    } else {
    }
    return
  }
  func.func @transform_0(%arg0: i32, %arg1: i32, %arg2: i32, %arg3: i32) -> (i32, i32, i32) {
    %c0_i32 = arith.constant 0 : i32
    return %arg0, %arg1, %arg3 : i32, i32, i32
  }
  func.func @transform_1(%arg0: i32, %arg1: i32, %arg2: i32, %arg3: i32) -> (i32, i32, i32) {
    %c0_i32 = arith.constant 0 : i32
    return %arg0, %arg3, %arg2 : i32, i32, i32
  }
  func.func @transform_2(%arg0: i32, %arg1: i32, %arg2: i32, %arg3: i32) -> (i32, i32, i32) {
    %c0_i32 = arith.constant 0 : i32
    return %arg0, %arg1, %arg2 : i32, i32, i32
  }
}

module attributes {stable_mosaic.version = 11 : i64} {
  func.func @_bn_relu_kernel(%arg0: i32, %arg1: i32, %arg2: memref<1x512x128xf32, #tpu.memory_space<vmem>>, %arg3: memref<1x1x128xf32, #tpu.memory_space<vmem>>, %arg4: memref<1x1x128xf32, #tpu.memory_space<vmem>>, %arg5: memref<1x512x128xbf16, #tpu.memory_space<vmem>>) attributes {dimension_semantics = [#tpu.dimension_semantics<parallel>, #tpu.dimension_semantics<parallel>], iteration_bounds = array<i64: 4, 1>, scalar_prefetch = 0 : i64, scratch_operands = 0 : i64, tpu.core_type = #tpu.core_type<tc>, window_params = [{transform_indices = @transform_0, window_bounds = array<i64: 1, 512, 128>}, {pipeline_mode = #tpu.pipeline_mode<synchronous>, transform_indices = @transform_1, window_bounds = array<i64: 1, 1, 128>}, {pipeline_mode = #tpu.pipeline_mode<synchronous>, transform_indices = @transform_2, window_bounds = array<i64: 1, 1, 128>}, {transform_indices = @transform_3, window_bounds = array<i64: 1, 512, 128>}]} {
    %c0 = arith.constant 0 : index
    %c0_0 = arith.constant 0 : index
    %c0_1 = arith.constant 0 : index
    %0 = vector.load %arg2[%c0, %c0_0, %c0_1] : memref<1x512x128xf32, #tpu.memory_space<vmem>>, vector<1x512x128xf32>
    %c0_2 = arith.constant 0 : index
    %c0_3 = arith.constant 0 : index
    %c0_4 = arith.constant 0 : index
    %1 = vector.load %arg3[%c0_2, %c0_3, %c0_4] : memref<1x1x128xf32, #tpu.memory_space<vmem>>, vector<1x1x128xf32>
    %2 = vector.broadcast %1 : vector<1x1x128xf32> to vector<1x512x128xf32>
    %3 = arith.mulf %0, %2 : vector<1x512x128xf32>
    %c0_5 = arith.constant 0 : index
    %c0_6 = arith.constant 0 : index
    %c0_7 = arith.constant 0 : index
    %4 = vector.load %arg4[%c0_5, %c0_6, %c0_7] : memref<1x1x128xf32, #tpu.memory_space<vmem>>, vector<1x1x128xf32>
    %5 = vector.broadcast %4 : vector<1x1x128xf32> to vector<1x512x128xf32>
    %6 = arith.addf %3, %5 : vector<1x512x128xf32>
    %cst = arith.constant 0.000000e+00 : f32
    %7 = vector.broadcast %cst : f32 to vector<1x512x128xf32>
    %8 = arith.maximumf %6, %7 : vector<1x512x128xf32>
    %9 = arith.truncf %8 : vector<1x512x128xf32> to vector<1x512x128xbf16>
    %c0_8 = arith.constant 0 : index
    %c0_9 = arith.constant 0 : index
    %c0_10 = arith.constant 0 : index
    %10 = vector.load %arg5[%c0_8, %c0_9, %c0_10] : memref<1x512x128xbf16, #tpu.memory_space<vmem>>, vector<1x512x128xbf16>
    tpu.vector_store %arg5[%c0_8, %c0_9, %c0_10], %9 {strides = array<i32>} : memref<1x512x128xbf16, #tpu.memory_space<vmem>>, vector<1x512x128xbf16>,
    return
  }
  func.func @transform_0(%arg0: i32, %arg1: i32) -> (i32, i32, i32) {
    %c0_i32 = arith.constant 0 : i32
    %c0_i32_0 = arith.constant 0 : i32
    return %arg0, %arg1, %c0_i32 : i32, i32, i32
  }
  func.func @transform_1(%arg0: i32, %arg1: i32) -> (i32, i32, i32) {
    %c0_i32 = arith.constant 0 : i32
    %c0_i32_0 = arith.constant 0 : i32
    %c0_i32_1 = arith.constant 0 : i32
    %c0_i32_2 = arith.constant 0 : i32
    return %c0_i32, %c0_i32_0, %c0_i32_1 : i32, i32, i32
  }
  func.func @transform_2(%arg0: i32, %arg1: i32) -> (i32, i32, i32) {
    %c0_i32 = arith.constant 0 : i32
    %c0_i32_0 = arith.constant 0 : i32
    %c0_i32_1 = arith.constant 0 : i32
    %c0_i32_2 = arith.constant 0 : i32
    return %c0_i32, %c0_i32_0, %c0_i32_1 : i32, i32, i32
  }
  func.func @transform_3(%arg0: i32, %arg1: i32) -> (i32, i32, i32) {
    %c0_i32 = arith.constant 0 : i32
    %c0_i32_0 = arith.constant 0 : i32
    return %arg0, %arg1, %c0_i32 : i32, i32, i32
  }
}

module attributes {stable_mosaic.version = 11 : i64} {
  func.func @_bmm_kernel(%arg0: i32, %arg1: i32, %arg2: i32, %arg3: i32, %arg4: memref<1x512x256xbf16, #tpu.memory_space<vmem>>, %arg5: memref<1x256x128xbf16, #tpu.memory_space<vmem>>, %arg6: memref<1x512x128xf32, #tpu.memory_space<vmem>>, %arg7: memref<512x128xf32, #tpu.memory_space<vmem>>) attributes {dimension_semantics = [#tpu.dimension_semantics<parallel>, #tpu.dimension_semantics<parallel>, #tpu.dimension_semantics<parallel>, #tpu.dimension_semantics<arbitrary>], iteration_bounds = array<i64: 4, 4, 1, 1>, scalar_prefetch = 0 : i64, scratch_operands = 1 : i64, tpu.core_type = #tpu.core_type<tc>, window_params = [{transform_indices = @transform_0, window_bounds = array<i64: 1, 512, 256>}, {transform_indices = @transform_1, window_bounds = array<i64: 1, 256, 128>}, {transform_indices = @transform_2, window_bounds = array<i64: 1, 512, 128>}]} {
    %c0_i32 = arith.constant 0 : i32
    %0 = arith.cmpi eq, %arg3, %c0_i32 : i32
    %1 = arith.extui %0 : i1 to i32
    %c0_i32_0 = arith.constant 0 : i32
    %2 = arith.cmpi ne, %1, %c0_i32_0 : i32
    scf.if %2 {
      %cst_12 = arith.constant 0.000000e+00 : f32
      %14 = vector.broadcast %cst_12 : f32 to vector<512x128xf32>
      %c0_13 = arith.constant 0 : index
      %c0_14 = arith.constant 0 : index
      %15 = vector.load %arg7[%c0_13, %c0_14] : memref<512x128xf32, #tpu.memory_space<vmem>>, vector<512x128xf32>
      tpu.vector_store %arg7[%c0_13, %c0_14], %14 {strides = array<i32>} : memref<512x128xf32, #tpu.memory_space<vmem>>, vector<512x128xf32>,
    } else {
    }
    %c0 = arith.constant 0 : index
    %c0_1 = arith.constant 0 : index
    %3 = vector.load %arg7[%c0, %c0_1] : memref<512x128xf32, #tpu.memory_space<vmem>>, vector<512x128xf32>
    %c0_2 = arith.constant 0 : index
    %c0_3 = arith.constant 0 : index
    %c0_4 = arith.constant 0 : index
    %4 = vector.load %arg4[%c0_2, %c0_3, %c0_4] : memref<1x512x256xbf16, #tpu.memory_space<vmem>>, vector<1x512x256xbf16>
    %5 = vector.shape_cast %4 : vector<1x512x256xbf16> to vector<512x256xbf16>
    %c0_5 = arith.constant 0 : index
    %c0_6 = arith.constant 0 : index
    %c0_7 = arith.constant 0 : index
    %6 = vector.load %arg5[%c0_5, %c0_6, %c0_7] : memref<1x256x128xbf16, #tpu.memory_space<vmem>>, vector<1x256x128xbf16>
    %7 = vector.shape_cast %6 : vector<1x256x128xbf16> to vector<256x128xbf16>
    %cst = arith.constant dense<0.000000e+00> : vector<512x128xf32>
    %8 = tpu.matmul %5, %7, %cst {dimension_numbers = #tpu.dot_dimension_numbers<[1], [0], [0], [1], [0, 0, 1, 1], [], []>} : vector<512x256xbf16>, vector<256x128xbf16>, vector<512x128xf32> -> vector<512x128xf32>
    %9 = arith.addf %3, %8 : vector<512x128xf32>
    %c0_8 = arith.constant 0 : index
    %c0_9 = arith.constant 0 : index
    %10 = vector.load %arg7[%c0_8, %c0_9] : memref<512x128xf32, #tpu.memory_space<vmem>>, vector<512x128xf32>
    tpu.vector_store %arg7[%c0_8, %c0_9], %9 {strides = array<i32>} : memref<512x128xf32, #tpu.memory_space<vmem>>, vector<512x128xf32>,
    %c0_i32_10 = arith.constant 0 : i32
    %11 = arith.cmpi eq, %arg3, %c0_i32_10 : i32
    %12 = arith.extui %11 : i1 to i32
    %c0_i32_11 = arith.constant 0 : i32
    %13 = arith.cmpi ne, %12, %c0_i32_11 : i32
    scf.if %13 {
      %c0_12 = arith.constant 0 : index
      %c0_13 = arith.constant 0 : index
      %14 = vector.load %arg7[%c0_12, %c0_13] : memref<512x128xf32, #tpu.memory_space<vmem>>, vector<512x128xf32>
      %15 = math.tanh %14 : vector<512x128xf32>
      %c0_14 = arith.constant 0 : index
      %c0_15 = arith.constant 0 : index
      %c0_16 = arith.constant 0 : index
      %16 = vector.load %arg6[%c0_14, %c0_15, %c0_16] : memref<1x512x128xf32, #tpu.memory_space<vmem>>, vector<1x512x128xf32>
      %17 = vector.shape_cast %16 : vector<1x512x128xf32> to vector<512x128xf32>
      %18 = vector.shape_cast %15 : vector<512x128xf32> to vector<1x512x128xf32>
      tpu.vector_store %arg6[%c0_14, %c0_15, %c0_16], %18 {strides = array<i32>} : memref<1x512x128xf32, #tpu.memory_space<vmem>>, vector<1x512x128xf32>,
    } else {
    }
    return
  }
  func.func @transform_0(%arg0: i32, %arg1: i32, %arg2: i32, %arg3: i32) -> (i32, i32, i32) {
    %c0_i32 = arith.constant 0 : i32
    return %arg0, %arg1, %arg3 : i32, i32, i32
  }
  func.func @transform_1(%arg0: i32, %arg1: i32, %arg2: i32, %arg3: i32) -> (i32, i32, i32) {
    %c0_i32 = arith.constant 0 : i32
    return %arg0, %arg3, %arg2 : i32, i32, i32
  }
  func.func @transform_2(%arg0: i32, %arg1: i32, %arg2: i32, %arg3: i32) -> (i32, i32, i32) {
    %c0_i32 = arith.constant 0 : i32
    return %arg0, %arg1, %arg2 : i32, i32, i32
  }
}

</mosaic_0001>

<bundles_post_ra>
// kernel: generator_forward.9
= control target key start
LH: loop header
LB: loop body
LE: loop exit
PB: predicated region body
PF: predicated region fallthrough
CT: control target
= control target key end

     0   :  { %s781_s9 = smov 0   ;;  %s783_s10 = smov 0   ;;  %s867_s0 = inlined_call_operand.vmem [shape: bf16[1,8,128], index: 0, kind: input, shape index: {}]   ;;  %s868_s1 = inlined_call_operand.vmem [shape: bf16[1,128,8192], index: 1, kind: input, shape index: {}]   ;;  %s869_s2 = inlined_call_operand.vmem [shape: f32[1,8,8192], index: 2, kind: output, shape index: {}]  }
   0x1   :  { %s785_s11 = smov 0   ;;  %s787_s12 = smov 0  }
   0x2   :  { %s789_s13 = smov 0  }
   0x3 LB: > { %s30_s14 = sadd.s32 1, %s759_s12  ;;  %p86_p1 = scmp.ne.s32.totalorder %s751_s10, %s747_s9  ;;  %s763_s13 = sphi %s789_s13, %s12_s13   ;;  %s759_s12 = sphi %s787_s12, %s873_s12   ;;  %s755_s11 = sphi %s785_s11, %s872_s11   ;;  %s751_s10 = sphi %s783_s10, %s871_s10   ;;  %s747_s9 = sphi %s781_s9, %s870_s9  }
   0x4   : > { %p32_p0 = scmp.ge.s32.totalorder %s30_s14, 32  ;;  %p87_p2 = scmp.eq.s32.totalorder %s763_s13, 0 }
   0x5   : > { %s79_s16 = sadd.s32 1, %s751_s10  ;;  %p633_p5 = scmp.ge.s32.totalorder %s763_s13, 32 }
   0x6   : > { %s875_s14 = smov (%p32_p0, %s30_s14), 0  ;;  %p88_p3 = por %p87_p2, %p86_p1 }
   0x7   : > { %s75_s15 = ssub.s32 %s759_s12, %s875_s14  ;;  %155 = sbr.rel (%p633_p5) target bundleno = 34 (0x22), region = 20 }
   0x8   : > { %p77_p4 = scmp.eq.s32.totalorder %s75_s15, 0 }
   0xa   : > { %s816_s17 = scalar_select %p77_p4, %s751_s10, %s79_s16  }
   0xe   : > { %158 = sbr.rel (!%p88_p3) target bundleno = 34 (0x22), region = 24  ;;  %s160_s18 = sand.u32 (%p88_p3), 1, %s751_s10  }
   0xf   : > { %s659_s19 = sshll.u32 (%p88_p3), %s759_s12, 3  ;;  %s634_s20 = sshll.u32 (%p88_p3), %s160_s18, 7 }
  0x10   : > { %s824_s23 = scalar_lea.vmem (%p88_p3), %s868_s1, %s659_s19  ;;  %s162_s24 = scalar_lea.vmem (%p88_p3), [#allocation3], %s634_s20 }
  0x11   : > { %v228_v0 = vld [vmem:[%s824_s23] sm:$0xff] (%p88_p3) }
  0x12   : > { %v230_v1 = vld [vmem:[%s824_s23 + $0x100] sm:$0xff] (%p88_p3)  ;;  %229 = vst [vmem:[%s162_s24] sm:$0xff] (%p88_p3), %v228_v0 }
  0x13   : > { %v232_v2 = vld [vmem:[%s824_s23 + $0x200] sm:$0xff] (%p88_p3)  ;;  %231 = vst [vmem:[%s162_s24 + $0x8] sm:$0xff] (%p88_p3), %v230_v1 }
  0x14   : > { %233 = vst [vmem:[%s162_s24 + $0x10] sm:$0xff] (%p88_p3), %v232_v2  ;;  %v234_v3 = vld [vmem:[%s824_s23 + $0x300] sm:$0xff] (%p88_p3) }
  0x15   : > { %v236_v4 = vld [vmem:[%s824_s23 + $0x400] sm:$0xff]  ;;  %235 = vst [vmem:[%s162_s24 + $0x18] sm:$0xff] %v234_v3 }
  0x16   : > { %v238_v5 = vld [vmem:[%s824_s23 + $0x500] sm:$0xff]  ;;  %237 = vst [vmem:[%s162_s24 + $0x20] sm:$0xff] %v236_v4 }
  0x17   : > { %239 = vst [vmem:[%s162_s24 + $0x28] sm:$0xff] %v238_v5  ;;  %v240_v6 = vld [vmem:[%s824_s23 + $0x600] sm:$0xff] }
  0x18   : > { %v242_v7 = vld [vmem:[%s824_s23 + $0x700] sm:$0xff]  ;;  %241 = vst [vmem:[%s162_s24 + $0x30] sm:$0xff] %v240_v6 }
  0x19   : > { %v244_v8 = vld [vmem:[%s824_s23 + $0x800] sm:$0xff]  ;;  %243 = vst [vmem:[%s162_s24 + $0x38] sm:$0xff] %v242_v7 }
  0x1a   : > { %245 = vst [vmem:[%s162_s24 + $0x40] sm:$0xff] %v244_v8  ;;  %v246_v9 = vld [vmem:[%s824_s23 + $0x900] sm:$0xff] }
  0x1b   : > { %v248_v10 = vld [vmem:[%s824_s23 + $0xa00] sm:$0xff]  ;;  %247 = vst [vmem:[%s162_s24 + $0x48] sm:$0xff] %v246_v9 }
  0x1c   : > { %v250_v11 = vld [vmem:[%s824_s23 + $0xb00] sm:$0xff]  ;;  %249 = vst [vmem:[%s162_s24 + $0x50] sm:$0xff] %v248_v10 }
  0x1d   : > { %251 = vst [vmem:[%s162_s24 + $0x58] sm:$0xff] %v250_v11  ;;  %v252_v12 = vld [vmem:[%s824_s23 + $0xc00] sm:$0xff] }
  0x1e   : > { %v254_v13 = vld [vmem:[%s824_s23 + $0xd00] sm:$0xff]  ;;  %253 = vst [vmem:[%s162_s24 + $0x60] sm:$0xff] %v252_v12 }
  0x1f   : > { %v256_v14 = vld [vmem:[%s824_s23 + $0xe00] sm:$0xff]  ;;  %255 = vst [vmem:[%s162_s24 + $0x68] sm:$0xff] %v254_v13 }
  0x20   : > { %257 = vst [vmem:[%s162_s24 + $0x70] sm:$0xff] %v256_v14  ;;  %v258_v15 = vld [vmem:[%s824_s23 + $0xf00] sm:$0xff] }
  0x21   : > { %259 = vst [vmem:[%s162_s24 + $0x78] sm:$0xff] %v258_v15 }
  0x22 PF: > { %p637_p6 = scmp.ge.s32.totalorder %s763_s13, 1  ;;  %p264_p7 = scmp.lt.s32.totalorder %s763_s13, 33 }
  0x24   : > { %p265_p8 = pnand %p637_p6, %p264_p7 }
  0x25   : > { %s271_s25 = sand.u32 (!%p265_p8), 1, %s747_s9   ;;  %v765_v16 = vmov (!%p265_p8), 0   ;;  %v345_v33 = vld [vmem:[%s867_s0] sm:$0xf] (!%p265_p8)  ;;  %s639_s30 = sshll.u32 (!%p265_p8), %s755_s11, 1 }
  0x26   : > { %268 = sbr.rel (%p265_p8) target bundleno = 288 (0x120), region = 62  ;;  %s638_s26 = sshll.u32 (!%p265_p8), %s271_s25, 7  ;;  %474 = vmatprep.mubr.bf16.mxu0 (!%p265_p8), %v765_v16 }
  0x27   : > { %s273_s27 = scalar_lea.vmem (!%p265_p8), [#allocation3], %s638_s26  ;;  %p327_p9 = scmp.lt.s32.totalorder (!%p265_p8), %s639_s30, 63 }
  0x28   : > { %v701_v17 = vld [vmem:[%s273_s27 + $0x4] ss:$8 sps:$4 sm:$0xff] (!%p265_p8)   ;;  %v703_v18 = vld [vmem:[%s273_s27] ss:$8 sps:$4 sm:$0xff] (!%p265_p8)   ;;  %v704_v19 = vld [vmem:[%s273_s27 + $0x14] ss:$8 sps:$4 sm:$0xff] (!%p265_p8)  }
  0x29   : > { %442 = vmatprep.subr.bf16.mxu0 (!%p265_p8), %v701_v17  ;;  %v706_v20 = vld [vmem:[%s273_s27 + $0x10] ss:$8 sps:$4 sm:$0xff] (!%p265_p8)   ;;  %v707_v21 = vld [vmem:[%s273_s27 + $0x24] ss:$8 sps:$4 sm:$0xff] (!%p265_p8)   ;;  %v709_v22 = vld [vmem:[%s273_s27 + $0x20] ss:$8 sps:$4 sm:$0xff] (!%p265_p8)  }
  0x2a   : > { %443 = vmatpush1.bf16.msra.mxu0 (!%p265_p8), %v703_v18  ;;  %v710_v23 = vld [vmem:[%s273_s27 + $0x34] ss:$8 sps:$4 sm:$0xff] (!%p265_p8)   ;;  %v712_v24 = vld [vmem:[%s273_s27 + $0x30] ss:$8 sps:$4 sm:$0xff] (!%p265_p8)   ;;  %v713_v25 = vld [vmem:[%s273_s27 + $0x44] ss:$8 sps:$4 sm:$0xff] (!%p265_p8)  }
  0x2b   : > { %444 = vmatprep.subr.bf16.mxu0 (!%p265_p8), %v704_v19  ;;  %v715_v26 = vld [vmem:[%s273_s27 + $0x40] ss:$8 sps:$4 sm:$0xff] (!%p265_p8)   ;;  %v716_v27 = vld [vmem:[%s273_s27 + $0x54] ss:$8 sps:$4 sm:$0xff] (!%p265_p8)   ;;  %v718_v28 = vld [vmem:[%s273_s27 + $0x50] ss:$8 sps:$4 sm:$0xff] (!%p265_p8)  }
  0x2c   : > { %v719_v29 = vld [vmem:[%s273_s27 + $0x64] ss:$8 sps:$4 sm:$0xff] (!%p265_p8)   ;;  %v721_v30 = vld [vmem:[%s273_s27 + $0x60] ss:$8 sps:$4 sm:$0xff] (!%p265_p8)   ;;  %v722_v31 = vld [vmem:[%s273_s27 + $0x74] ss:$8 sps:$4 sm:$0xff] (!%p265_p8)  }
  0x2d   : > { %v724_v32 = vld [vmem:[%s273_s27 + $0x70] ss:$8 sps:$4 sm:$0xff]   ;;  %s877_s30 = smov (!%p327_p9, %s639_s30), 63 }
  0x2e   : > { %445 = vmatpush1.bf16.msra.mxu0 %v706_v20  ;;  %s640_s3 = sshll.u32 %s877_s30, 3 }
  0x2f   : > { %446 = vmatprep.subr.bf16.mxu0 %v707_v21  ;;  %s334_s6 = scalar_lea.vmem %s869_s2, %s640_s3 }
  0x32   : > { %447 = vmatpush1.bf16.msra.mxu0 %v709_v22 }
  0x33   : > { %448 = vmatprep.subr.bf16.mxu0 %v710_v23 }
  0x36   : > { %449 = vmatpush1.bf16.msra.mxu0 %v712_v24 }
  0x37   : > { %450 = vmatprep.subr.bf16.mxu0 %v713_v25 }
  0x3a   : > { %451 = vmatpush1.bf16.msra.mxu0 %v715_v26 }
  0x3b   : > { %452 = vmatprep.subr.bf16.mxu0 %v716_v27 }
  0x3e   : > { %453 = vmatpush1.bf16.msra.mxu0 %v718_v28 }
  0x3f   : > { %454 = vmatprep.subr.bf16.mxu0 %v719_v29 }
  0x42   : > { %455 = vmatpush1.bf16.msra.mxu0 %v721_v30 }
  0x43   : > { %456 = vmatprep.subr.bf16.mxu0 %v722_v31 }
  0x46   : > { %457 = vmatpush1.bf16.msra.mxu0 %v724_v32 }
  0x49   : > { %475 = vmatmul.mubr.bf16.vlgmr.msra.gmra.mrb[0].mxu0 %v345_v33 }
 0x11c   : > { %v476_v34 = vpop.f32.mrb[0].mxu0 }
 0x11d   : > { %492 = vst [vmem:[%s334_s6] sm:$0xff] %v476_v34  ;;  %v478_v35 = vpop.f32.mrb[1].mxu0 }
 0x11e   : > { %493 = vst [vmem:[%s334_s6 + $0x8] sm:$0xff] %v478_v35  ;;  %v480_v36 = vpop.f32.mrb[2].mxu0 }
 0x11f   : > { %v481_v37 = vpop.f32.mrb[3].mxu0 }
 0x120 PF: > { %s12_s13 = sadd.s32 1, %s763_s13   ;;  %s870_s9 = smov %s751_s10 }
 0x121   : > { %p9_p10 = scmp.ge.s32.totalorder %s12_s13, 34   ;;  %s871_s10 = smov %s816_s17 }
 0x122   : > { %s872_s11 = smov %s759_s12  ;;  %s873_s12 = smov %s875_s14 }
 0x123   :  { %11 = sbr.rel (!%p9_p10) target bundleno = 3 (0x3), region = 112 }

// kernel: tile.13
= control target key start
LH: loop header
LB: loop body
LE: loop exit
PB: predicated region body
PF: predicated region fallthrough
CT: control target
= control target key end

     0   :  { %s82_s0 = inlined_call_operand.vmem [shape: f32[512], index: 0, kind: input, shape index: {}]   ;;  %s83_s1 = inlined_call_operand.vmem [shape: f32[16,512], index: 1, kind: output, shape index: {}]  }
   0x1   :  { %v4_v0 = vld [vmem:[%s82_s0] ss:$0 sm:$0xff]  ;;  %v27_v1 = vld [vmem:[%s82_s0 + $0x1] ss:$0 sm:$0xff]  ;;  %v30_v2 = vld [vmem:[%s82_s0 + $0x2] ss:$0 sm:$0xff] }
   0x2   :  { %5 = vst [vmem:[%s83_s1] sm:$0xff] %v4_v0  ;;  %26 = vst [vmem:[%s83_s1 + $0x20] sm:$0xff] %v4_v0  ;;  %v33_v3 = vld [vmem:[%s82_s0 + $0x3] ss:$0 sm:$0xff] }
   0x3   :  { %28 = vst [vmem:[%s83_s1 + $0x8] sm:$0xff] %v27_v1  ;;  %29 = vst [vmem:[%s83_s1 + $0x28] sm:$0xff] %v27_v1 }
   0x4   :  { %31 = vst [vmem:[%s83_s1 + $0x10] sm:$0xff] %v30_v2  ;;  %32 = vst [vmem:[%s83_s1 + $0x30] sm:$0xff] %v30_v2 }
   0x5   :  { %34 = vst [vmem:[%s83_s1 + $0x18] sm:$0xff] %v33_v3  ;;  %35 = vst [vmem:[%s83_s1 + $0x38] sm:$0xff] %v33_v3 }

// kernel: generator_forward.10
= control target key start
LH: loop header
LB: loop body
LE: loop exit
PB: predicated region body
PF: predicated region fallthrough
CT: control target
= control target key end

     0   :  { %v94_v0 = vlaneseq  ;;  %s1948_s1 = inlined_call_operand.vmem [shape: f32[1,1,8192], index: 1, kind: input, shape index: {}]   ;;  %s1949_s2 = inlined_call_operand.vmem [shape: f32[1,1,8192], index: 2, kind: input, shape index: {}]   ;;  %s1950_s0 = inlined_call_operand.vmem [shape: f32[1,8,8192], index: 0, kind: input, shape index: {}]   ;;  %s1951_s3 = inlined_call_operand.vmem [shape: bf16[1,8,8192], index: 3, kind: output, shape index: {}]  }
   0x1   :  { %v78_v2 = vld [vmem:[%s1948_s1] sm:$0xff]  ;;  %v15_v9 = vld [vmem:[%s1950_s0 + $0x8] sm:$0xff]  ;;  %v16_v18 = vld [vmem:[%s1950_s0 + $0x10] sm:$0xff] }
   0x2   :  { %v95_v1 = vshrl.u32 %v94_v0, 7  ;;  %v1324_v3 = vld [vmem:[%s1949_s2] sm:$0xff]  ;;  %v17_v19 = vld [vmem:[%s1950_s0 + $0x18] sm:$0xff]  ;;  %v19_v25 = vld [vmem:[%s1950_s0 + $0x28] sm:$0xff] }
   0x3   :  { %v14_v8 = vld [vmem:[%s1950_s0] sm:$0xff]  ;;  %v20_v38 = vld [vmem:[%s1950_s0 + $0x30] sm:$0xff]  ;;  %v21_v39 = vld [vmem:[%s1950_s0 + $0x38] sm:$0xff] }
   0x4   :  { %v1326_v4 = vsub.s32 0, %v95_v1  ;;  %v1328_v5 = vsub.s32 1, %v95_v1  ;;  %v1330_v6 = vsub.s32 2, %v95_v1  ;;  %v1332_v7 = vsub.s32 3, %v95_v1  ;;  %v18_v24 = vld [vmem:[%s1950_s0 + $0x20] sm:$0xff]  ;;  %v1389_v48 = vld [vmem:[%s1948_s1 + $0x8] sm:$0xff] }
   0x5   :  { %v1340_v10 = vsub.s32 4, %v95_v1  ;;  %v1342_v11 = vsub.s32 5, %v95_v1  ;;  %v1344_v12 = vsub.s32 6, %v95_v1  ;;  %v1346_v13 = vsub.s32 7, %v95_v1  ;;  %v1394_v53 = vld [vmem:[%s1949_s2 + $0x8] sm:$0xff]  ;;  %v22_v58 = vld [vmem:[%s1950_s0 + $0x40] sm:$0xff] }
   0x6   :  { %v97_v14 = vrot.slane %v78_v2, %v1326_v4  ;;  %v101_v15 = vrot.slane %v78_v2, %v1328_v5  ;;  %v497_v16 = vrot.slane %v1324_v3, %v1326_v4  ;;  %v501_v17 = vrot.slane %v1324_v3, %v1328_v5  ;;  %v23_v59 = vld [vmem:[%s1950_s0 + $0x48] sm:$0xff] }
   0x7   :  { %v105_v20 = vrot.slane %v78_v2, %v1330_v6  ;;  %v109_v21 = vrot.slane %v78_v2, %v1332_v7  ;;  %v505_v22 = vrot.slane %v1324_v3, %v1330_v6  ;;  %v509_v23 = vrot.slane %v1324_v3, %v1332_v7 }
   0x8   :  { %v414_v26 = vmul.f32 %v97_v14, %v14_v8  ;;  %v415_v27 = vmul.f32 %v101_v15, %v15_v9  ;;  %v113_v28 = vrot.slane %v78_v2, %v1340_v10  ;;  %v117_v29 = vrot.slane %v78_v2, %v1342_v11 }
   0x9   :  { %v416_v30 = vmul.f32 %v105_v20, %v16_v18  ;;  %v417_v31 = vmul.f32 %v109_v21, %v17_v19  ;;  %v513_v32 = vrot.slane %v1324_v3, %v1340_v10  ;;  %v517_v33 = vrot.slane %v1324_v3, %v1342_v11 }
   0xa   :  { %v814_v34 = vadd.f32 %v497_v16, %v414_v26  ;;  %v815_v35 = vadd.f32 %v501_v17, %v415_v27  ;;  %v418_v36 = vmul.f32 %v113_v28, %v18_v24  ;;  %v419_v37 = vmul.f32 %v117_v29, %v19_v25  ;;  %v25_v16 = vld [vmem:[%s1950_s0 + $0x58] sm:$0xff]  ;;  %v26_v26 = vld [vmem:[%s1950_s0 + $0x60] sm:$0xff]  ;;  %v27_v27 = vld [vmem:[%s1950_s0 + $0x68] sm:$0xff] }
   0xb   :  { %v816_v40 = vadd.f32 %v505_v22, %v416_v30  ;;  %v817_v41 = vadd.f32 %v509_v23, %v417_v31  ;;  %v121_v42 = vrot.slane %v78_v2, %v1344_v12  ;;  %v125_v43 = vrot.slane %v78_v2, %v1346_v13 }
   0xc   :  { %v878_v44 = vmax.f32 %v814_v34, 0.0  ;;  %v879_v45 = vmax.f32 %v815_v35, 0.0  ;;  %v818_v46 = vadd.f32 %v513_v32, %v418_v36  ;;  %v819_v47 = vadd.f32 %v517_v33, %v419_v37 }
   0xd   :  { %v880_v49 = vmax.f32 %v816_v40, 0.0  ;;  %v881_v50 = vmax.f32 %v817_v41, 0.0  ;;  %v420_v51 = vmul.f32 %v121_v42, %v20_v38  ;;  %v421_v52 = vmul.f32 %v125_v43, %v21_v39  ;;  %v28_v40 = vld [vmem:[%s1950_s0 + $0x70] sm:$0xff]  ;;  %v29_v41 = vld [vmem:[%s1950_s0 + $0x78] sm:$0xff] }
   0xe   :  { %v1266_v54 = vpack.c.bf16 %v879_v45, %v878_v44  ;;  %v882_v55 = vmax.f32 %v818_v46, 0.0  ;;  %v883_v56 = vmax.f32 %v819_v47, 0.0  ;;  %v521_v57 = vrot.slane %v1324_v3, %v1344_v12  ;;  %v1460_v42 = vld [vmem:[%s1948_s1 + $0x10] sm:$0xff] }
   0xf   :  { %v1267_v60 = vpack.c.bf16 %v881_v50, %v880_v49  ;;  %v525_v61 = vrot.slane %v1324_v3, %v1346_v13  ;;  %v129_v62 = vrot.slane %v1389_v48, %v1326_v4  ;;  %v133_v63 = vrot.slane %v1389_v48, %v1328_v5  ;;  %v24_v3 = vld [vmem:[%s1950_s0 + $0x50] sm:$0xff] }
  0x10   :  { %1198 = vst [vmem:[%s1951_s3] sm:$0xff] %v1266_v54  ;;  %v1268_v0 = vpack.c.bf16 %v883_v56, %v882_v55  ;;  %v820_v1 = vadd.f32 %v521_v57, %v420_v51  ;;  %v529_v2 = vrot.slane %v1394_v53, %v1326_v4  ;;  %v533_v8 = vrot.slane %v1394_v53, %v1328_v5  ;;  %v1477_v54 = vld [vmem:[%s1949_s2 + $0x10] sm:$0xff]  ;;  %v31_v57 = vld [vmem:[%s1950_s0 + $0x88] sm:$0xff] }
  0x11   :  { %1199 = vst [vmem:[%s1951_s3 + $0x8] sm:$0xff] %v1267_v60  ;;  %v821_v9 = vadd.f32 %v525_v61, %v421_v52  ;;  %v422_v14 = vmul.f32 %v129_v62, %v22_v58  ;;  %v423_v15 = vmul.f32 %v133_v63, %v23_v59  ;;  %v137_v17 = vrot.slane %v1389_v48, %v1330_v6  ;;  %v30_v52 = vld [vmem:[%s1950_s0 + $0x80] sm:$0xff] }
  0x12   :  { %1200 = vst [vmem:[%s1951_s3 + $0x10] sm:$0xff] %v1268_v0  ;;  %v884_v18 = vmax.f32 %v820_v1, 0.0  ;;  %v141_v19 = vrot.slane %v1389_v48, %v1332_v7  ;;  %v537_v20 = vrot.slane %v1394_v53, %v1330_v6  ;;  %v541_v21 = vrot.slane %v1394_v53, %v1332_v7 }
  0x13   :  { %v885_v22 = vmax.f32 %v821_v9, 0.0  ;;  %v822_v23 = vadd.f32 %v529_v2, %v422_v14  ;;  %v823_v24 = vadd.f32 %v533_v8, %v423_v15  ;;  %v424_v25 = vmul.f32 %v137_v17, %v24_v3  ;;  %v33_v14 = vld [vmem:[%s1950_s0 + $0x98] sm:$0xff] }
  0x14   :  { %v425_v28 = vmul.f32 %v141_v19, %v25_v16  ;;  %v145_v29 = vrot.slane %v1389_v48, %v1340_v10  ;;  %v149_v30 = vrot.slane %v1389_v48, %v1342_v11  ;;  %v545_v31 = vrot.slane %v1394_v53, %v1340_v10 }
  0x15   :  { %v1269_v32 = vpack.c.bf16 %v885_v22, %v884_v18  ;;  %v886_v33 = vmax.f32 %v822_v23, 0.0  ;;  %v887_v34 = vmax.f32 %v823_v24, 0.0  ;;  %v824_v35 = vadd.f32 %v537_v20, %v424_v25  ;;  %v34_v24 = vld [vmem:[%s1950_s0 + $0xa0] sm:$0xff] }
  0x16   :  { %v825_v36 = vadd.f32 %v541_v21, %v425_v28  ;;  %v426_v37 = vmul.f32 %v145_v29, %v26_v26  ;;  %v427_v38 = vmul.f32 %v149_v30, %v27_v27  ;;  %v549_v39 = vrot.slane %v1394_v53, %v1342_v11  ;;  %v35_v28 = vld [vmem:[%s1950_s0 + $0xa8] sm:$0xff] }
  0x17   :  { %1201 = vst [vmem:[%s1951_s3 + $0x18] sm:$0xff] %v1269_v32  ;;  %v1270_v43 = vpack.c.bf16 %v887_v34, %v886_v33  ;;  %v888_v44 = vmax.f32 %v824_v35, 0.0  ;;  %v153_v45 = vrot.slane %v1389_v48, %v1344_v12  ;;  %v157_v46 = vrot.slane %v1389_v48, %v1346_v13  ;;  %v36_v34 = vld [vmem:[%s1950_s0 + $0xb0] sm:$0xff] }
  0x18   :  { %v889_v47 = vmax.f32 %v825_v36, 0.0  ;;  %v826_v49 = vadd.f32 %v545_v31, %v426_v37  ;;  %v827_v50 = vadd.f32 %v549_v39, %v427_v38  ;;  %v553_v51 = vrot.slane %v1394_v53, %v1344_v12  ;;  %v37_v38 = vld [vmem:[%s1950_s0 + $0xb8] sm:$0xff] }
  0x19   :  { %1202 = vst [vmem:[%s1951_s3 + $0x20] sm:$0xff] %v1270_v43  ;;  %v428_v48 = vmul.f32 %v153_v45, %v28_v40  ;;  %v429_v55 = vmul.f32 %v157_v46, %v29_v41  ;;  %v557_v56 = vrot.slane %v1394_v53, %v1346_v13  ;;  %v161_v58 = vrot.slane %v1460_v42, %v1326_v4  ;;  %v32_v53 = vld [vmem:[%s1950_s0 + $0x90] sm:$0xff]  ;;  %v1543_v40 = vld [vmem:[%s1948_s1 + $0x18] sm:$0xff] }
  0x1a   :  { %v1271_v59 = vpack.c.bf16 %v889_v47, %v888_v44  ;;  %v890_v60 = vmax.f32 %v826_v49, 0.0  ;;  %v891_v61 = vmax.f32 %v827_v50, 0.0  ;;  %v165_v62 = vrot.slane %v1460_v42, %v1328_v5 }
  0x1b   :  { %v828_v63 = vadd.f32 %v553_v51, %v428_v48  ;;  %v829_v0 = vadd.f32 %v557_v56, %v429_v55  ;;  %v430_v1 = vmul.f32 %v161_v58, %v30_v52  ;;  %v561_v2 = vrot.slane %v1477_v54, %v1326_v4  ;;  %v38_v51 = vld [vmem:[%s1950_s0 + $0xc0] sm:$0xff]  ;;  %v1555_v52 = vld [vmem:[%s1949_s2 + $0x18] sm:$0xff]  ;;  %v39_v56 = vld [vmem:[%s1950_s0 + $0xc8] sm:$0xff] }
  0x1c   :  { %1203 = vst [vmem:[%s1951_s3 + $0x28] sm:$0xff] %v1271_v59  ;;  %v1272_v8 = vpack.c.bf16 %v891_v61, %v890_v60  ;;  %v431_v3 = vmul.f32 %v165_v62, %v31_v57  ;;  %v565_v9 = vrot.slane %v1477_v54, %v1328_v5  ;;  %v169_v15 = vrot.slane %v1460_v42, %v1330_v6 }
  0x1d   :  { %v892_v16 = vmax.f32 %v828_v63, 0.0  ;;  %v893_v17 = vmax.f32 %v829_v0, 0.0  ;;  %v830_v18 = vadd.f32 %v561_v2, %v430_v1  ;;  %v173_v19 = vrot.slane %v1460_v42, %v1332_v7 }
  0x1e   :  { %1204 = vst [vmem:[%s1951_s3 + $0x30] sm:$0xff] %v1272_v8  ;;  %v831_v20 = vadd.f32 %v565_v9, %v431_v3  ;;  %v432_v21 = vmul.f32 %v169_v15, %v32_v53  ;;  %v569_v22 = vrot.slane %v1477_v54, %v1330_v6  ;;  %v573_v23 = vrot.slane %v1477_v54, %v1332_v7  ;;  %v41_v3 = vld [vmem:[%s1950_s0 + $0xd8] sm:$0xff] }
  0x1f   :  { %v1273_v25 = vpack.c.bf16 %v893_v17, %v892_v16  ;;  %v894_v26 = vmax.f32 %v830_v18, 0.0  ;;  %v433_v27 = vmul.f32 %v173_v19, %v33_v14  ;;  %v177_v29 = vrot.slane %v1460_v42, %v1340_v10 }
  0x20   :  { %v895_v30 = vmax.f32 %v831_v20, 0.0  ;;  %v832_v31 = vadd.f32 %v569_v22, %v432_v21  ;;  %v181_v32 = vrot.slane %v1460_v42, %v1342_v11  ;;  %v577_v33 = vrot.slane %v1477_v54, %v1340_v10  ;;  %v42_v22 = vld [vmem:[%s1950_s0 + $0xe0] sm:$0xff] }
  0x21   :  { %1205 = vst [vmem:[%s1951_s3 + $0x38] sm:$0xff] %v1273_v25  ;;  %v833_v35 = vadd.f32 %v573_v23, %v433_v27  ;;  %v434_v36 = vmul.f32 %v177_v29, %v34_v24  ;;  %v581_v37 = vrot.slane %v1477_v54, %v1342_v11  ;;  %v185_v39 = vrot.slane %v1460_v42, %v1344_v12 }
  0x22   :  { %v1274_v41 = vpack.c.bf16 %v895_v30, %v894_v26  ;;  %v896_v43 = vmax.f32 %v832_v31, 0.0  ;;  %v435_v44 = vmul.f32 %v181_v32, %v35_v28  ;;  %v189_v45 = vrot.slane %v1460_v42, %v1346_v13  ;;  %v43_v26 = vld [vmem:[%s1950_s0 + $0xe8] sm:$0xff]  ;;  %v44_v32 = vld [vmem:[%s1950_s0 + $0xf0] sm:$0xff] }
  0x23   :  { %v897_v46 = vmax.f32 %v833_v35, 0.0  ;;  %v834_v47 = vadd.f32 %v577_v33, %v434_v36  ;;  %v436_v49 = vmul.f32 %v185_v39, %v36_v34  ;;  %v585_v50 = vrot.slane %v1477_v54, %v1344_v12  ;;  %v45_v36 = vld [vmem:[%s1950_s0 + $0xf8] sm:$0xff] }
  0x24   :  { %1206 = vst [vmem:[%s1951_s3 + $0x40] sm:$0xff] %v1274_v41  ;;  %v835_v42 = vadd.f32 %v581_v37, %v435_v44  ;;  %v437_v48 = vmul.f32 %v189_v45, %v37_v38  ;;  %v589_v55 = vrot.slane %v1477_v54, %v1346_v13  ;;  %v193_v57 = vrot.slane %v1543_v40, %v1326_v4  ;;  %v40_v54 = vld [vmem:[%s1950_s0 + $0xd0] sm:$0xff]  ;;  %v1621_v38 = vld [vmem:[%s1948_s1 + $0x20] sm:$0xff] }
  0x25   :  { %v1275_v58 = vpack.c.bf16 %v897_v46, %v896_v43  ;;  %v898_v59 = vmax.f32 %v834_v47, 0.0  ;;  %v836_v60 = vadd.f32 %v585_v50, %v436_v49  ;;  %v197_v61 = vrot.slane %v1543_v40, %v1328_v5  ;;  %v46_v50 = vld [vmem:[%s1950_s0 + $0x100] sm:$0xff] }
  0x26   :  { %v899_v62 = vmax.f32 %v835_v42, 0.0  ;;  %v837_v63 = vadd.f32 %v589_v55, %v437_v48  ;;  %v438_v0 = vmul.f32 %v193_v57, %v38_v51  ;;  %v593_v1 = vrot.slane %v1555_v52, %v1326_v4  ;;  %v1633_v51 = vld [vmem:[%s1949_s2 + $0x20] sm:$0xff]  ;;  %v47_v55 = vld [vmem:[%s1950_s0 + $0x108] sm:$0xff] }
  0x27   :  { %1207 = vst [vmem:[%s1951_s3 + $0x48] sm:$0xff] %v1275_v58  ;;  %v900_v2 = vmax.f32 %v836_v60, 0.0  ;;  %v439_v53 = vmul.f32 %v197_v61, %v39_v56  ;;  %v597_v8 = vrot.slane %v1555_v52, %v1328_v5  ;;  %v201_v9 = vrot.slane %v1543_v40, %v1330_v6 }
  0x28   :  { %v1276_v14 = vpack.c.bf16 %v899_v62, %v898_v59  ;;  %v901_v15 = vmax.f32 %v837_v63, 0.0  ;;  %v838_v16 = vadd.f32 %v593_v1, %v438_v0  ;;  %v205_v17 = vrot.slane %v1543_v40, %v1332_v7 }
  0x29   :  { %v839_v18 = vadd.f32 %v597_v8, %v439_v53  ;;  %v440_v19 = vmul.f32 %v201_v9, %v40_v54  ;;  %v601_v20 = vrot.slane %v1555_v52, %v1330_v6  ;;  %v605_v21 = vrot.slane %v1555_v52, %v1332_v7  ;;  %v49_v53 = vld [vmem:[%s1950_s0 + $0x118] sm:$0xff] }
  0x2a   :  { %1208 = vst [vmem:[%s1951_s3 + $0x50] sm:$0xff] %v1276_v14  ;;  %v1277_v23 = vpack.c.bf16 %v901_v15, %v900_v2  ;;  %v902_v24 = vmax.f32 %v838_v16, 0.0  ;;  %v441_v25 = vmul.f32 %v205_v17, %v41_v3  ;;  %v209_v27 = vrot.slane %v1543_v40, %v1340_v10 }
  0x2b   :  { %v903_v28 = vmax.f32 %v839_v18, 0.0  ;;  %v840_v29 = vadd.f32 %v601_v20, %v440_v19  ;;  %v213_v30 = vrot.slane %v1543_v40, %v1342_v11  ;;  %v609_v31 = vrot.slane %v1555_v52, %v1340_v10  ;;  %v50_v20 = vld [vmem:[%s1950_s0 + $0x120] sm:$0xff] }
  0x2c   :  { %1209 = vst [vmem:[%s1951_s3 + $0x58] sm:$0xff] %v1277_v23  ;;  %v841_v33 = vadd.f32 %v605_v21, %v441_v25  ;;  %v442_v34 = vmul.f32 %v209_v27, %v42_v22  ;;  %v613_v35 = vrot.slane %v1555_v52, %v1342_v11  ;;  %v217_v37 = vrot.slane %v1543_v40, %v1344_v12 }
  0x2d   :  { %v1278_v39 = vpack.c.bf16 %v903_v28, %v902_v24  ;;  %v904_v41 = vmax.f32 %v840_v29, 0.0  ;;  %v443_v43 = vmul.f32 %v213_v30, %v43_v26  ;;  %v221_v44 = vrot.slane %v1543_v40, %v1346_v13  ;;  %v51_v24 = vld [vmem:[%s1950_s0 + $0x128] sm:$0xff]  ;;  %v52_v30 = vld [vmem:[%s1950_s0 + $0x130] sm:$0xff] }
  0x2e   :  { %v905_v45 = vmax.f32 %v841_v33, 0.0  ;;  %v842_v46 = vadd.f32 %v609_v31, %v442_v34  ;;  %v444_v47 = vmul.f32 %v217_v37, %v44_v32  ;;  %v617_v49 = vrot.slane %v1555_v52, %v1344_v12  ;;  %v53_v34 = vld [vmem:[%s1950_s0 + $0x138] sm:$0xff] }
  0x2f   :  { %1210 = vst [vmem:[%s1951_s3 + $0x60] sm:$0xff] %v1278_v39  ;;  %v843_v40 = vadd.f32 %v613_v35, %v443_v43  ;;  %v445_v42 = vmul.f32 %v221_v44, %v45_v36  ;;  %v621_v48 = vrot.slane %v1555_v52, %v1346_v13  ;;  %v225_v56 = vrot.slane %v1621_v38, %v1326_v4  ;;  %v48_v52 = vld [vmem:[%s1950_s0 + $0x110] sm:$0xff]  ;;  %v1699_v36 = vld [vmem:[%s1948_s1 + $0x28] sm:$0xff] }
  0x30   :  { %v1279_v57 = vpack.c.bf16 %v905_v45, %v904_v41  ;;  %v906_v58 = vmax.f32 %v842_v46, 0.0  ;;  %v844_v59 = vadd.f32 %v617_v49, %v444_v47  ;;  %v229_v60 = vrot.slane %v1621_v38, %v1328_v5  ;;  %v54_v49 = vld [vmem:[%s1950_s0 + $0x140] sm:$0xff] }
  0x31   :  { %v907_v61 = vmax.f32 %v843_v40, 0.0  ;;  %v845_v62 = vadd.f32 %v621_v48, %v445_v42  ;;  %v446_v63 = vmul.f32 %v225_v56, %v46_v50  ;;  %v625_v0 = vrot.slane %v1633_v51, %v1326_v4  ;;  %v1711_v50 = vld [vmem:[%s1949_s2 + $0x28] sm:$0xff] }
  0x32   :  { %1211 = vst [vmem:[%s1951_s3 + $0x68] sm:$0xff] %v1279_v57  ;;  %v908_v1 = vmax.f32 %v844_v59, 0.0  ;;  %v447_v54 = vmul.f32 %v229_v60, %v47_v55  ;;  %v629_v2 = vrot.slane %v1633_v51, %v1328_v5  ;;  %v233_v8 = vrot.slane %v1621_v38, %v1330_v6  ;;  %v55_v48 = vld [vmem:[%s1950_s0 + $0x148] sm:$0xff] }
  0x33   :  { %v1280_v3 = vpack.c.bf16 %v907_v61, %v906_v58  ;;  %v909_v9 = vmax.f32 %v845_v62, 0.0  ;;  %v846_v14 = vadd.f32 %v625_v0, %v446_v63  ;;  %v237_v15 = vrot.slane %v1621_v38, %v1332_v7 }
  0x34   :  { %v847_v16 = vadd.f32 %v629_v2, %v447_v54  ;;  %v448_v17 = vmul.f32 %v233_v8, %v48_v52  ;;  %v633_v18 = vrot.slane %v1633_v51, %v1330_v6  ;;  %v637_v19 = vrot.slane %v1633_v51, %v1332_v7  ;;  %v57_v54 = vld [vmem:[%s1950_s0 + $0x158] sm:$0xff] }
  0x35   :  { %1212 = vst [vmem:[%s1951_s3 + $0x70] sm:$0xff] %v1280_v3  ;;  %v1281_v21 = vpack.c.bf16 %v909_v9, %v908_v1  ;;  %v910_v22 = vmax.f32 %v846_v14, 0.0  ;;  %v449_v23 = vmul.f32 %v237_v15, %v49_v53  ;;  %v241_v25 = vrot.slane %v1621_v38, %v1340_v10 }
  0x36   :  { %v911_v26 = vmax.f32 %v847_v16, 0.0  ;;  %v848_v27 = vadd.f32 %v633_v18, %v448_v17  ;;  %v245_v28 = vrot.slane %v1621_v38, %v1342_v11  ;;  %v641_v29 = vrot.slane %v1633_v51, %v1340_v10  ;;  %v58_v18 = vld [vmem:[%s1950_s0 + $0x160] sm:$0xff] }
  0x37   :  { %1213 = vst [vmem:[%s1951_s3 + $0x78] sm:$0xff] %v1281_v21  ;;  %v849_v31 = vadd.f32 %v637_v19, %v449_v23  ;;  %v450_v32 = vmul.f32 %v241_v25, %v50_v20  ;;  %v645_v33 = vrot.slane %v1633_v51, %v1342_v11  ;;  %v249_v35 = vrot.slane %v1621_v38, %v1344_v12 }
  0x38   :  { %v1282_v37 = vpack.c.bf16 %v911_v26, %v910_v22  ;;  %v912_v39 = vmax.f32 %v848_v27, 0.0  ;;  %v451_v41 = vmul.f32 %v245_v28, %v51_v24  ;;  %v253_v43 = vrot.slane %v1621_v38, %v1346_v13  ;;  %v59_v22 = vld [vmem:[%s1950_s0 + $0x168] sm:$0xff]  ;;  %v60_v28 = vld [vmem:[%s1950_s0 + $0x170] sm:$0xff] }
  0x39   :  { %v913_v44 = vmax.f32 %v849_v31, 0.0  ;;  %v850_v45 = vadd.f32 %v641_v29, %v450_v32  ;;  %v452_v46 = vmul.f32 %v249_v35, %v52_v30  ;;  %v649_v47 = vrot.slane %v1633_v51, %v1344_v12  ;;  %v61_v32 = vld [vmem:[%s1950_s0 + $0x178] sm:$0xff] }
  0x3a   :  { %1214 = vst [vmem:[%s1951_s3 + $0x80] sm:$0xff] %v1282_v37  ;;  %v851_v38 = vadd.f32 %v645_v33, %v451_v41  ;;  %v453_v40 = vmul.f32 %v253_v43, %v53_v34  ;;  %v653_v42 = vrot.slane %v1633_v51, %v1346_v13  ;;  %v257_v55 = vrot.slane %v1699_v36, %v1326_v4  ;;  %v56_v51 = vld [vmem:[%s1950_s0 + $0x150] sm:$0xff] }
  0x3b   :  { %v1283_v56 = vpack.c.bf16 %v913_v44, %v912_v39  ;;  %v914_v57 = vmax.f32 %v850_v45, 0.0  ;;  %v852_v58 = vadd.f32 %v649_v47, %v452_v46  ;;  %v261_v59 = vrot.slane %v1699_v36, %v1328_v5  ;;  %v1777_v34 = vld [vmem:[%s1948_s1 + $0x30] sm:$0xff]  ;;  %v62_v47 = vld [vmem:[%s1950_s0 + $0x180] sm:$0xff] }
  0x3c   :  { %v915_v60 = vmax.f32 %v851_v38, 0.0  ;;  %v853_v61 = vadd.f32 %v653_v42, %v453_v40  ;;  %v454_v62 = vmul.f32 %v257_v55, %v54_v49  ;;  %v657_v63 = vrot.slane %v1711_v50, %v1326_v4  ;;  %v1789_v49 = vld [vmem:[%s1949_s2 + $0x30] sm:$0xff]  ;;  %v63_v42 = vld [vmem:[%s1950_s0 + $0x188] sm:$0xff] }
  0x3d   :  { %1215 = vst [vmem:[%s1951_s3 + $0x88] sm:$0xff] %v1283_v56  ;;  %v916_v0 = vmax.f32 %v852_v58, 0.0  ;;  %v455_v52 = vmul.f32 %v261_v59, %v55_v48  ;;  %v661_v1 = vrot.slane %v1711_v50, %v1328_v5  ;;  %v265_v2 = vrot.slane %v1699_v36, %v1330_v6 }
  0x3e   :  { %v1284_v53 = vpack.c.bf16 %v915_v60, %v914_v57  ;;  %v917_v8 = vmax.f32 %v853_v61, 0.0  ;;  %v854_v3 = vadd.f32 %v657_v63, %v454_v62  ;;  %v269_v9 = vrot.slane %v1699_v36, %v1332_v7 }
  0x3f   :  { %v855_v14 = vadd.f32 %v661_v1, %v455_v52  ;;  %v456_v15 = vmul.f32 %v265_v2, %v56_v51  ;;  %v665_v16 = vrot.slane %v1711_v50, %v1330_v6  ;;  %v669_v17 = vrot.slane %v1711_v50, %v1332_v7  ;;  %v65_v52 = vld [vmem:[%s1950_s0 + $0x198] sm:$0xff] }
  0x40   :  { %1216 = vst [vmem:[%s1951_s3 + $0x90] sm:$0xff] %v1284_v53  ;;  %v1285_v19 = vpack.c.bf16 %v917_v8, %v916_v0  ;;  %v918_v20 = vmax.f32 %v854_v3, 0.0  ;;  %v457_v21 = vmul.f32 %v269_v9, %v57_v54  ;;  %v273_v23 = vrot.slane %v1699_v36, %v1340_v10 }
  0x41   :  { %v919_v24 = vmax.f32 %v855_v14, 0.0  ;;  %v856_v25 = vadd.f32 %v665_v16, %v456_v15  ;;  %v277_v26 = vrot.slane %v1699_v36, %v1342_v11  ;;  %v673_v27 = vrot.slane %v1711_v50, %v1340_v10  ;;  %v66_v16 = vld [vmem:[%s1950_s0 + $0x1a0] sm:$0xff] }
  0x42   :  { %1217 = vst [vmem:[%s1951_s3 + $0x98] sm:$0xff] %v1285_v19  ;;  %v857_v29 = vadd.f32 %v669_v17, %v457_v21  ;;  %v458_v30 = vmul.f32 %v273_v23, %v58_v18  ;;  %v677_v31 = vrot.slane %v1711_v50, %v1342_v11  ;;  %v281_v33 = vrot.slane %v1699_v36, %v1344_v12 }
  0x43   :  { %v1286_v35 = vpack.c.bf16 %v919_v24, %v918_v20  ;;  %v920_v37 = vmax.f32 %v856_v25, 0.0  ;;  %v459_v39 = vmul.f32 %v277_v26, %v59_v22  ;;  %v285_v41 = vrot.slane %v1699_v36, %v1346_v13  ;;  %v67_v20 = vld [vmem:[%s1950_s0 + $0x1a8] sm:$0xff]  ;;  %v68_v26 = vld [vmem:[%s1950_s0 + $0x1b0] sm:$0xff] }
  0x44   :  { %v921_v43 = vmax.f32 %v857_v29, 0.0  ;;  %v858_v44 = vadd.f32 %v673_v27, %v458_v30  ;;  %v460_v45 = vmul.f32 %v281_v33, %v60_v28  ;;  %v681_v46 = vrot.slane %v1711_v50, %v1344_v12  ;;  %v69_v30 = vld [vmem:[%s1950_s0 + $0x1b8] sm:$0xff] }
  0x45   :  { %1218 = vst [vmem:[%s1951_s3 + $0xa0] sm:$0xff] %v1286_v35  ;;  %v859_v36 = vadd.f32 %v677_v31, %v459_v39  ;;  %v461_v38 = vmul.f32 %v285_v41, %v61_v32  ;;  %v685_v40 = vrot.slane %v1711_v50, %v1346_v13  ;;  %v289_v48 = vrot.slane %v1777_v34, %v1326_v4  ;;  %v64_v50 = vld [vmem:[%s1950_s0 + $0x190] sm:$0xff]  ;;  %v1855_v32 = vld [vmem:[%s1948_s1 + $0x38] sm:$0xff] }
  0x46   :  { %v1287_v55 = vpack.c.bf16 %v921_v43, %v920_v37  ;;  %v922_v56 = vmax.f32 %v858_v44, 0.0  ;;  %v860_v57 = vadd.f32 %v681_v46, %v460_v45  ;;  %v293_v58 = vrot.slane %v1777_v34, %v1328_v5  ;;  %v70_v46 = vld [vmem:[%s1950_s0 + $0x1c0] sm:$0xff] }
  0x47   :  { %v923_v59 = vmax.f32 %v859_v36, 0.0  ;;  %v861_v60 = vadd.f32 %v685_v40, %v461_v38  ;;  %v462_v61 = vmul.f32 %v289_v48, %v62_v47  ;;  %v689_v62 = vrot.slane %v1789_v49, %v1326_v4  ;;  %v1867_v47 = vld [vmem:[%s1949_s2 + $0x38] sm:$0xff]  ;;  %v71_v40 = vld [vmem:[%s1950_s0 + $0x1c8] sm:$0xff] }
  0x48   :  { %1219 = vst [vmem:[%s1951_s3 + $0xa8] sm:$0xff] %v1287_v55  ;;  %v924_v63 = vmax.f32 %v860_v57, 0.0  ;;  %v463_v51 = vmul.f32 %v293_v58, %v63_v42  ;;  %v693_v0 = vrot.slane %v1789_v49, %v1328_v5  ;;  %v297_v1 = vrot.slane %v1777_v34, %v1330_v6 }
  0x49   :  { %v1288_v54 = vpack.c.bf16 %v923_v59, %v922_v56  ;;  %v925_v2 = vmax.f32 %v861_v60, 0.0  ;;  %v862_v53 = vadd.f32 %v689_v62, %v462_v61  ;;  %v301_v8 = vrot.slane %v1777_v34, %v1332_v7 }
  0x4a   :  { %v863_v3 = vadd.f32 %v693_v0, %v463_v51  ;;  %v464_v9 = vmul.f32 %v297_v1, %v64_v50  ;;  %v697_v14 = vrot.slane %v1789_v49, %v1330_v6  ;;  %v701_v15 = vrot.slane %v1789_v49, %v1332_v7  ;;  %v73_v51 = vld [vmem:[%s1950_s0 + $0x1d8] sm:$0xff] }
  0x4b   :  { %1220 = vst [vmem:[%s1951_s3 + $0xb0] sm:$0xff] %v1288_v54  ;;  %v1289_v17 = vpack.c.bf16 %v925_v2, %v924_v63  ;;  %v926_v18 = vmax.f32 %v862_v53, 0.0  ;;  %v465_v19 = vmul.f32 %v301_v8, %v65_v52  ;;  %v305_v21 = vrot.slane %v1777_v34, %v1340_v10 }
  0x4c   :  { %v927_v22 = vmax.f32 %v863_v3, 0.0  ;;  %v864_v23 = vadd.f32 %v697_v14, %v464_v9  ;;  %v309_v24 = vrot.slane %v1777_v34, %v1342_v11  ;;  %v705_v25 = vrot.slane %v1789_v49, %v1340_v10  ;;  %v74_v3 = vld [vmem:[%s1950_s0 + $0x1e0] sm:$0xff] }
  0x4d   :  { %1221 = vst [vmem:[%s1951_s3 + $0xb8] sm:$0xff] %v1289_v17  ;;  %v865_v27 = vadd.f32 %v701_v15, %v465_v19  ;;  %v466_v28 = vmul.f32 %v305_v21, %v66_v16  ;;  %v709_v29 = vrot.slane %v1789_v49, %v1342_v11  ;;  %v313_v31 = vrot.slane %v1777_v34, %v1344_v12  ;;  %v75_v16 = vld [vmem:[%s1950_s0 + $0x1e8] sm:$0xff] }
  0x4e   :  { %v1290_v33 = vpack.c.bf16 %v927_v22, %v926_v18  ;;  %v928_v35 = vmax.f32 %v864_v23, 0.0  ;;  %v467_v37 = vmul.f32 %v309_v24, %v67_v20  ;;  %v317_v39 = vrot.slane %v1777_v34, %v1346_v13  ;;  %v76_v20 = vld [vmem:[%s1950_s0 + $0x1f0] sm:$0xff]  ;;  %v77_v24 = vld [vmem:[%s1950_s0 + $0x1f8] sm:$0xff] }
  0x4f   :  { %v929_v41 = vmax.f32 %v865_v27, 0.0  ;;  %v866_v43 = vadd.f32 %v705_v25, %v466_v28  ;;  %v468_v44 = vmul.f32 %v313_v31, %v68_v26  ;;  %v713_v45 = vrot.slane %v1789_v49, %v1344_v12 }
  0x50   :  { %1222 = vst [vmem:[%s1951_s3 + $0xc0] sm:$0xff] %v1290_v33  ;;  %v867_v34 = vadd.f32 %v709_v29, %v467_v37  ;;  %v469_v36 = vmul.f32 %v317_v39, %v69_v30  ;;  %v717_v38 = vrot.slane %v1789_v49, %v1346_v13  ;;  %v321_v42 = vrot.slane %v1855_v32, %v1326_v4  ;;  %v72_v49 = vld [vmem:[%s1950_s0 + $0x1d0] sm:$0xff] }
  0x51   :  { %v1291_v48 = vpack.c.bf16 %v929_v41, %v928_v35  ;;  %v930_v55 = vmax.f32 %v866_v43, 0.0  ;;  %v868_v56 = vadd.f32 %v713_v45, %v468_v44  ;;  %v325_v57 = vrot.slane %v1855_v32, %v1328_v5 }
  0x52   :  { %v931_v58 = vmax.f32 %v867_v34, 0.0  ;;  %v869_v59 = vadd.f32 %v717_v38, %v469_v36  ;;  %v470_v60 = vmul.f32 %v321_v42, %v70_v46  ;;  %v721_v61 = vrot.slane %v1867_v47, %v1326_v4 }
  0x53   :  { %1223 = vst [vmem:[%s1951_s3 + $0xc8] sm:$0xff] %v1291_v48  ;;  %v932_v62 = vmax.f32 %v868_v56, 0.0  ;;  %v471_v50 = vmul.f32 %v325_v57, %v71_v40  ;;  %v725_v63 = vrot.slane %v1867_v47, %v1328_v5  ;;  %v329_v4 = vrot.slane %v1855_v32, %v1330_v6 }
  0x54   :  { %v1292_v0 = vpack.c.bf16 %v931_v58, %v930_v55  ;;  %v933_v52 = vmax.f32 %v869_v59, 0.0  ;;  %v870_v1 = vadd.f32 %v721_v61, %v470_v60  ;;  %v333_v54 = vrot.slane %v1855_v32, %v1332_v7 }
  0x55   :  { %v871_v2 = vadd.f32 %v725_v63, %v471_v50  ;;  %v472_v53 = vmul.f32 %v329_v4, %v72_v49  ;;  %v729_v8 = vrot.slane %v1867_v47, %v1330_v6  ;;  %v733_v5 = vrot.slane %v1867_v47, %v1332_v7 }
  0x56   :  { %1224 = vst [vmem:[%s1951_s3 + $0xd0] sm:$0xff] %v1292_v0  ;;  %v1293_v9 = vpack.c.bf16 %v933_v52, %v932_v62  ;;  %v934_v14 = vmax.f32 %v870_v1, 0.0  ;;  %v473_v15 = vmul.f32 %v333_v54, %v73_v51  ;;  %v337_v6 = vrot.slane %v1855_v32, %v1340_v10 }
  0x57   :  { %v935_v17 = vmax.f32 %v871_v2, 0.0  ;;  %v872_v7 = vadd.f32 %v729_v8, %v472_v53  ;;  %v341_v18 = vrot.slane %v1855_v32, %v1342_v11  ;;  %v737_v19 = vrot.slane %v1867_v47, %v1340_v10 }
  0x58   :  { %1225 = vst [vmem:[%s1951_s3 + $0xd8] sm:$0xff] %v1293_v9  ;;  %v873_v21 = vadd.f32 %v733_v5, %v473_v15  ;;  %v474_v22 = vmul.f32 %v337_v6, %v74_v3  ;;  %v741_v23 = vrot.slane %v1867_v47, %v1342_v11  ;;  %v345_v10 = vrot.slane %v1855_v32, %v1344_v12 }
  0x59   :  { %v1294_v25 = vpack.c.bf16 %v935_v17, %v934_v14  ;;  %v936_v26 = vmax.f32 %v872_v7, 0.0  ;;  %v475_v27 = vmul.f32 %v341_v18, %v75_v16  ;;  %v349_v28 = vrot.slane %v1855_v32, %v1346_v13 }
  0x5a   :  { %v937_v29 = vmax.f32 %v873_v21, 0.0  ;;  %v874_v30 = vadd.f32 %v737_v19, %v474_v22  ;;  %v476_v31 = vmul.f32 %v345_v10, %v76_v20  ;;  %v745_v33 = vrot.slane %v1867_v47, %v1344_v12 }
  0x5b   :  { %1226 = vst [vmem:[%s1951_s3 + $0xe0] sm:$0xff] %v1294_v25  ;;  %v875_v11 = vadd.f32 %v741_v23, %v475_v27  ;;  %v477_v35 = vmul.f32 %v349_v28, %v77_v24  ;;  %v749_v37 = vrot.slane %v1867_v47, %v1346_v13 }
  0x5c   :  { %v1295_v39 = vpack.c.bf16 %v937_v29, %v936_v26  ;;  %v938_v41 = vmax.f32 %v874_v30, 0.0  ;;  %v876_v43 = vadd.f32 %v745_v33, %v476_v31 }
  0x5d   :  { %v939_v44 = vmax.f32 %v875_v11, 0.0  ;;  %v877_v32 = vadd.f32 %v749_v37, %v477_v35 }
  0x5e   :  { %1227 = vst [vmem:[%s1951_s3 + $0xe8] sm:$0xff] %v1295_v39  ;;  %v940_v45 = vmax.f32 %v876_v43, 0.0 }
  0x5f   :  { %v1296_v12 = vpack.c.bf16 %v939_v44, %v938_v41  ;;  %v941_v46 = vmax.f32 %v877_v32, 0.0 }
  0x61   :  { %1228 = vst [vmem:[%s1951_s3 + $0xf0] sm:$0xff] %v1296_v12  ;;  %v1297_v34 = vpack.c.bf16 %v941_v46, %v940_v45 }
  0x63   :  { %1229 = vst [vmem:[%s1951_s3 + $0xf8] sm:$0xff] %v1297_v34 }

// kernel: generator_forward.12
= control target key start
LH: loop header
LB: loop body
LE: loop exit
PB: predicated region body
PF: predicated region fallthrough
CT: control target
= control target key end

     0   :  { %s484_s12 = smov 0   ;;  %s486_s13 = smov 0   ;;  %s527_s0 = inlined_call_operand.vmem [shape: f32[4,32,256], index: 0, kind: input, shape index: {}]   ;;  %s528_s1 = inlined_call_operand.vmem [shape: f32[1,1,256], index: 1, kind: input, shape index: {}]   ;;  %s529_s2 = inlined_call_operand.vmem [shape: f32[1,1,256], index: 2, kind: input, shape index: {}]   ;;  %s530_s3 = inlined_call_operand.vmem [shape: bf16[4,32,256], index: 3, kind: output, shape index: {}]  }
   0x1   :  { %s488_s14 = smov 0  }
   0x2 LB: > { %s25_s15 = sadd.s32 1, %s458_s13  ;;  %p399_p0 = scmp.ge.s32.totalorder %s462_s14, 1  ;;  %s462_s14 = sphi %s488_s14, %s13_s14   ;;  %s458_s13 = sphi %s486_s13, %s532_s13   ;;  %s454_s12 = sphi %s484_s12, %s531_s12  }
   0x3   : > { %p27_p1 = scmp.ge.s32.totalorder %s25_s15, 4  ;;  %p159_p2 = scmp.lt.s32.totalorder %s462_s14, 5 }
   0x5   : > { %s534_s15 = smov (%p27_p1, %s25_s15), 0  ;;  %p160_p3 = pnand %p399_p0, %p159_p2 }
   0x6   : > { %p194_p4 = scmp.lt.s32.totalorder (!%p160_p3), %s454_s12, 3  ;;  %v225_v0 = vlaneseq (!%p160_p3)  ;;  %v223_v2 = vld [vmem:[%s528_s1] sm:$0x3] (!%p160_p3) }
   0x7   : > { %163 = sbr.rel (%p160_p3) target bundleno = 29 (0x1d), region = 32  ;;  %v243_v3 = vld [vmem:[%s529_s2] sm:$0x3] (!%p160_p3) }
   0x8   : > { %v226_v1 = vshrl.u32 (!%p160_p3), %v225_v0, 7 }
   0xa   : > { %v227_v4 = vsub.s32 (!%p160_p3), 0, %v226_v1  ;;  %v231_v5 = vsub.s32 (!%p160_p3), 1, %v226_v1 }
   0xc   : > { %v228_v8 = vrot.slane (!%p160_p3), %v223_v2, %v227_v4  ;;  %v232_v9 = vrot.slane (!%p160_p3), %v223_v2, %v231_v5  ;;  %v248_v10 = vrot.slane (!%p160_p3), %v243_v3, %v227_v4  ;;  %v252_v11 = vrot.slane (!%p160_p3), %v243_v3, %v231_v5 }
   0xe   : > { %s536_s12 = smov (!%p194_p4, %s454_s12), 3 }
   0xf   : > { %s410_s20 = sshll.u32 %s536_s12, 6  ;;  %s411_s24 = sshll.u32 %s536_s12, 5 }
  0x10   : > { %s202_s23 = scalar_lea.vmem %s527_s0, %s410_s20  ;;  %s213_s27 = scalar_lea.vmem %s530_s3, %s411_s24 }
  0x11   : > { %v215_v6 = vld [vmem:[%s202_s23] sm:$0xff]  ;;  %v216_v7 = vld [vmem:[%s202_s23 + $0x8] sm:$0xff]  ;;  %v217_v12 = vld [vmem:[%s202_s23 + $0x10] sm:$0xff] }
  0x12   : > { %v218_v13 = vld [vmem:[%s202_s23 + $0x18] sm:$0xff]  ;;  %v219_v14 = vld [vmem:[%s202_s23 + $0x20] sm:$0xff]  ;;  %v220_v15 = vld [vmem:[%s202_s23 + $0x28] sm:$0xff]  ;;  %v235_v16 = vmul.f32 %v228_v8, %v215_v6  ;;  %v236_v17 = vmul.f32 %v232_v9, %v216_v7  ;;  %v237_v18 = vmul.f32 %v228_v8, %v217_v12 }
  0x13   : > { %v238_v19 = vmul.f32 %v232_v9, %v218_v13  ;;  %v221_v20 = vld [vmem:[%s202_s23 + $0x30] sm:$0xff]  ;;  %v222_v21 = vld [vmem:[%s202_s23 + $0x38] sm:$0xff]  ;;  %v239_v22 = vmul.f32 %v228_v8, %v219_v14  ;;  %v240_v23 = vmul.f32 %v232_v9, %v220_v15 }
  0x14   : > { %v241_v24 = vmul.f32 %v228_v8, %v221_v20  ;;  %v242_v25 = vmul.f32 %v232_v9, %v222_v21  ;;  %v255_v26 = vadd.f32 %v248_v10, %v235_v16  ;;  %v256_v27 = vadd.f32 %v252_v11, %v236_v17 }
  0x15   : > { %v257_v28 = vadd.f32 %v248_v10, %v237_v18  ;;  %v258_v29 = vadd.f32 %v252_v11, %v238_v19  ;;  %v259_v30 = vadd.f32 %v248_v10, %v239_v22  ;;  %v260_v31 = vadd.f32 %v252_v11, %v240_v23 }
  0x16   : > { %v261_v32 = vadd.f32 %v248_v10, %v241_v24  ;;  %v262_v33 = vadd.f32 %v252_v11, %v242_v25  ;;  %v263_v34 = vmax.f32 %v255_v26, 0.0  ;;  %v264_v35 = vmax.f32 %v256_v27, 0.0 }
  0x17   : > { %v265_v36 = vmax.f32 %v257_v28, 0.0  ;;  %v266_v37 = vmax.f32 %v258_v29, 0.0  ;;  %v267_v38 = vmax.f32 %v259_v30, 0.0  ;;  %v268_v39 = vmax.f32 %v260_v31, 0.0 }
  0x18   : > { %v269_v40 = vmax.f32 %v261_v32, 0.0  ;;  %v270_v41 = vmax.f32 %v262_v33, 0.0  ;;  %v412_v42 = vpack.c.bf16 %v264_v35, %v263_v34 }
  0x19   : > { %v413_v43 = vpack.c.bf16 %v266_v37, %v265_v36  ;;  %v414_v44 = vpack.c.bf16 %v268_v39, %v267_v38 }
  0x1a   : > { %v415_v45 = vpack.c.bf16 %v270_v41, %v269_v40  ;;  %295 = vst [vmem:[%s213_s27] sm:$0xff] %v412_v42 }
  0x1b   : > { %296 = vst [vmem:[%s213_s27 + $0x8] sm:$0xff] %v413_v43  ;;  %297 = vst [vmem:[%s213_s27 + $0x10] sm:$0xff] %v414_v44 }
  0x1c   : > { %298 = vst [vmem:[%s213_s27 + $0x18] sm:$0xff] %v415_v45 }
  0x1d PF: > { %s13_s14 = sadd.s32 1, %s462_s14   ;;  %s531_s12 = smov %s458_s13 }
  0x1e   : > { %p10_p5 = scmp.ge.s32.totalorder %s13_s14, 6   ;;  %s532_s13 = smov %s534_s15 }
  0x20   :  { %12 = sbr.rel (!%p10_p5) target bundleno = 2 (0x2), region = 62 }

// kernel: generator_forward.11
= control target key start
LH: loop header
LB: loop body
LE: loop exit
PB: predicated region body
PF: predicated region fallthrough
CT: control target
= control target key end

     0   :  { %s1370_s9 = smov 0   ;;  %s1372_s10 = smov 0   ;;  %s1551_s0 = inlined_call_operand.vmem [shape: bf16[4,32,2048], index: 0, kind: input, shape index: {}]   ;;  %s1552_s1 = inlined_call_operand.vmem [shape: bf16[4,2048,256], index: 1, kind: input, shape index: {}]   ;;  %s1553_s2 = inlined_call_operand.vmem [shape: f32[4,32,256], index: 2, kind: output, shape index: {}]  }
   0x1   :  { %s1374_s11 = smov 0   ;;  %s1376_s12 = smov 0  }
   0x2   :  { %s1378_s13 = smov 0   ;;  %s1380_s14 = smov 0  }
   0x3   :  { %s1382_s15 = smov 0  }
   0x4 LB: > { %s27_s16 = sadd.s32 1, %s1344_s13  ;;  %s38_s17 = sadd.s32 1, %s1348_s14  ;;  %s1352_s15 = sphi %s1382_s15, %s12_s15   ;;  %s1348_s14 = sphi %s1380_s14, %s1559_s14   ;;  %s1344_s13 = sphi %s1378_s13, %s1558_s13   ;;  %s1340_s12 = sphi %s1376_s12, %s1557_s12   ;;  %s1336_s11 = sphi %s1374_s11, %s1556_s11   ;;  %s1332_s10 = sphi %s1372_s10, %s1555_s10   ;;  %s1328_s9 = sphi %s1370_s9, %s1554_s9  }
   0x5   : > { %p28_p0 = scmp.ge.s32.totalorder %s27_s16, 4  ;;  %p56_p1 = scmp.ne.s32.totalorder %s1332_s10, %s1328_s9 }
   0x6   : > { %p57_p2 = scmp.eq.s32.totalorder %s1352_s15, 0  ;;  %s49_s21 = sadd.s32 1, %s1332_s10 }
   0x7   : > { %s1561_s16 = smov (%p28_p0, %s27_s16), 0  ;;  %s1563_s17 = smov (!%p28_p0, %s38_s17), %s1348_s14 }
   0x8   : > { %p58_p3 = por %p57_p2, %p56_p1  ;;  %p40_p4 = scmp.ge.s32.totalorder %s1563_s17, 4 }
   0x9   : > { %s45_s18 = ssub.s32 %s1344_s13, %s1561_s16  ;;  %p1035_p6 = scmp.ge.s32.totalorder %s1352_s15, 16 }
   0xa   : > { %s1565_s17 = smov (%p40_p4, %s1563_s17), 0 }
   0xb   : > { %s42_s19 = ssub.s32 %s1348_s14, %s1565_s17  ;;  %142 = sbr.rel (%p1035_p6) target bundleno = 29 (0x1d), region = 16 }
   0xc   : > { %s46_s20 = sor.u32 %s45_s18, %s42_s19 }
   0xd   : > { %p47_p5 = scmp.eq.s32.totalorder %s46_s20, 0 }
   0xf   : > { %s1421_s22 = scalar_select %p47_p5, %s1332_s10, %s49_s21  }
  0x12   : > { %145 = sbr.rel (!%p58_p3) target bundleno = 29 (0x1d), region = 20  ;;  %s147_s23 = sand.u32 (%p58_p3), 1, %s1332_s10  }
  0x13   : > { %s1037_s24 = sshll.u32 (%p58_p3), %s1344_s13, 2  ;;  %s1036_s25 = sshll.u32 (%p58_p3), %s147_s23, 6 }
  0x14   : > { %s1038_s26 = sshll.u32 (%p58_p3), %s1348_s14, 6  ;;  %s149_s4 = scalar_lea.vmem (%p58_p3), [#allocation3], %s1036_s25 }
  0x15   : > { %s155_s27 = sadd.s32 (%p58_p3), %s1038_s26, %s1037_s24 }
  0x16   : > { %s1039_s28 = sshll.u32 (%p58_p3), %s155_s27, 2 }
  0x17   : > { %s157_s3 = scalar_lea.vmem (%p58_p3), %s1551_s0, %s1039_s28 }
  0x18   : > { %v170_v0 = vld [vmem:[%s157_s3] sm:$0xff] (%p58_p3)  ;;  %v172_v1 = vld [vmem:[%s157_s3 + $0x8] sm:$0xff] (%p58_p3) }
  0x19   : > { %v174_v2 = vld [vmem:[%s157_s3 + $0x40] sm:$0xff]  ;;  %171 = vst [vmem:[%s149_s4] sm:$0xff] %v170_v0  ;;  %173 = vst [vmem:[%s149_s4 + $0x8] sm:$0xff] %v172_v1  ;;  %v176_v3 = vld [vmem:[%s157_s3 + $0x48] sm:$0xff] }
  0x1a   : > { %175 = vst [vmem:[%s149_s4 + $0x10] sm:$0xff] %v174_v2  ;;  %v178_v4 = vld [vmem:[%s157_s3 + $0x80] sm:$0xff]  ;;  %v180_v5 = vld [vmem:[%s157_s3 + $0x88] sm:$0xff]  ;;  %177 = vst [vmem:[%s149_s4 + $0x18] sm:$0xff] %v176_v3 }
  0x1b   : > { %179 = vst [vmem:[%s149_s4 + $0x20] sm:$0xff] %v178_v4  ;;  %181 = vst [vmem:[%s149_s4 + $0x28] sm:$0xff] %v180_v5  ;;  %v182_v6 = vld [vmem:[%s157_s3 + $0xc0] sm:$0xff]  ;;  %v184_v7 = vld [vmem:[%s157_s3 + $0xc8] sm:$0xff] }
  0x1c   : > { %183 = vst [vmem:[%s149_s4 + $0x30] sm:$0xff] %v182_v6  ;;  %185 = vst [vmem:[%s149_s4 + $0x38] sm:$0xff] %v184_v7 }
  0x1d PF: > { %p1040_p7 = scmp.ge.s32.totalorder %s1352_s15, 1  ;;  %p209_p8 = scmp.lt.s32.totalorder %s1352_s15, 17 }
  0x1f   : > { %p210_p9 = pnand %p1040_p7, %p209_p8 }
  0x20   : > { %s216_s5 = sand.u32 (!%p210_p9), 1, %s1328_s9   ;;  %s1042_s6 = sshll.u32 (!%p210_p9), %s1336_s11, 6 }
  0x21   : > { %213 = sbr.rel (%p210_p9) target bundleno = 352 (0x160), region = 47  ;;  %s1041_s7 = sshll.u32 (!%p210_p9), %s216_s5, 6 }
  0x22   : > { %p264_p10 = scmp.lt.s32.totalorder (!%p210_p9), %s1340_s12, 3  ;;  %p266_p11 = scmp.lt.s32.totalorder (!%p210_p9), %s1042_s6, 255 }
  0x23   : > { %s1446_s28 = scalar_lea.vmem (!%p210_p9), [#allocation3], %s1041_s7  ;;  %p1048_p12 = scmp.ne.s32.totalorder (!%p210_p9), %s1336_s11, 0 }
  0x28   : > { %s1567_s12 = smov (!%p264_p10, %s1340_s12), 3  ;;  %s1569_s6 = smov (!%p266_p11, %s1042_s6), 255 }
  0x29   : > { %s1044_s8 = sshll.u32 %s1567_s12, 9  ;;  %s1124_s18 = sshll.u32 %s1567_s12, 6  ;;  %v1354_v8 = vmov (!%p1048_p12), 0.0  }
  0x2a   : > { %s1043_s19 = sshll.u32 %s1569_s6, 1  ;;  %s1439_s23 = scalar_lea.vmem %s1553_s2, %s1124_s18  ;;  %298 = vst [vmem:[#allocation2] sm:$0xff] (!%p1048_p12), %v1354_v8  ;;  %299 = vst [vmem:[#allocation2 + $0x8] sm:$0xff] (!%p1048_p12), %v1354_v8 }
  0x2b   : > { %s273_s24 = sadd.s32 %s1044_s8, %s1043_s19  ;;  %297 = sbr.rel (%p1048_p12) target bundleno = 50 (0x32), region = 55  ;;  %300 = vst [vmem:[#allocation2 + $0x10] sm:$0xff] (!%p1048_p12), %v1354_v8  ;;  %301 = vst [vmem:[#allocation2 + $0x18] sm:$0xff] (!%p1048_p12), %v1354_v8 }
  0x2c   : > { %s1045_s25 = sshll.u32 %s273_s24, 2  ;;  %302 = vst [vmem:[#allocation2 + $0x20] sm:$0xff] (!%p1048_p12), %v1354_v8  ;;  %303 = vst [vmem:[#allocation2 + $0x28] sm:$0xff] (!%p1048_p12), %v1354_v8 }
  0x2d   : > { %s1444_s9 = scalar_lea.vmem %s1552_s1, %s1045_s25  ;;  %304 = vst [vmem:[#allocation2 + $0x30] sm:$0xff] (!%p1048_p12), %v1354_v8  ;;  %305 = vst [vmem:[#allocation2 + $0x38] sm:$0xff] (!%p1048_p12), %v1354_v8 }
  0x32 PF: > { %v1190_v9 = vld [vmem:[%s1444_s9 + $0x4] ss:$8 sps:$4 sm:$0xff]   ;;  %v1194_v11 = vld [vmem:[%s1444_s9] ss:$8 sps:$4 sm:$0xff]   ;;  %v1196_v13 = vld [vmem:[%s1444_s9 + $0x14] ss:$8 sps:$4 sm:$0xff]  }
  0x33   : > { %v1192_v10 = vld [vmem:[%s1444_s9 + $0x104] ss:$8 sps:$4 sm:$0xff]   ;;  %746 = vmatprep.subr.bf16.mxu1 %v1190_v9  ;;  %v1195_v12 = vld [vmem:[%s1444_s9 + $0x100] ss:$8 sps:$4 sm:$0xff]   ;;  %v1198_v14 = vld [vmem:[%s1444_s9 + $0x114] ss:$8 sps:$4 sm:$0xff]  }
  0x34   : > { %799 = vmatprep.subr.bf16.mxu0 %v1192_v10  ;;  %747 = vmatpush1.bf16.msra.mxu1 %v1194_v11  ;;  %v1200_v15 = vld [vmem:[%s1444_s9 + $0x10] ss:$8 sps:$4 sm:$0xff]   ;;  %v1202_v17 = vld [vmem:[%s1444_s9 + $0x24] ss:$8 sps:$4 sm:$0xff]   ;;  %v1206_v19 = vld [vmem:[%s1444_s9 + $0x20] ss:$8 sps:$4 sm:$0xff]  }
  0x35   : > { %800 = vmatpush1.bf16.msra.mxu0 %v1195_v12  ;;  %748 = vmatprep.subr.bf16.mxu1 %v1196_v13  ;;  %v1201_v16 = vld [vmem:[%s1444_s9 + $0x110] ss:$8 sps:$4 sm:$0xff]   ;;  %v1204_v18 = vld [vmem:[%s1444_s9 + $0x124] ss:$8 sps:$4 sm:$0xff]   ;;  %v1207_v20 = vld [vmem:[%s1444_s9 + $0x120] ss:$8 sps:$4 sm:$0xff]  }
  0x36   : > { %801 = vmatprep.subr.bf16.mxu0 %v1198_v14  ;;  %v1208_v21 = vld [vmem:[%s1444_s9 + $0x34] ss:$8 sps:$4 sm:$0xff]   ;;  %v1212_v23 = vld [vmem:[%s1444_s9 + $0x30] ss:$8 sps:$4 sm:$0xff]   ;;  %v1214_v25 = vld [vmem:[%s1444_s9 + $0x44] ss:$8 sps:$4 sm:$0xff]  }
  0x37   : > { %v1210_v22 = vld [vmem:[%s1444_s9 + $0x134] ss:$8 sps:$4 sm:$0xff]   ;;  %v1213_v24 = vld [vmem:[%s1444_s9 + $0x130] ss:$8 sps:$4 sm:$0xff]   ;;  %v1216_v26 = vld [vmem:[%s1444_s9 + $0x144] ss:$8 sps:$4 sm:$0xff]  }
  0x38   : > { %749 = vmatpush1.bf16.msra.mxu1 %v1200_v15  ;;  %v1218_v27 = vld [vmem:[%s1444_s9 + $0x40] ss:$8 sps:$4 sm:$0xff]   ;;  %v1220_v29 = vld [vmem:[%s1444_s9 + $0x54] ss:$8 sps:$4 sm:$0xff]   ;;  %v1224_v31 = vld [vmem:[%s1444_s9 + $0x50] ss:$8 sps:$4 sm:$0xff]  }
  0x39   : > { %802 = vmatpush1.bf16.msra.mxu0 %v1201_v16  ;;  %750 = vmatprep.subr.bf16.mxu1 %v1202_v17  ;;  %v1219_v28 = vld [vmem:[%s1444_s9 + $0x140] ss:$8 sps:$4 sm:$0xff]   ;;  %v1222_v30 = vld [vmem:[%s1444_s9 + $0x154] ss:$8 sps:$4 sm:$0xff]   ;;  %v1225_v32 = vld [vmem:[%s1444_s9 + $0x150] ss:$8 sps:$4 sm:$0xff]  }
  0x3a   : > { %803 = vmatprep.subr.bf16.mxu0 %v1204_v18  ;;  %v1226_v33 = vld [vmem:[%s1444_s9 + $0x64] ss:$8 sps:$4 sm:$0xff]   ;;  %v1230_v35 = vld [vmem:[%s1444_s9 + $0x60] ss:$8 sps:$4 sm:$0xff]   ;;  %v1232_v37 = vld [vmem:[%s1444_s9 + $0x74] ss:$8 sps:$4 sm:$0xff]  }
  0x3b   : > { %v1228_v34 = vld [vmem:[%s1444_s9 + $0x164] ss:$8 sps:$4 sm:$0xff]   ;;  %v1231_v36 = vld [vmem:[%s1444_s9 + $0x160] ss:$8 sps:$4 sm:$0xff]   ;;  %v1234_v38 = vld [vmem:[%s1444_s9 + $0x174] ss:$8 sps:$4 sm:$0xff]  }
  0x3c   : > { %751 = vmatpush1.bf16.msra.mxu1 %v1206_v19  ;;  %v1236_v39 = vld [vmem:[%s1444_s9 + $0x70] ss:$8 sps:$4 sm:$0xff]   ;;  %v1238_v41 = vld [vmem:[%s1444_s9 + $0x84] ss:$8 sps:$4 sm:$0xff]   ;;  %v1242_v43 = vld [vmem:[%s1444_s9 + $0x80] ss:$8 sps:$4 sm:$0xff]  }
  0x3d   : > { %804 = vmatpush1.bf16.msra.mxu0 %v1207_v20  ;;  %752 = vmatprep.subr.bf16.mxu1 %v1208_v21  ;;  %v1237_v40 = vld [vmem:[%s1444_s9 + $0x170] ss:$8 sps:$4 sm:$0xff]   ;;  %v1240_v42 = vld [vmem:[%s1444_s9 + $0x184] ss:$8 sps:$4 sm:$0xff]   ;;  %v1243_v44 = vld [vmem:[%s1444_s9 + $0x180] ss:$8 sps:$4 sm:$0xff]  }
  0x3e   : > { %805 = vmatprep.subr.bf16.mxu0 %v1210_v22  ;;  %v1244_v45 = vld [vmem:[%s1444_s9 + $0x94] ss:$8 sps:$4 sm:$0xff]   ;;  %v1248_v47 = vld [vmem:[%s1444_s9 + $0x90] ss:$8 sps:$4 sm:$0xff]   ;;  %v1250_v49 = vld [vmem:[%s1444_s9 + $0xa4] ss:$8 sps:$4 sm:$0xff]  }
  0x3f   : > { %v1246_v46 = vld [vmem:[%s1444_s9 + $0x194] ss:$8 sps:$4 sm:$0xff]   ;;  %v1249_v48 = vld [vmem:[%s1444_s9 + $0x190] ss:$8 sps:$4 sm:$0xff]   ;;  %v1252_v50 = vld [vmem:[%s1444_s9 + $0x1a4] ss:$8 sps:$4 sm:$0xff]  }
  0x40   : > { %753 = vmatpush1.bf16.msra.mxu1 %v1212_v23  ;;  %v1254_v51 = vld [vmem:[%s1444_s9 + $0xa0] ss:$8 sps:$4 sm:$0xff]   ;;  %v1256_v53 = vld [vmem:[%s1444_s9 + $0xb4] ss:$8 sps:$4 sm:$0xff]   ;;  %v1260_v55 = vld [vmem:[%s1444_s9 + $0xb0] ss:$8 sps:$4 sm:$0xff]  }
  0x41   : > { %806 = vmatpush1.bf16.msra.mxu0 %v1213_v24  ;;  %754 = vmatprep.subr.bf16.mxu1 %v1214_v25  ;;  %v1255_v52 = vld [vmem:[%s1444_s9 + $0x1a0] ss:$8 sps:$4 sm:$0xff]   ;;  %v1258_v54 = vld [vmem:[%s1444_s9 + $0x1b4] ss:$8 sps:$4 sm:$0xff]   ;;  %v1261_v56 = vld [vmem:[%s1444_s9 + $0x1b0] ss:$8 sps:$4 sm:$0xff]  }
  0x42   : > { %807 = vmatprep.subr.bf16.mxu0 %v1216_v26  ;;  %v1262_v57 = vld [vmem:[%s1444_s9 + $0xc4] ss:$8 sps:$4 sm:$0xff]   ;;  %v1266_v61 = vld [vmem:[%s1444_s9 + $0xc0] ss:$8 sps:$4 sm:$0xff]   ;;  %v1268_v63 = vld [vmem:[%s1444_s9 + $0xd4] ss:$8 sps:$4 sm:$0xff]  }
  0x43   : > { %v1288_v58 = vld [vmem:[%s1446_s28 + $0x4] ss:$16 sps:$4 sm:$0xff]   ;;  %v1291_v60 = vld [vmem:[%s1446_s28 + $0xc] ss:$16 sps:$4 sm:$0xff]   ;;  %v1267_v62 = vld [vmem:[%s1444_s9 + $0x1c0] ss:$8 sps:$4 sm:$0xff]  }
  0x44   : > { %755 = vmatpush1.bf16.msra.mxu1 %v1218_v27  ;;  %v1264_v59 = vld [vmem:[%s1444_s9 + $0x1c4] ss:$8 sps:$4 sm:$0xff]   ;;  %778 = vmatprep.mubr.bf16.mxu1 %v1288_v58  ;;  %v1270_v0 = vld [vmem:[%s1444_s9 + $0x1d4] ss:$8 sps:$4 sm:$0xff]   ;;  %v1272_v1 = vld [vmem:[%s1444_s9 + $0xd0] ss:$8 sps:$4 sm:$0xff]  }
  0x45   : > { %808 = vmatpush1.bf16.msra.mxu0 %v1219_v28  ;;  %756 = vmatprep.subr.bf16.mxu1 %v1220_v29  ;;  %v1273_v2 = vld [vmem:[%s1444_s9 + $0x1d0] ss:$8 sps:$4 sm:$0xff]   ;;  %v1274_v3 = vld [vmem:[%s1444_s9 + $0xe4] ss:$8 sps:$4 sm:$0xff]   ;;  %v1278_v5 = vld [vmem:[%s1444_s9 + $0xe0] ss:$8 sps:$4 sm:$0xff]  }
  0x46   : > { %809 = vmatprep.subr.bf16.mxu0 %v1222_v30  ;;  %831 = vmatprep.mubr.bf16.mxu0 %v1291_v60  ;;  %v1276_v4 = vld [vmem:[%s1444_s9 + $0x1e4] ss:$8 sps:$4 sm:$0xff]   ;;  %v1279_v6 = vld [vmem:[%s1444_s9 + $0x1e0] ss:$8 sps:$4 sm:$0xff]   ;;  %v1280_v7 = vld [vmem:[%s1444_s9 + $0xf4] ss:$8 sps:$4 sm:$0xff]  }
  0x47   : > { %v1282_v8 = vld [vmem:[%s1444_s9 + $0x1f4] ss:$8 sps:$4 sm:$0xff]   ;;  %v1284_v9 = vld [vmem:[%s1444_s9 + $0xf0] ss:$8 sps:$4 sm:$0xff]   ;;  %v306_v18 = vld [vmem:[#allocation2] sm:$0xff]  ;;  %p1121_p13 = scmp.ne.s32.totalorder %s1336_s11, 3 }
  0x48   : > { %757 = vmatpush1.bf16.msra.mxu1 %v1224_v31  ;;  %v1285_v10 = vld [vmem:[%s1444_s9 + $0x1f0] ss:$8 sps:$4 sm:$0xff]   ;;  %v1292_v13 = vld [vmem:[%s1446_s28 + $0x24] ss:$16 sps:$4 sm:$0xff]   ;;  %v1294_v14 = vld [vmem:[%s1446_s28 + $0x2c] ss:$16 sps:$4 sm:$0xff]  }
  0x49   : > { %810 = vmatpush1.bf16.msra.mxu0 %v1225_v32  ;;  %758 = vmatprep.subr.bf16.mxu1 %v1226_v33  ;;  %v1286_v11 = vld [vmem:[%s1446_s28] ss:$16 sps:$4 sm:$0xff]   ;;  %v1289_v12 = vld [vmem:[%s1446_s28 + $0x8] ss:$16 sps:$4 sm:$0xff]  }
  0x4a   : > { %811 = vmatprep.subr.bf16.mxu0 %v1228_v34  ;;  %v1296_v15 = vld [vmem:[%s1446_s28 + $0x20] ss:$16 sps:$4 sm:$0xff]   ;;  %v1297_v16 = vld [vmem:[%s1446_s28 + $0x28] ss:$16 sps:$4 sm:$0xff]  }
  0x4b   : > { %v307_v22 = vld [vmem:[#allocation2 + $0x8] sm:$0xff]  ;;  %v308_v26 = vld [vmem:[#allocation2 + $0x10] sm:$0xff]  ;;  %v309_v31 = vld [vmem:[#allocation2 + $0x18] sm:$0xff] }
  0x4c   : > { %759 = vmatpush1.bf16.msra.mxu1 %v1230_v35 }
  0x4d   : > { %812 = vmatpush1.bf16.msra.mxu0 %v1231_v36  ;;  %760 = vmatprep.subr.bf16.mxu1 %v1232_v37 }
  0x4e   : > { %813 = vmatprep.subr.bf16.mxu0 %v1234_v38  ;;  %v310_v38 = vld [vmem:[#allocation2 + $0x20] sm:$0xff] }
  0x50   : > { %761 = vmatpush1.bf16.msra.mxu1 %v1236_v39 }
  0x51   : > { %814 = vmatpush1.bf16.msra.mxu0 %v1237_v40  ;;  %762 = vmatprep.subr.bf16.mxu1 %v1238_v41 }
  0x52   : > { %815 = vmatprep.subr.bf16.mxu0 %v1240_v42  ;;  %v311_v42 = vld [vmem:[#allocation2 + $0x28] sm:$0xff] }
  0x54   : > { %763 = vmatpush1.bf16.msra.mxu1 %v1242_v43 }
  0x55   : > { %816 = vmatpush1.bf16.msra.mxu0 %v1243_v44  ;;  %764 = vmatprep.subr.bf16.mxu1 %v1244_v45 }
  0x56   : > { %817 = vmatprep.subr.bf16.mxu0 %v1246_v46  ;;  %v312_v46 = vld [vmem:[#allocation2 + $0x30] sm:$0xff] }
  0x58   : > { %765 = vmatpush1.bf16.msra.mxu1 %v1248_v47 }
  0x59   : > { %818 = vmatpush1.bf16.msra.mxu0 %v1249_v48  ;;  %766 = vmatprep.subr.bf16.mxu1 %v1250_v49 }
  0x5a   : > { %819 = vmatprep.subr.bf16.mxu0 %v1252_v50 }
  0x5c   : > { %767 = vmatpush1.bf16.msra.mxu1 %v1254_v51  ;;  %v313_v51 = vld [vmem:[#allocation2 + $0x38] sm:$0xff] }
  0x5d   : > { %820 = vmatpush1.bf16.msra.mxu0 %v1255_v52  ;;  %768 = vmatprep.subr.bf16.mxu1 %v1256_v53 }
  0x5e   : > { %821 = vmatprep.subr.bf16.mxu0 %v1258_v54 }
  0x60   : > { %769 = vmatpush1.bf16.msra.mxu1 %v1260_v55 }
  0x61   : > { %822 = vmatpush1.bf16.msra.mxu0 %v1261_v56  ;;  %770 = vmatprep.subr.bf16.mxu1 %v1262_v57 }
  0x62   : > { %823 = vmatprep.subr.bf16.mxu0 %v1264_v59 }
  0x64   : > { %771 = vmatpush1.bf16.msra.mxu1 %v1266_v61 }
  0x65   : > { %824 = vmatpush1.bf16.msra.mxu0 %v1267_v62  ;;  %772 = vmatprep.subr.bf16.mxu1 %v1268_v63 }
  0x66   : > { %825 = vmatprep.subr.bf16.mxu0 %v1270_v0 }
  0x68   : > { %773 = vmatpush1.bf16.msra.mxu1 %v1272_v1 }
  0x69   : > { %826 = vmatpush1.bf16.msra.mxu0 %v1273_v2  ;;  %774 = vmatprep.subr.bf16.mxu1 %v1274_v3 }
  0x6a   : > { %827 = vmatprep.subr.bf16.mxu0 %v1276_v4 }
  0x6c   : > { %775 = vmatpush1.bf16.msra.mxu1 %v1278_v5 }
  0x6d   : > { %828 = vmatpush1.bf16.msra.mxu0 %v1279_v6  ;;  %776 = vmatprep.subr.bf16.mxu1 %v1280_v7 }
  0x6e   : > { %829 = vmatprep.subr.bf16.mxu0 %v1282_v8 }
  0x70   : > { %777 = vmatpush1.bf16.msra.mxu1 %v1284_v9 }
  0x71   : > { %830 = vmatpush1.bf16.msra.mxu0 %v1285_v10 }
  0x73   : > { %779 = vmatmul.mubr.bf16.vlgmr.msra.gmra.mrb[0].mxu1 %v1286_v11 }
  0x74   : > { %832 = vmatmul.mubr.bf16.vlgmr.msra.gmra.mrb[0].mxu0 %v1289_v12  ;;  %788 = vmatprep.mubr.bf16.mxu1 %v1292_v13 }
  0x75   : > { %841 = vmatprep.mubr.bf16.mxu0 %v1294_v14 }
  0x7b   : > { %789 = vmatmul.mubr.bf16.gmra.mrb[4].mxu1 %v1296_v15 }
  0x7c   : > { %842 = vmatmul.mubr.bf16.gmra.mrb[4].mxu0 %v1297_v16 }
 0x146   : > { %v780_v17 = vpop.f32.mrb[0].mxu1 }
 0x147   : > { %v833_v19 = vpop.f32.mrb[0].mxu0  ;;  %v782_v21 = vpop.f32.mrb[1].mxu1 }
 0x148   : > { %v834_v20 = vadd.f32 %v833_v19, %v780_v17  ;;  %v835_v23 = vpop.f32.mrb[1].mxu0  ;;  %v784_v25 = vpop.f32.mrb[2].mxu1 }
 0x149   : > { %v836_v24 = vadd.f32 %v835_v23, %v782_v21  ;;  %v837_v27 = vpop.f32.mrb[2].mxu0  ;;  %v786_v30 = vpop.f32.mrb[3].mxu1 }
 0x14a   : > { %v852_v28 = vadd.f32 %v834_v20, %v306_v18  ;;  %v838_v29 = vadd.f32 %v837_v27, %v784_v25  ;;  %v839_v32 = vpop.f32.mrb[3].mxu0 }
 0x14b   : > { %v853_v33 = vadd.f32 %v836_v24, %v307_v22  ;;  %v840_v34 = vadd.f32 %v839_v32, %v786_v30 }
 0x14c   : > { %860 = vst [vmem:[#allocation2] sm:$0xff] %v852_v28  ;;  %v854_v35 = vadd.f32 %v838_v29, %v308_v26 }
 0x14d   : > { %861 = vst [vmem:[#allocation2 + $0x8] sm:$0xff] %v853_v33  ;;  %v855_v36 = vadd.f32 %v840_v34, %v309_v31 }
 0x14e   : > { %862 = vst [vmem:[#allocation2 + $0x10] sm:$0xff] %v854_v35  ;;  %v790_v37 = vpop.f32.mrb[4].mxu1 }
 0x14f   : > { %863 = vst [vmem:[#allocation2 + $0x18] sm:$0xff] %v855_v36  ;;  %v843_v39 = vpop.f32.mrb[4].mxu0  ;;  %v792_v41 = vpop.f32.mrb[5].mxu1 }
 0x150   : > { %v844_v40 = vadd.f32 %v843_v39, %v790_v37  ;;  %v845_v43 = vpop.f32.mrb[5].mxu0  ;;  %v794_v45 = vpop.f32.mrb[6].mxu1 }
 0x151   : > { %v846_v44 = vadd.f32 %v845_v43, %v792_v41  ;;  %v847_v47 = vpop.f32.mrb[6].mxu0  ;;  %v796_v50 = vpop.f32.mrb[7].mxu1  ;;  %871 = sbr.rel (%p1121_p13) target bundleno = 352 (0x160), region = 59 }
 0x152   : > { %v856_v48 = vadd.f32 %v844_v40, %v310_v38  ;;  %v848_v49 = vadd.f32 %v847_v47, %v794_v45  ;;  %v849_v52 = vpop.f32.mrb[7].mxu0 }
 0x153   : > { %v857_v53 = vadd.f32 %v846_v44, %v311_v42  ;;  %v850_v54 = vadd.f32 %v849_v52, %v796_v50  ;;  %v872_v57 = vld [vmem:[#allocation2] sm:$0xff] (!%p1121_p13) }
 0x154   : > { %864 = vst [vmem:[#allocation2 + $0x20] sm:$0xff] %v856_v48  ;;  %v858_v55 = vadd.f32 %v848_v49, %v312_v46  ;;  %v873_v58 = vld [vmem:[#allocation2 + $0x8] sm:$0xff] (!%p1121_p13)  ;;  %880 = vst [vmem:[%s1439_s23] sm:$0xff] (!%p1121_p13), %v872_v57 }
 0x155   : > { %865 = vst [vmem:[#allocation2 + $0x28] sm:$0xff] %v857_v53  ;;  %v859_v56 = vadd.f32 %v850_v54, %v313_v51  ;;  %v874_v59 = vld [vmem:[#allocation2 + $0x10] sm:$0xff] (!%p1121_p13)  ;;  %881 = vst [vmem:[%s1439_s23 + $0x8] sm:$0xff] (!%p1121_p13), %v873_v58 }
 0x156   : > { %866 = vst [vmem:[#allocation2 + $0x30] sm:$0xff] %v858_v55  ;;  %882 = vst [vmem:[%s1439_s23 + $0x10] sm:$0xff] (!%p1121_p13), %v874_v59  ;;  %v875_v60 = vld [vmem:[#allocation2 + $0x18] sm:$0xff] (!%p1121_p13) }
 0x157   : > { %867 = vst [vmem:[#allocation2 + $0x38] sm:$0xff] %v859_v56  ;;  %883 = vst [vmem:[%s1439_s23 + $0x18] sm:$0xff] (!%p1121_p13), %v875_v60 }
 0x15b   : > { %v876_v61 = vld [vmem:[#allocation2 + $0x20] sm:$0xff] }
 0x15c   : > { %v877_v62 = vld [vmem:[#allocation2 + $0x28] sm:$0xff]  ;;  %884 = vst [vmem:[%s1439_s23 + $0x20] sm:$0xff] %v876_v61 }
 0x15d   : > { %885 = vst [vmem:[%s1439_s23 + $0x28] sm:$0xff] %v877_v62  ;;  %v878_v63 = vld [vmem:[#allocation2 + $0x30] sm:$0xff] }
 0x15e   : > { %v879_v0 = vld [vmem:[#allocation2 + $0x38] sm:$0xff]  ;;  %886 = vst [vmem:[%s1439_s23 + $0x30] sm:$0xff] %v878_v63 }
 0x15f   : > { %887 = vst [vmem:[%s1439_s23 + $0x38] sm:$0xff] %v879_v0 }
 0x160 PF: > { %s12_s15 = sadd.s32 1, %s1352_s15   ;;  %s1554_s9 = smov %s1332_s10 }
 0x161   : > { %p9_p0 = scmp.ge.s32.totalorder %s12_s15, 18   ;;  %s1555_s10 = smov %s1421_s22 }
 0x162   : > { %s1556_s11 = smov %s1344_s13  ;;  %s1557_s12 = smov %s1348_s14 }
 0x163   : > { %s1558_s13 = smov %s1561_s16  ;;  %s1559_s14 = smov %s1565_s17 }
 0x164   :  { %11 = sbr.rel (!%p9_p0) target bundleno = 4 (0x4), region = 97 }

// kernel: generator_forward.13
= control target key start
LH: loop header
LB: loop body
LE: loop exit
PB: predicated region body
PF: predicated region fallthrough
CT: control target
= control target key end

     0   :  { %s1629_s9 = smov 0   ;;  %s1631_s10 = smov 0   ;;  %s1878_s0 = inlined_call_operand.vmem [shape: bf16[4,128,1024], index: 0, kind: input, shape index: {}]   ;;  %s1879_s1 = inlined_call_operand.vmem [shape: bf16[4,1024,128], index: 1, kind: input, shape index: {}]   ;;  %s1880_s2 = inlined_call_operand.vmem [shape: f32[4,128,128], index: 2, kind: output, shape index: {}]  }
   0x1   :  { %s1633_s11 = smov 0   ;;  %s1635_s12 = smov 0  }
   0x2   :  { %s1637_s13 = smov 0   ;;  %s1639_s14 = smov 0  }
   0x3   :  { %s1641_s15 = smov 0  }
   0x4 LB: > { %s27_s16 = sadd.s32 1, %s1603_s13  ;;  %s38_s17 = sadd.s32 1, %s1607_s14  ;;  %s1611_s15 = sphi %s1641_s15, %s12_s15   ;;  %s1607_s14 = sphi %s1639_s14, %s1886_s14   ;;  %s1603_s13 = sphi %s1637_s13, %s1885_s13   ;;  %s1599_s12 = sphi %s1635_s12, %s1884_s12   ;;  %s1595_s11 = sphi %s1633_s11, %s1883_s11   ;;  %s1591_s10 = sphi %s1631_s10, %s1882_s10   ;;  %s1587_s9 = sphi %s1629_s9, %s1881_s9  }
   0x5   : > { %p28_p0 = scmp.ge.s32.totalorder %s27_s16, 2  ;;  %p56_p1 = scmp.ne.s32.totalorder %s1591_s10, %s1587_s9 }
   0x6   : > { %p57_p2 = scmp.eq.s32.totalorder %s1611_s15, 0  ;;  %s49_s21 = sadd.s32 1, %s1591_s10 }
   0x7   : > { %s1888_s16 = smov (%p28_p0, %s27_s16), 0  ;;  %s1890_s17 = smov (!%p28_p0, %s38_s17), %s1607_s14 }
   0x8   : > { %p58_p3 = por %p57_p2, %p56_p1  ;;  %p40_p4 = scmp.ge.s32.totalorder %s1890_s17, 4 }
   0x9   : > { %s45_s18 = ssub.s32 %s1603_s13, %s1888_s16  ;;  %p1211_p6 = scmp.ge.s32.totalorder %s1611_s15, 8 }
   0xa   : > { %s1892_s17 = smov (%p40_p4, %s1890_s17), 0 }
   0xb   : > { %s42_s19 = ssub.s32 %s1607_s14, %s1892_s17  ;;  %142 = sbr.rel (%p1211_p6) target bundleno = 41 (0x29), region = 16 }
   0xc   : > { %s46_s20 = sor.u32 %s45_s18, %s42_s19 }
   0xd   : > { %p47_p5 = scmp.eq.s32.totalorder %s46_s20, 0 }
   0xf   : > { %s1680_s22 = scalar_select %p47_p5, %s1591_s10, %s49_s21  }
  0x12   : > { %145 = sbr.rel (!%p58_p3) target bundleno = 41 (0x29), region = 20  ;;  %s147_s23 = sand.u32 (%p58_p3), 1, %s1591_s10  }
  0x13   : > { %s1213_s24 = sshll.u32 (%p58_p3), %s1603_s13, 2  ;;  %s1212_s25 = sshll.u32 (%p58_p3), %s147_s23, 8 }
  0x14   : > { %s1214_s26 = sshll.u32 (%p58_p3), %s1607_s14, 7  ;;  %s1694_s4 = scalar_lea.vmem (%p58_p3), [#allocation3], %s1212_s25 }
  0x15   : > { %s155_s27 = sadd.s32 (%p58_p3), %s1214_s26, %s1213_s24 }
  0x16   : > { %s1215_s28 = sshll.u32 (%p58_p3), %s155_s27, 2 }
  0x17   : > { %s1689_s3 = scalar_lea.vmem (%p58_p3), %s1878_s0, %s1215_s28 }
  0x18   : > { %v170_v0 = vld [vmem:[%s1689_s3] sm:$0xff] (%p58_p3)  ;;  %v172_v1 = vld [vmem:[%s1689_s3 + $0x8] sm:$0xff] (%p58_p3) }
  0x19   : > { %v174_v2 = vld [vmem:[%s1689_s3 + $0x20] sm:$0xff]  ;;  %171 = vst [vmem:[%s1694_s4] sm:$0xff] %v170_v0  ;;  %173 = vst [vmem:[%s1694_s4 + $0x8] sm:$0xff] %v172_v1  ;;  %v176_v3 = vld [vmem:[%s1689_s3 + $0x28] sm:$0xff] }
  0x1a   : > { %175 = vst [vmem:[%s1694_s4 + $0x10] sm:$0xff] %v174_v2  ;;  %v178_v4 = vld [vmem:[%s1689_s3 + $0x40] sm:$0xff]  ;;  %v180_v5 = vld [vmem:[%s1689_s3 + $0x48] sm:$0xff]  ;;  %177 = vst [vmem:[%s1694_s4 + $0x18] sm:$0xff] %v176_v3 }
  0x1b   : > { %179 = vst [vmem:[%s1694_s4 + $0x20] sm:$0xff] %v178_v4  ;;  %181 = vst [vmem:[%s1694_s4 + $0x28] sm:$0xff] %v180_v5  ;;  %v182_v6 = vld [vmem:[%s1689_s3 + $0x60] sm:$0xff]  ;;  %v184_v7 = vld [vmem:[%s1689_s3 + $0x68] sm:$0xff] }
  0x1c   : > { %v186_v8 = vld [vmem:[%s1689_s3 + $0x80] sm:$0xff]  ;;  %183 = vst [vmem:[%s1694_s4 + $0x30] sm:$0xff] %v182_v6  ;;  %185 = vst [vmem:[%s1694_s4 + $0x38] sm:$0xff] %v184_v7  ;;  %v188_v9 = vld [vmem:[%s1689_s3 + $0x88] sm:$0xff] }
  0x1d   : > { %187 = vst [vmem:[%s1694_s4 + $0x40] sm:$0xff] %v186_v8  ;;  %v190_v10 = vld [vmem:[%s1689_s3 + $0xa0] sm:$0xff]  ;;  %v192_v11 = vld [vmem:[%s1689_s3 + $0xa8] sm:$0xff]  ;;  %189 = vst [vmem:[%s1694_s4 + $0x48] sm:$0xff] %v188_v9 }
  0x1e   : > { %191 = vst [vmem:[%s1694_s4 + $0x50] sm:$0xff] %v190_v10  ;;  %193 = vst [vmem:[%s1694_s4 + $0x58] sm:$0xff] %v192_v11  ;;  %v194_v12 = vld [vmem:[%s1689_s3 + $0xc0] sm:$0xff]  ;;  %v196_v13 = vld [vmem:[%s1689_s3 + $0xc8] sm:$0xff] }
  0x1f   : > { %v198_v14 = vld [vmem:[%s1689_s3 + $0xe0] sm:$0xff]  ;;  %195 = vst [vmem:[%s1694_s4 + $0x60] sm:$0xff] %v194_v12  ;;  %197 = vst [vmem:[%s1694_s4 + $0x68] sm:$0xff] %v196_v13  ;;  %v200_v15 = vld [vmem:[%s1689_s3 + $0xe8] sm:$0xff] }
  0x20   : > { %199 = vst [vmem:[%s1694_s4 + $0x70] sm:$0xff] %v198_v14  ;;  %v202_v16 = vld [vmem:[%s1689_s3 + $0x100] sm:$0xff]  ;;  %v204_v17 = vld [vmem:[%s1689_s3 + $0x108] sm:$0xff]  ;;  %201 = vst [vmem:[%s1694_s4 + $0x78] sm:$0xff] %v200_v15 }
  0x21   : > { %203 = vst [vmem:[%s1694_s4 + $0x80] sm:$0xff] %v202_v16  ;;  %205 = vst [vmem:[%s1694_s4 + $0x88] sm:$0xff] %v204_v17  ;;  %v206_v18 = vld [vmem:[%s1689_s3 + $0x120] sm:$0xff]  ;;  %v208_v19 = vld [vmem:[%s1689_s3 + $0x128] sm:$0xff] }
  0x22   : > { %v210_v20 = vld [vmem:[%s1689_s3 + $0x140] sm:$0xff]  ;;  %207 = vst [vmem:[%s1694_s4 + $0x90] sm:$0xff] %v206_v18  ;;  %209 = vst [vmem:[%s1694_s4 + $0x98] sm:$0xff] %v208_v19  ;;  %v212_v21 = vld [vmem:[%s1689_s3 + $0x148] sm:$0xff] }
  0x23   : > { %211 = vst [vmem:[%s1694_s4 + $0xa0] sm:$0xff] %v210_v20  ;;  %v214_v22 = vld [vmem:[%s1689_s3 + $0x160] sm:$0xff]  ;;  %v216_v23 = vld [vmem:[%s1689_s3 + $0x168] sm:$0xff]  ;;  %213 = vst [vmem:[%s1694_s4 + $0xa8] sm:$0xff] %v212_v21 }
  0x24   : > { %215 = vst [vmem:[%s1694_s4 + $0xb0] sm:$0xff] %v214_v22  ;;  %217 = vst [vmem:[%s1694_s4 + $0xb8] sm:$0xff] %v216_v23  ;;  %v218_v24 = vld [vmem:[%s1689_s3 + $0x180] sm:$0xff]  ;;  %v220_v25 = vld [vmem:[%s1689_s3 + $0x188] sm:$0xff] }
  0x25   : > { %v222_v26 = vld [vmem:[%s1689_s3 + $0x1a0] sm:$0xff]  ;;  %219 = vst [vmem:[%s1694_s4 + $0xc0] sm:$0xff] %v218_v24  ;;  %221 = vst [vmem:[%s1694_s4 + $0xc8] sm:$0xff] %v220_v25  ;;  %v224_v27 = vld [vmem:[%s1689_s3 + $0x1a8] sm:$0xff] }
  0x26   : > { %223 = vst [vmem:[%s1694_s4 + $0xd0] sm:$0xff] %v222_v26  ;;  %v226_v28 = vld [vmem:[%s1689_s3 + $0x1c0] sm:$0xff]  ;;  %v228_v29 = vld [vmem:[%s1689_s3 + $0x1c8] sm:$0xff]  ;;  %225 = vst [vmem:[%s1694_s4 + $0xd8] sm:$0xff] %v224_v27 }
  0x27   : > { %227 = vst [vmem:[%s1694_s4 + $0xe0] sm:$0xff] %v226_v28  ;;  %229 = vst [vmem:[%s1694_s4 + $0xe8] sm:$0xff] %v228_v29  ;;  %v230_v30 = vld [vmem:[%s1689_s3 + $0x1e0] sm:$0xff]  ;;  %v232_v31 = vld [vmem:[%s1689_s3 + $0x1e8] sm:$0xff] }
  0x28   : > { %231 = vst [vmem:[%s1694_s4 + $0xf0] sm:$0xff] %v230_v30  ;;  %233 = vst [vmem:[%s1694_s4 + $0xf8] sm:$0xff] %v232_v31 }
  0x29 PF: > { %p1216_p7 = scmp.ge.s32.totalorder %s1611_s15, 1  ;;  %p254_p8 = scmp.lt.s32.totalorder %s1611_s15, 9 }
  0x2b   : > { %p255_p9 = pnand %p1216_p7, %p254_p8 }
  0x2c   : > { %s261_s5 = sand.u32 (!%p255_p9), 1, %s1587_s9   ;;  %s1218_s6 = sshll.u32 (!%p255_p9), %s1595_s11, 6 }
  0x2d   : > { %258 = sbr.rel (%p255_p9) target bundleno = 383 (0x17f), region = 47  ;;  %s1217_s7 = sshll.u32 (!%p255_p9), %s261_s5, 8 }
  0x2e   : > { %p304_p10 = scmp.lt.s32.totalorder (!%p255_p9), %s1599_s12, 3  ;;  %p306_p11 = scmp.lt.s32.totalorder (!%p255_p9), %s1218_s6, 127 }
  0x2f   : > { %s1773_s9 = scalar_lea.vmem (!%p255_p9), [#allocation3], %s1217_s7  ;;  %p1223_p12 = scmp.ne.s32.totalorder (!%p255_p9), %s1595_s11, 0 }
  0x34   : > { %s1894_s12 = smov (!%p304_p10, %s1599_s12), 3  ;;  %s1896_s6 = smov (!%p306_p11, %s1218_s6), 127 }
  0x35   : > { %s1219_s8 = sshll.u32 %s1894_s12, 7  ;;  %333 = sbr.rel (%p1223_p12) target bundleno = 62 (0x3e), region = 55  ;;  %v1613_v32 = vmov (!%p1223_p12), 0.0  }
  0x36   : > { %s312_s18 = sadd.s32 %s1219_s8, %s1896_s6  ;;  %s1766_s21 = scalar_lea.vmem %s1880_s2, %s1219_s8  ;;  %334 = vst [vmem:[#allocation2] sm:$0xff] (!%p1223_p12), %v1613_v32  ;;  %335 = vst [vmem:[#allocation2 + $0x8] sm:$0xff] (!%p1223_p12), %v1613_v32 }
  0x37   : > { %s1220_s23 = sshll.u32 %s312_s18, 2  ;;  %336 = vst [vmem:[#allocation2 + $0x10] sm:$0xff] (!%p1223_p12), %v1613_v32  ;;  %337 = vst [vmem:[#allocation2 + $0x18] sm:$0xff] (!%p1223_p12), %v1613_v32 }
  0x38   : > { %s1771_s26 = scalar_lea.vmem %s1879_s1, %s1220_s23  ;;  %338 = vst [vmem:[#allocation2 + $0x20] sm:$0xff] (!%p1223_p12), %v1613_v32  ;;  %339 = vst [vmem:[#allocation2 + $0x28] sm:$0xff] (!%p1223_p12), %v1613_v32 }
  0x39   : > { %340 = vst [vmem:[#allocation2 + $0x30] sm:$0xff] (!%p1223_p12), %v1613_v32  ;;  %341 = vst [vmem:[#allocation2 + $0x38] sm:$0xff] (!%p1223_p12), %v1613_v32 }
  0x3a   : > { %342 = vst [vmem:[#allocation2 + $0x40] sm:$0xff] (!%p1223_p12), %v1613_v32  ;;  %343 = vst [vmem:[#allocation2 + $0x48] sm:$0xff] (!%p1223_p12), %v1613_v32 }
  0x3b   : > { %344 = vst [vmem:[#allocation2 + $0x50] sm:$0xff] (!%p1223_p12), %v1613_v32  ;;  %345 = vst [vmem:[#allocation2 + $0x58] sm:$0xff] (!%p1223_p12), %v1613_v32 }
  0x3c   : > { %346 = vst [vmem:[#allocation2 + $0x60] sm:$0xff] %v1613_v32  ;;  %347 = vst [vmem:[#allocation2 + $0x68] sm:$0xff] %v1613_v32 }
  0x3d   : > { %348 = vst [vmem:[#allocation2 + $0x70] sm:$0xff] %v1613_v32  ;;  %349 = vst [vmem:[#allocation2 + $0x78] sm:$0xff] %v1613_v32 }
  0x3e PF: > { %v1477_v33 = vld [vmem:[%s1771_s26 + $0x40] sm:$0xff]   ;;  %v1481_v37 = vld [vmem:[%s1771_s26 + $0x48] sm:$0xff]   ;;  %v1485_v41 = vld [vmem:[%s1771_s26 + $0x50] sm:$0xff]   ;;  %p1288_p13 = scmp.ne.s32.totalorder %s1595_s11, 1 }
  0x3f   : > { %v1478_v34 = vld [vmem:[%s1771_s26 + $0xc0] sm:$0xff]   ;;  %1292 = vmatprep.subr.bf16.mxu0 %v1477_v33  ;;  %v1482_v38 = vld [vmem:[%s1771_s26 + $0xc8] sm:$0xff]   ;;  %v1486_v42 = vld [vmem:[%s1771_s26 + $0xd0] sm:$0xff]  }
  0x40   : > { %v1479_v35 = vld [vmem:[%s1771_s26] sm:$0xff]   ;;  %1356 = vmatprep.subr.bf16.mxu1 %v1478_v34  ;;  %v1483_v39 = vld [vmem:[%s1771_s26 + $0x8] sm:$0xff]   ;;  %v1487_v43 = vld [vmem:[%s1771_s26 + $0x10] sm:$0xff]  }
  0x41   : > { %v1480_v36 = vld [vmem:[%s1771_s26 + $0x80] sm:$0xff]   ;;  %1293 = vmatpush3.bf16.msra.mxu0 %v1479_v35  ;;  %v1484_v40 = vld [vmem:[%s1771_s26 + $0x88] sm:$0xff]   ;;  %v1488_v44 = vld [vmem:[%s1771_s26 + $0x90] sm:$0xff]  }
  0x42   : > { %1357 = vmatpush3.bf16.msra.mxu1 %v1480_v36  ;;  %1294 = vmatprep.subr.bf16.mxu0 %v1481_v37  ;;  %v1489_v45 = vld [vmem:[%s1771_s26 + $0x58] sm:$0xff]   ;;  %v1493_v49 = vld [vmem:[%s1771_s26 + $0x60] sm:$0xff]   ;;  %v1497_v53 = vld [vmem:[%s1771_s26 + $0x68] sm:$0xff]  }
  0x43   : > { %1358 = vmatprep.subr.bf16.mxu1 %v1482_v38  ;;  %v1490_v46 = vld [vmem:[%s1771_s26 + $0xd8] sm:$0xff]   ;;  %v1494_v50 = vld [vmem:[%s1771_s26 + $0xe0] sm:$0xff]   ;;  %v1498_v54 = vld [vmem:[%s1771_s26 + $0xe8] sm:$0xff]  }
  0x44   : > { %v1491_v47 = vld [vmem:[%s1771_s26 + $0x18] sm:$0xff]   ;;  %v1495_v51 = vld [vmem:[%s1771_s26 + $0x20] sm:$0xff]   ;;  %v1499_v55 = vld [vmem:[%s1771_s26 + $0x28] sm:$0xff]  }
  0x45   : > { %1295 = vmatpush3.bf16.msra.mxu0 %v1483_v39  ;;  %v1492_v48 = vld [vmem:[%s1771_s26 + $0x98] sm:$0xff]   ;;  %v1496_v52 = vld [vmem:[%s1771_s26 + $0xa0] sm:$0xff]   ;;  %v1500_v56 = vld [vmem:[%s1771_s26 + $0xa8] sm:$0xff]  }
  0x46   : > { %1359 = vmatpush3.bf16.msra.mxu1 %v1484_v40  ;;  %1296 = vmatprep.subr.bf16.mxu0 %v1485_v41  ;;  %v1501_v57 = vld [vmem:[%s1771_s26 + $0x70] sm:$0xff]   ;;  %v1505_v61 = vld [vmem:[%s1771_s26 + $0x78] sm:$0xff]  }
  0x47   : > { %1360 = vmatprep.subr.bf16.mxu1 %v1486_v42  ;;  %v1502_v58 = vld [vmem:[%s1771_s26 + $0xf0] sm:$0xff]   ;;  %v1506_v62 = vld [vmem:[%s1771_s26 + $0xf8] sm:$0xff]   ;;  %v350_v42 = vld [vmem:[#allocation2] sm:$0xff] }
  0x48   : > { %v1503_v59 = vld [vmem:[%s1771_s26 + $0x30] sm:$0xff]   ;;  %v1507_v63 = vld [vmem:[%s1771_s26 + $0x38] sm:$0xff]  }
  0x49   : > { %1297 = vmatpush3.bf16.msra.mxu0 %v1487_v43  ;;  %v1504_v60 = vld [vmem:[%s1771_s26 + $0xb0] sm:$0xff]   ;;  %v1508_v0 = vld [vmem:[%s1771_s26 + $0xb8] sm:$0xff]  }
  0x4a   : > { %1361 = vmatpush3.bf16.msra.mxu1 %v1488_v44  ;;  %1298 = vmatprep.subr.bf16.mxu0 %v1489_v45  ;;  %v1509_v1 = vld [vmem:[%s1773_s9] ss:$16 sps:$4 sm:$0xff]   ;;  %v1511_v2 = vld [vmem:[%s1773_s9 + $0x4] ss:$16 sps:$4 sm:$0xff]   ;;  %v1512_v3 = vld [vmem:[%s1773_s9 + $0x8] ss:$16 sps:$4 sm:$0xff]  }
  0x4b   : > { %1362 = vmatprep.subr.bf16.mxu1 %v1490_v46  ;;  %v1514_v4 = vld [vmem:[%s1773_s9 + $0xc] ss:$16 sps:$4 sm:$0xff]   ;;  %846 = vmatprep.mubr.bf16.mxu0 %v1511_v2  ;;  %v1515_v5 = vld [vmem:[%s1773_s9 + $0x24] ss:$16 sps:$4 sm:$0xff]   ;;  %v1519_v7 = vld [vmem:[%s1773_s9 + $0x20] ss:$16 sps:$4 sm:$0xff]  }
  0x4c   : > { %943 = vmatprep.mubr.bf16.mxu1 %v1514_v4  ;;  %v1517_v6 = vld [vmem:[%s1773_s9 + $0x2c] ss:$16 sps:$4 sm:$0xff]   ;;  %v1520_v8 = vld [vmem:[%s1773_s9 + $0x28] ss:$16 sps:$4 sm:$0xff]   ;;  %v1521_v9 = vld [vmem:[%s1773_s9 + $0x44] ss:$16 sps:$4 sm:$0xff]  }
  0x4d   : > { %1299 = vmatpush3.bf16.msra.mxu0 %v1491_v47  ;;  %v1523_v10 = vld [vmem:[%s1773_s9 + $0x4c] ss:$16 sps:$4 sm:$0xff]   ;;  %v1525_v11 = vld [vmem:[%s1773_s9 + $0x40] ss:$16 sps:$4 sm:$0xff]   ;;  %v1526_v12 = vld [vmem:[%s1773_s9 + $0x48] ss:$16 sps:$4 sm:$0xff]  }
  0x4e   : > { %1363 = vmatpush3.bf16.msra.mxu1 %v1492_v48  ;;  %1300 = vmatprep.subr.bf16.mxu0 %v1493_v49  ;;  %v1527_v13 = vld [vmem:[%s1773_s9 + $0x64] ss:$16 sps:$4 sm:$0xff]   ;;  %v1529_v14 = vld [vmem:[%s1773_s9 + $0x6c] ss:$16 sps:$4 sm:$0xff]   ;;  %v1531_v15 = vld [vmem:[%s1773_s9 + $0x60] ss:$16 sps:$4 sm:$0xff]  }
  0x4f   : > { %1364 = vmatprep.subr.bf16.mxu1 %v1494_v50  ;;  %v1532_v16 = vld [vmem:[%s1773_s9 + $0x68] ss:$16 sps:$4 sm:$0xff]   ;;  %v1533_v17 = vld [vmem:[%s1773_s9 + $0x84] ss:$16 sps:$4 sm:$0xff]   ;;  %v1535_v18 = vld [vmem:[%s1773_s9 + $0x8c] ss:$16 sps:$4 sm:$0xff]  }
  0x50   : > { %v1537_v19 = vld [vmem:[%s1773_s9 + $0x80] ss:$16 sps:$4 sm:$0xff]   ;;  %v1538_v20 = vld [vmem:[%s1773_s9 + $0x88] ss:$16 sps:$4 sm:$0xff]   ;;  %v1539_v21 = vld [vmem:[%s1773_s9 + $0xa4] ss:$16 sps:$4 sm:$0xff]  }
  0x51   : > { %1301 = vmatpush3.bf16.msra.mxu0 %v1495_v51  ;;  %v1541_v22 = vld [vmem:[%s1773_s9 + $0xac] ss:$16 sps:$4 sm:$0xff]   ;;  %v1543_v23 = vld [vmem:[%s1773_s9 + $0xa0] ss:$16 sps:$4 sm:$0xff]   ;;  %v1544_v24 = vld [vmem:[%s1773_s9 + $0xa8] ss:$16 sps:$4 sm:$0xff]  }
  0x52   : > { %1365 = vmatpush3.bf16.msra.mxu1 %v1496_v52  ;;  %1302 = vmatprep.subr.bf16.mxu0 %v1497_v53  ;;  %v1545_v25 = vld [vmem:[%s1773_s9 + $0xc4] ss:$16 sps:$4 sm:$0xff]   ;;  %v1547_v26 = vld [vmem:[%s1773_s9 + $0xcc] ss:$16 sps:$4 sm:$0xff]   ;;  %v1549_v27 = vld [vmem:[%s1773_s9 + $0xc0] ss:$16 sps:$4 sm:$0xff]  }
  0x53   : > { %1366 = vmatprep.subr.bf16.mxu1 %v1498_v54  ;;  %v1550_v28 = vld [vmem:[%s1773_s9 + $0xc8] ss:$16 sps:$4 sm:$0xff]   ;;  %v1551_v29 = vld [vmem:[%s1773_s9 + $0xe4] ss:$16 sps:$4 sm:$0xff]   ;;  %v1553_v30 = vld [vmem:[%s1773_s9 + $0xec] ss:$16 sps:$4 sm:$0xff]  }
  0x54   : > { %v1555_v31 = vld [vmem:[%s1773_s9 + $0xe0] ss:$16 sps:$4 sm:$0xff]   ;;  %v1556_v32 = vld [vmem:[%s1773_s9 + $0xe8] ss:$16 sps:$4 sm:$0xff]  }
  0x55   : > { %1303 = vmatpush3.bf16.msra.mxu0 %v1499_v55  ;;  %v351_v47 = vld [vmem:[#allocation2 + $0x8] sm:$0xff] }
  0x56   : > { %1367 = vmatpush3.bf16.msra.mxu1 %v1500_v56  ;;  %1304 = vmatprep.subr.bf16.mxu0 %v1501_v57 }
  0x57   : > { %1368 = vmatprep.subr.bf16.mxu1 %v1502_v58 }
  0x59   : > { %1305 = vmatpush3.bf16.msra.mxu0 %v1503_v59 }
  0x5a   : > { %1369 = vmatpush3.bf16.msra.mxu1 %v1504_v60  ;;  %1306 = vmatprep.subr.bf16.mxu0 %v1505_v61  ;;  %v352_v60 = vld [vmem:[#allocation2 + $0x10] sm:$0xff] }
  0x5b   : > { %1370 = vmatprep.subr.bf16.mxu1 %v1506_v62 }
  0x5d   : > { %1307 = vmatpush3.bf16.msra.mxu0 %v1507_v63 }
  0x5e   : > { %1371 = vmatpush3.bf16.msra.mxu1 %v1508_v0 }
  0x60   : > { %847 = vmatmul.mubr.bf16.vlgmr.msra.gmra.mrb[0].mxu0 %v1509_v1  ;;  %v353_v1 = vld [vmem:[#allocation2 + $0x18] sm:$0xff] }
  0x61   : > { %944 = vmatmul.mubr.bf16.vlgmr.msra.gmra.mrb[0].mxu1 %v1512_v3  ;;  %854 = vmatprep.mubr.bf16.mxu0 %v1515_v5 }
  0x62   : > { %951 = vmatprep.mubr.bf16.mxu1 %v1517_v6 }
  0x68   : > { %855 = vmatmul.mubr.bf16.gmra.mrb[4].mxu0 %v1519_v7 }
  0x69   : > { %952 = vmatmul.mubr.bf16.gmra.mrb[4].mxu1 %v1520_v8  ;;  %862 = vmatprep.mubr.bf16.mxu0 %v1521_v9 }
  0x6a   : > { %959 = vmatprep.mubr.bf16.mxu1 %v1523_v10 }
  0x70   : > { %863 = vmatmul.mubr.bf16.gmra.mrb[8].mxu0 %v1525_v11 }
  0x71   : > { %960 = vmatmul.mubr.bf16.gmra.mrb[8].mxu1 %v1526_v12  ;;  %870 = vmatprep.mubr.bf16.mxu0 %v1527_v13 }
  0x72   : > { %967 = vmatprep.mubr.bf16.mxu1 %v1529_v14  ;;  %v354_v14 = vld [vmem:[#allocation2 + $0x20] sm:$0xff] }
  0x78   : > { %871 = vmatmul.mubr.bf16.gmra.mrb[12].mxu0 %v1531_v15 }
  0x79   : > { %968 = vmatmul.mubr.bf16.gmra.mrb[12].mxu1 %v1532_v16  ;;  %878 = vmatprep.mubr.bf16.mxu0 %v1533_v17 }
  0x7a   : > { %975 = vmatprep.mubr.bf16.mxu1 %v1535_v18 }
  0x80   : > { %879 = vmatmul.mubr.bf16.gmra.mrb[16].mxu0 %v1537_v19  ;;  %v355_v19 = vld [vmem:[#allocation2 + $0x28] sm:$0xff] }
  0x81   : > { %976 = vmatmul.mubr.bf16.gmra.mrb[16].mxu1 %v1538_v20  ;;  %886 = vmatprep.mubr.bf16.mxu0 %v1539_v21 }
  0x82   : > { %983 = vmatprep.mubr.bf16.mxu1 %v1541_v22 }
  0x88   : > { %887 = vmatmul.mubr.bf16.gmra.mrb[20].mxu0 %v1543_v23 }
  0x89   : > { %984 = vmatmul.mubr.bf16.gmra.mrb[20].mxu1 %v1544_v24  ;;  %894 = vmatprep.mubr.bf16.mxu0 %v1545_v25 }
  0x8a   : > { %991 = vmatprep.mubr.bf16.mxu1 %v1547_v26 }
  0x90   : > { %895 = vmatmul.mubr.bf16.gmra.mrb[24].mxu0 %v1549_v27 }
  0x91   : > { %992 = vmatmul.mubr.bf16.gmra.mrb[24].mxu1 %v1550_v28  ;;  %902 = vmatprep.mubr.bf16.mxu0 %v1551_v29 }
  0x92   : > { %999 = vmatprep.mubr.bf16.mxu1 %v1553_v30 }
  0x98   : > { %903 = vmatmul.mubr.bf16.gmra.mrb[28].mxu0 %v1555_v31 }
  0x99   : > { %1000 = vmatmul.mubr.bf16.gmra.mrb[28].mxu1 %v1556_v32  ;;  %v356_v32 = vld [vmem:[#allocation2 + $0x30] sm:$0xff] }
 0x133   : > { %v1308_v33 = vpop.f32.mrb[0].mxu0 }
 0x134   : > { %v1372_v34 = vpop.f32.mrb[0].mxu1  ;;  %v1309_v35 = vpop.f32.mrb[1].mxu0 }
 0x135   : > { %v1310_v36 = vadd.f32 %v1309_v35, %v1308_v33  ;;  %v1373_v37 = vpop.f32.mrb[1].mxu1  ;;  %v1311_v38 = vpop.f32.mrb[2].mxu0 }
 0x136   : > { %v1374_v39 = vadd.f32 %v1373_v37, %v1372_v34  ;;  %v1375_v40 = vpop.f32.mrb[2].mxu1  ;;  %v1312_v41 = vpop.f32.mrb[3].mxu0  ;;  %v357_v37 = vld [vmem:[#allocation2 + $0x38] sm:$0xff] }
 0x137   : > { %v1313_v43 = vadd.f32 %v1312_v41, %v1311_v38  ;;  %v1376_v44 = vpop.f32.mrb[3].mxu1 }
 0x138   : > { %v946_v45 = vadd.f32 %v1374_v39, %v1310_v36  ;;  %v1377_v46 = vadd.f32 %v1376_v44, %v1375_v40 }
 0x13a   : > { %v1008_v48 = vadd.f32 %v946_v45, %v350_v42  ;;  %v949_v49 = vadd.f32 %v1377_v46, %v1313_v43 }
 0x13b   : > { %v1314_v50 = vpop.f32.mrb[4].mxu0 }
 0x13c   : > { %1024 = vst [vmem:[#allocation2] sm:$0xff] %v1008_v48  ;;  %v1009_v51 = vadd.f32 %v949_v49, %v351_v47  ;;  %v1378_v52 = vpop.f32.mrb[4].mxu1  ;;  %v1315_v53 = vpop.f32.mrb[5].mxu0 }
 0x13d   : > { %v1316_v54 = vadd.f32 %v1315_v53, %v1314_v50  ;;  %v1379_v55 = vpop.f32.mrb[5].mxu1  ;;  %v1317_v56 = vpop.f32.mrb[6].mxu0  ;;  %v358_v50 = vld [vmem:[#allocation2 + $0x40] sm:$0xff] }
 0x13e   : > { %1025 = vst [vmem:[#allocation2 + $0x8] sm:$0xff] %v1009_v51  ;;  %v1380_v57 = vadd.f32 %v1379_v55, %v1378_v52  ;;  %v1381_v58 = vpop.f32.mrb[6].mxu1  ;;  %v1318_v59 = vpop.f32.mrb[7].mxu0  ;;  %v359_v55 = vld [vmem:[#allocation2 + $0x48] sm:$0xff] }
 0x13f   : > { %v1319_v61 = vadd.f32 %v1318_v59, %v1317_v56  ;;  %v1382_v62 = vpop.f32.mrb[7].mxu1 }
 0x140   : > { %v954_v63 = vadd.f32 %v1380_v57, %v1316_v54  ;;  %v1383_v0 = vadd.f32 %v1382_v62, %v1381_v58 }
 0x142   : > { %v1010_v2 = vadd.f32 %v954_v63, %v352_v60  ;;  %v957_v3 = vadd.f32 %v1383_v0, %v1319_v61 }
 0x143   : > { %v1320_v4 = vpop.f32.mrb[8].mxu0 }
 0x144   : > { %1026 = vst [vmem:[#allocation2 + $0x10] sm:$0xff] %v1010_v2  ;;  %v1011_v5 = vadd.f32 %v957_v3, %v353_v1  ;;  %v1384_v6 = vpop.f32.mrb[8].mxu1  ;;  %v1321_v7 = vpop.f32.mrb[9].mxu0 }
 0x145   : > { %v1322_v8 = vadd.f32 %v1321_v7, %v1320_v4  ;;  %v1385_v9 = vpop.f32.mrb[9].mxu1  ;;  %v1323_v10 = vpop.f32.mrb[10].mxu0  ;;  %v360_v4 = vld [vmem:[#allocation2 + $0x50] sm:$0xff] }
 0x146   : > { %1027 = vst [vmem:[#allocation2 + $0x18] sm:$0xff] %v1011_v5  ;;  %v1386_v11 = vadd.f32 %v1385_v9, %v1384_v6  ;;  %v1387_v12 = vpop.f32.mrb[10].mxu1  ;;  %v1324_v13 = vpop.f32.mrb[11].mxu0  ;;  %v361_v9 = vld [vmem:[#allocation2 + $0x58] sm:$0xff] }
 0x147   : > { %v1325_v15 = vadd.f32 %v1324_v13, %v1323_v10  ;;  %v1388_v16 = vpop.f32.mrb[11].mxu1 }
 0x148   : > { %v962_v17 = vadd.f32 %v1386_v11, %v1322_v8  ;;  %v1389_v18 = vadd.f32 %v1388_v16, %v1387_v12 }
 0x14a   : > { %v1012_v20 = vadd.f32 %v962_v17, %v354_v14  ;;  %v965_v21 = vadd.f32 %v1389_v18, %v1325_v15 }
 0x14b   : > { %v1326_v22 = vpop.f32.mrb[12].mxu0 }
 0x14c   : > { %1028 = vst [vmem:[#allocation2 + $0x20] sm:$0xff] %v1012_v20  ;;  %v1013_v23 = vadd.f32 %v965_v21, %v355_v19  ;;  %v1390_v24 = vpop.f32.mrb[12].mxu1  ;;  %v1327_v25 = vpop.f32.mrb[13].mxu0 }
 0x14d   : > { %v1328_v26 = vadd.f32 %v1327_v25, %v1326_v22  ;;  %v1391_v27 = vpop.f32.mrb[13].mxu1  ;;  %v1329_v28 = vpop.f32.mrb[14].mxu0  ;;  %v362_v22 = vld [vmem:[#allocation2 + $0x60] sm:$0xff] }
 0x14e   : > { %1029 = vst [vmem:[#allocation2 + $0x28] sm:$0xff] %v1013_v23  ;;  %v1392_v29 = vadd.f32 %v1391_v27, %v1390_v24  ;;  %v1393_v30 = vpop.f32.mrb[14].mxu1  ;;  %v1330_v31 = vpop.f32.mrb[15].mxu0  ;;  %v363_v27 = vld [vmem:[#allocation2 + $0x68] sm:$0xff] }
 0x14f   : > { %v1331_v33 = vadd.f32 %v1330_v31, %v1329_v28  ;;  %v1394_v34 = vpop.f32.mrb[15].mxu1 }
 0x150   : > { %v970_v35 = vadd.f32 %v1392_v29, %v1328_v26  ;;  %v1395_v36 = vadd.f32 %v1394_v34, %v1393_v30 }
 0x152   : > { %v1014_v38 = vadd.f32 %v970_v35, %v356_v32  ;;  %v973_v39 = vadd.f32 %v1395_v36, %v1331_v33 }
 0x153   : > { %v1332_v40 = vpop.f32.mrb[16].mxu0 }
 0x154   : > { %1030 = vst [vmem:[#allocation2 + $0x30] sm:$0xff] %v1014_v38  ;;  %v1015_v41 = vadd.f32 %v973_v39, %v357_v37  ;;  %v1396_v42 = vpop.f32.mrb[16].mxu1  ;;  %v1333_v43 = vpop.f32.mrb[17].mxu0 }
 0x155   : > { %v1334_v44 = vadd.f32 %v1333_v43, %v1332_v40  ;;  %v1397_v45 = vpop.f32.mrb[17].mxu1  ;;  %v1335_v46 = vpop.f32.mrb[18].mxu0  ;;  %v364_v40 = vld [vmem:[#allocation2 + $0x70] sm:$0xff] }
 0x156   : > { %1031 = vst [vmem:[#allocation2 + $0x38] sm:$0xff] %v1015_v41  ;;  %v1398_v47 = vadd.f32 %v1397_v45, %v1396_v42  ;;  %v1399_v48 = vpop.f32.mrb[18].mxu1  ;;  %v1336_v49 = vpop.f32.mrb[19].mxu0  ;;  %v365_v45 = vld [vmem:[#allocation2 + $0x78] sm:$0xff] }
 0x157   : > { %v1337_v51 = vadd.f32 %v1336_v49, %v1335_v46  ;;  %v1400_v52 = vpop.f32.mrb[19].mxu1  ;;  %v1044_v49 = vld [vmem:[#allocation2] sm:$0xff] (!%p1288_p13) }
 0x158   : > { %v978_v53 = vadd.f32 %v1398_v47, %v1334_v44  ;;  %v1401_v54 = vadd.f32 %v1400_v52, %v1399_v48  ;;  %1060 = vst [vmem:[%s1766_s21] sm:$0xff] (!%p1288_p13), %v1044_v49  ;;  %v1047_v52 = vld [vmem:[#allocation2 + $0x18] sm:$0xff] (!%p1288_p13) }
 0x159   : > { %1063 = vst [vmem:[%s1766_s21 + $0x18] sm:$0xff] (!%p1288_p13), %v1047_v52 }
 0x15a   : > { %v1016_v56 = vadd.f32 %v978_v53, %v358_v50  ;;  %v981_v57 = vadd.f32 %v1401_v54, %v1337_v51  ;;  %v1045_v50 = vld [vmem:[#allocation2 + $0x8] sm:$0xff] (!%p1288_p13)  ;;  %v1046_v51 = vld [vmem:[#allocation2 + $0x10] sm:$0xff] (!%p1288_p13)  ;;  %v1048_v53 = vld [vmem:[#allocation2 + $0x20] sm:$0xff] (!%p1288_p13) }
 0x15b   : > { %v1338_v58 = vpop.f32.mrb[20].mxu0  ;;  %1061 = vst [vmem:[%s1766_s21 + $0x8] sm:$0xff] (!%p1288_p13), %v1045_v50  ;;  %1062 = vst [vmem:[%s1766_s21 + $0x10] sm:$0xff] (!%p1288_p13), %v1046_v51  ;;  %v1049_v54 = vld [vmem:[#allocation2 + $0x28] sm:$0xff] (!%p1288_p13) }
 0x15c   : > { %1032 = vst [vmem:[#allocation2 + $0x40] sm:$0xff] %v1016_v56  ;;  %v1017_v59 = vadd.f32 %v981_v57, %v359_v55  ;;  %v1402_v60 = vpop.f32.mrb[20].mxu1  ;;  %v1339_v61 = vpop.f32.mrb[21].mxu0  ;;  %1064 = vst [vmem:[%s1766_s21 + $0x20] sm:$0xff] (!%p1288_p13), %v1048_v53  ;;  %v1050_v55 = vld [vmem:[#allocation2 + $0x30] sm:$0xff] (!%p1288_p13) }
 0x15d   : > { %v1340_v62 = vadd.f32 %v1339_v61, %v1338_v58  ;;  %v1403_v63 = vpop.f32.mrb[21].mxu1  ;;  %v1341_v0 = vpop.f32.mrb[22].mxu0  ;;  %1065 = vst [vmem:[%s1766_s21 + $0x28] sm:$0xff] (!%p1288_p13), %v1049_v54  ;;  %v1051_v56 = vld [vmem:[#allocation2 + $0x38] sm:$0xff] (!%p1288_p13)  ;;  %1066 = vst [vmem:[%s1766_s21 + $0x30] sm:$0xff] (!%p1288_p13), %v1050_v55 }
 0x15e   : > { %1033 = vst [vmem:[#allocation2 + $0x48] sm:$0xff] %v1017_v59  ;;  %v1404_v1 = vadd.f32 %v1403_v63, %v1402_v60  ;;  %v1405_v2 = vpop.f32.mrb[22].mxu1  ;;  %v1342_v3 = vpop.f32.mrb[23].mxu0  ;;  %1067 = vst [vmem:[%s1766_s21 + $0x38] sm:$0xff] (!%p1288_p13), %v1051_v56 }
 0x15f   : > { %v1343_v5 = vadd.f32 %v1342_v3, %v1341_v0  ;;  %v1406_v6 = vpop.f32.mrb[23].mxu1 }
 0x160   : > { %v986_v7 = vadd.f32 %v1404_v1, %v1340_v62  ;;  %v1407_v8 = vadd.f32 %v1406_v6, %v1405_v2 }
 0x162   : > { %v1018_v10 = vadd.f32 %v986_v7, %v360_v4  ;;  %v989_v11 = vadd.f32 %v1407_v8, %v1343_v5 }
 0x163   : > { %v1344_v12 = vpop.f32.mrb[24].mxu0  ;;  %v1052_v57 = vld [vmem:[#allocation2 + $0x40] sm:$0xff] (!%p1288_p13) }
 0x164   : > { %1034 = vst [vmem:[#allocation2 + $0x50] sm:$0xff] %v1018_v10  ;;  %v1019_v13 = vadd.f32 %v989_v11, %v361_v9  ;;  %v1408_v14 = vpop.f32.mrb[24].mxu1  ;;  %v1345_v15 = vpop.f32.mrb[25].mxu0  ;;  %1068 = vst [vmem:[%s1766_s21 + $0x40] sm:$0xff] (!%p1288_p13), %v1052_v57 }
 0x165   : > { %v1346_v16 = vadd.f32 %v1345_v15, %v1344_v12  ;;  %v1409_v17 = vpop.f32.mrb[25].mxu1  ;;  %v1347_v18 = vpop.f32.mrb[26].mxu0  ;;  %v1053_v58 = vld [vmem:[#allocation2 + $0x48] sm:$0xff] (!%p1288_p13) }
 0x166   : > { %1035 = vst [vmem:[#allocation2 + $0x58] sm:$0xff] %v1019_v13  ;;  %v1410_v19 = vadd.f32 %v1409_v17, %v1408_v14  ;;  %v1411_v20 = vpop.f32.mrb[26].mxu1  ;;  %v1348_v21 = vpop.f32.mrb[27].mxu0  ;;  %1069 = vst [vmem:[%s1766_s21 + $0x48] sm:$0xff] (!%p1288_p13), %v1053_v58 }
 0x167   : > { %v1349_v23 = vadd.f32 %v1348_v21, %v1347_v18  ;;  %v1412_v24 = vpop.f32.mrb[27].mxu1 }
 0x168   : > { %v994_v25 = vadd.f32 %v1410_v19, %v1346_v16  ;;  %v1413_v26 = vadd.f32 %v1412_v24, %v1411_v20 }
 0x16a   : > { %v1020_v28 = vadd.f32 %v994_v25, %v362_v22  ;;  %v997_v29 = vadd.f32 %v1413_v26, %v1349_v23 }
 0x16b   : > { %v1350_v30 = vpop.f32.mrb[28].mxu0  ;;  %v1054_v59 = vld [vmem:[#allocation2 + $0x50] sm:$0xff] (!%p1288_p13) }
 0x16c   : > { %1036 = vst [vmem:[#allocation2 + $0x60] sm:$0xff] %v1020_v28  ;;  %v1021_v31 = vadd.f32 %v997_v29, %v363_v27  ;;  %v1414_v32 = vpop.f32.mrb[28].mxu1  ;;  %v1351_v33 = vpop.f32.mrb[29].mxu0  ;;  %1070 = vst [vmem:[%s1766_s21 + $0x50] sm:$0xff] (!%p1288_p13), %v1054_v59 }
 0x16d   : > { %v1352_v34 = vadd.f32 %v1351_v33, %v1350_v30  ;;  %v1415_v35 = vpop.f32.mrb[29].mxu1  ;;  %v1353_v36 = vpop.f32.mrb[30].mxu0  ;;  %v1055_v60 = vld [vmem:[#allocation2 + $0x58] sm:$0xff] (!%p1288_p13) }
 0x16e   : > { %1037 = vst [vmem:[#allocation2 + $0x68] sm:$0xff] %v1021_v31  ;;  %v1416_v37 = vadd.f32 %v1415_v35, %v1414_v32  ;;  %v1417_v38 = vpop.f32.mrb[30].mxu1  ;;  %v1354_v39 = vpop.f32.mrb[31].mxu0  ;;  %1071 = vst [vmem:[%s1766_s21 + $0x58] sm:$0xff] (!%p1288_p13), %v1055_v60 }
 0x16f   : > { %v1355_v41 = vadd.f32 %v1354_v39, %v1353_v36  ;;  %v1418_v42 = vpop.f32.mrb[31].mxu1 }
 0x170   : > { %v1002_v43 = vadd.f32 %v1416_v37, %v1352_v34  ;;  %v1419_v44 = vadd.f32 %v1418_v42, %v1417_v38  ;;  %1043 = sbr.rel (%p1288_p13) target bundleno = 383 (0x17f), region = 59 }
 0x172   : > { %v1022_v46 = vadd.f32 %v1002_v43, %v364_v40  ;;  %v1005_v47 = vadd.f32 %v1419_v44, %v1355_v41 }
 0x173   : > { %v1056_v61 = vld [vmem:[#allocation2 + $0x60] sm:$0xff] (!%p1288_p13) }
 0x174   : > { %1038 = vst [vmem:[#allocation2 + $0x70] sm:$0xff] %v1022_v46  ;;  %v1023_v48 = vadd.f32 %v1005_v47, %v365_v45  ;;  %1072 = vst [vmem:[%s1766_s21 + $0x60] sm:$0xff] (!%p1288_p13), %v1056_v61 }
 0x175   : > { %v1057_v62 = vld [vmem:[#allocation2 + $0x68] sm:$0xff] (!%p1288_p13) }
 0x176   : > { %1039 = vst [vmem:[#allocation2 + $0x78] sm:$0xff] %v1023_v48  ;;  %1073 = vst [vmem:[%s1766_s21 + $0x68] sm:$0xff] (!%p1288_p13), %v1057_v62 }
 0x17b   : > { %v1058_v63 = vld [vmem:[#allocation2 + $0x70] sm:$0xff] }
 0x17c   : > { %1074 = vst [vmem:[%s1766_s21 + $0x70] sm:$0xff] %v1058_v63 }
 0x17d   : > { %v1059_v0 = vld [vmem:[#allocation2 + $0x78] sm:$0xff] }
 0x17e   : > { %1075 = vst [vmem:[%s1766_s21 + $0x78] sm:$0xff] %v1059_v0 }
 0x17f PF: > { %s12_s15 = sadd.s32 1, %s1611_s15   ;;  %s1881_s9 = smov %s1591_s10 }
 0x180   : > { %p9_p0 = scmp.ge.s32.totalorder %s12_s15, 10   ;;  %s1882_s10 = smov %s1680_s22 }
 0x181   : > { %s1883_s11 = smov %s1603_s13  ;;  %s1884_s12 = smov %s1607_s14 }
 0x182   : > { %s1885_s13 = smov %s1888_s16  ;;  %s1886_s14 = smov %s1892_s17 }
 0x183   :  { %11 = sbr.rel (!%p9_p0) target bundleno = 4 (0x4), region = 97 }

// kernel: generator_forward.14
= control target key start
LH: loop header
LB: loop body
LE: loop exit
PB: predicated region body
PF: predicated region fallthrough
CT: control target
= control target key end

     0   :  { %s617_s12 = smov 0   ;;  %s619_s13 = smov 0   ;;  %s724_s0 = inlined_call_operand.vmem [shape: f32[4,128,128], index: 0, kind: input, shape index: {}]   ;;  %s725_s1 = inlined_call_operand.vmem [shape: f32[1,1,128], index: 1, kind: input, shape index: {}]   ;;  %s726_s2 = inlined_call_operand.vmem [shape: f32[1,1,128], index: 2, kind: input, shape index: {}]   ;;  %s727_s3 = inlined_call_operand.vmem [shape: bf16[4,128,128], index: 3, kind: output, shape index: {}]  }
   0x1   :  { %s621_s14 = smov 0  }
   0x2 LB: > { %s25_s15 = sadd.s32 1, %s591_s13  ;;  %p459_p0 = scmp.ge.s32.totalorder %s595_s14, 1  ;;  %s595_s14 = sphi %s621_s14, %s13_s14   ;;  %s591_s13 = sphi %s619_s13, %s729_s13   ;;  %s587_s12 = sphi %s617_s12, %s728_s12  }
   0x3   : > { %p27_p1 = scmp.ge.s32.totalorder %s25_s15, 4  ;;  %p158_p2 = scmp.lt.s32.totalorder %s595_s14, 5 }
   0x5   : > { %s731_s15 = smov (%p27_p1, %s25_s15), 0  ;;  %p159_p3 = pnand %p459_p0, %p158_p2 }
   0x6   : > { %p191_p4 = scmp.lt.s32.totalorder (!%p159_p3), %s587_s12, 3  ;;  %v641_v0 = vld [vmem:[%s725_s1] ss:$0 sm:$0xff] (!%p159_p3) }
   0x7   : > { %162 = sbr.rel (%p159_p3) target bundleno = 38 (0x26), region = 32  ;;  %v651_v1 = vld [vmem:[%s726_s2] ss:$0 sm:$0xff] (!%p159_p3) }
   0xe   : > { %s733_s12 = smov (!%p191_p4, %s587_s12), 3 }
   0xf   : > { %s484_s16 = sshll.u32 %s733_s12, 7  ;;  %s485_s24 = sshll.u32 %s733_s12, 6 }
  0x10   : > { %s646_s21 = scalar_lea.vmem %s724_s0, %s484_s16  ;;  %s683_s27 = scalar_lea.vmem %s727_s3, %s485_s24 }
  0x11   : > { %v210_v2 = vld [vmem:[%s646_s21] sm:$0xff]  ;;  %v211_v3 = vld [vmem:[%s646_s21 + $0x8] sm:$0xff]  ;;  %v212_v4 = vld [vmem:[%s646_s21 + $0x10] sm:$0xff] }
  0x12   : > { %v233_v5 = vmul.f32 %v641_v0, %v210_v2  ;;  %v234_v6 = vmul.f32 %v641_v0, %v211_v3  ;;  %v213_v7 = vld [vmem:[%s646_s21 + $0x18] sm:$0xff]  ;;  %v235_v8 = vmul.f32 %v641_v0, %v212_v4  ;;  %v214_v9 = vld [vmem:[%s646_s21 + $0x20] sm:$0xff]  ;;  %v215_v10 = vld [vmem:[%s646_s21 + $0x28] sm:$0xff] }
  0x13   : > { %v236_v11 = vmul.f32 %v641_v0, %v213_v7  ;;  %v237_v12 = vmul.f32 %v641_v0, %v214_v9  ;;  %v238_v13 = vmul.f32 %v641_v0, %v215_v10  ;;  %v216_v14 = vld [vmem:[%s646_s21 + $0x30] sm:$0xff]  ;;  %v217_v15 = vld [vmem:[%s646_s21 + $0x38] sm:$0xff]  ;;  %v218_v24 = vld [vmem:[%s646_s21 + $0x40] sm:$0xff] }
  0x14   : > { %v256_v16 = vadd.f32 %v651_v1, %v233_v5  ;;  %v257_v17 = vadd.f32 %v651_v1, %v234_v6  ;;  %v258_v18 = vadd.f32 %v651_v1, %v235_v8  ;;  %v239_v19 = vmul.f32 %v641_v0, %v216_v14  ;;  %v219_v25 = vld [vmem:[%s646_s21 + $0x48] sm:$0xff]  ;;  %v220_v30 = vld [vmem:[%s646_s21 + $0x50] sm:$0xff]  ;;  %v221_v35 = vld [vmem:[%s646_s21 + $0x58] sm:$0xff] }
  0x15   : > { %v259_v20 = vadd.f32 %v651_v1, %v236_v11  ;;  %v260_v21 = vadd.f32 %v651_v1, %v237_v12  ;;  %v261_v22 = vadd.f32 %v651_v1, %v238_v13  ;;  %v240_v23 = vmul.f32 %v641_v0, %v217_v15  ;;  %v222_v36 = vld [vmem:[%s646_s21 + $0x60] sm:$0xff]  ;;  %v223_v41 = vld [vmem:[%s646_s21 + $0x68] sm:$0xff]  ;;  %v224_v42 = vld [vmem:[%s646_s21 + $0x70] sm:$0xff] }
  0x16   : > { %v272_v26 = vmax.f32 %v256_v16, 0.0  ;;  %v273_v27 = vmax.f32 %v257_v17, 0.0  ;;  %v274_v28 = vmax.f32 %v258_v18, 0.0  ;;  %v262_v29 = vadd.f32 %v651_v1, %v239_v19  ;;  %v225_v51 = vld [vmem:[%s646_s21 + $0x78] sm:$0xff] }
  0x17   : > { %v275_v31 = vmax.f32 %v259_v20, 0.0  ;;  %v276_v32 = vmax.f32 %v260_v21, 0.0  ;;  %v277_v33 = vmax.f32 %v261_v22, 0.0  ;;  %v263_v34 = vadd.f32 %v651_v1, %v240_v23 }
  0x18   : > { %v505_v37 = vpack.c.bf16 %v273_v27, %v272_v26  ;;  %v278_v38 = vmax.f32 %v262_v29, 0.0  ;;  %v241_v39 = vmul.f32 %v641_v0, %v218_v24  ;;  %v242_v40 = vmul.f32 %v641_v0, %v219_v25 }
  0x19   : > { %v510_v43 = vpack.c.bf16 %v275_v31, %v274_v28  ;;  %v515_v44 = vpack.c.bf16 %v277_v33, %v276_v32  ;;  %v279_v45 = vmax.f32 %v263_v34, 0.0  ;;  %v243_v46 = vmul.f32 %v641_v0, %v220_v30 }
  0x1a   : > { %506 = vst [vmem:[%s683_s27] sm:$0xff] %v505_v37   ;;  %v264_v47 = vadd.f32 %v651_v1, %v241_v39  ;;  %v265_v48 = vadd.f32 %v651_v1, %v242_v40  ;;  %v244_v49 = vmul.f32 %v641_v0, %v221_v35  ;;  %v245_v50 = vmul.f32 %v641_v0, %v222_v36 }
  0x1b   : > { %542 = vst [vmem:[%s683_s27 + $0x8] sm:$0xff] %v510_v43   ;;  %543 = vst [vmem:[%s683_s27 + $0x10] sm:$0xff] %v515_v44   ;;  %v520_v52 = vpack.c.bf16 %v279_v45, %v278_v38  ;;  %v266_v53 = vadd.f32 %v651_v1, %v243_v46  ;;  %v246_v54 = vmul.f32 %v641_v0, %v223_v41 }
  0x1c   : > { %v247_v55 = vmul.f32 %v641_v0, %v224_v42  ;;  %v280_v56 = vmax.f32 %v264_v47, 0.0  ;;  %v281_v57 = vmax.f32 %v265_v48, 0.0  ;;  %v267_v58 = vadd.f32 %v651_v1, %v244_v49 }
  0x1d   : > { %v268_v59 = vadd.f32 %v651_v1, %v245_v50  ;;  %544 = vst [vmem:[%s683_s27 + $0x18] sm:$0xff] %v520_v52   ;;  %v282_v60 = vmax.f32 %v266_v53, 0.0  ;;  %v269_v61 = vadd.f32 %v651_v1, %v246_v54  ;;  %v248_v62 = vmul.f32 %v641_v0, %v225_v51 }
  0x1e   : > { %v270_v63 = vadd.f32 %v651_v1, %v247_v55  ;;  %v525_v2 = vpack.c.bf16 %v281_v57, %v280_v56  ;;  %v283_v3 = vmax.f32 %v267_v58, 0.0 }
  0x1f   : > { %v284_v4 = vmax.f32 %v268_v59, 0.0  ;;  %v285_v5 = vmax.f32 %v269_v61, 0.0  ;;  %v271_v6 = vadd.f32 %v651_v1, %v248_v62 }
  0x20   : > { %v286_v7 = vmax.f32 %v270_v63, 0.0  ;;  %545 = vst [vmem:[%s683_s27 + $0x20] sm:$0xff] %v525_v2   ;;  %v530_v8 = vpack.c.bf16 %v283_v3, %v282_v60 }
  0x21   : > { %v535_v9 = vpack.c.bf16 %v285_v5, %v284_v4  ;;  %v287_v10 = vmax.f32 %v271_v6, 0.0 }
  0x22   : > { %546 = vst [vmem:[%s683_s27 + $0x28] sm:$0xff] %v530_v8  }
  0x23   : > { %547 = vst [vmem:[%s683_s27 + $0x30] sm:$0xff] %v535_v9   ;;  %v540_v11 = vpack.c.bf16 %v287_v10, %v286_v7 }
  0x25   : > { %548 = vst [vmem:[%s683_s27 + $0x38] sm:$0xff] %v540_v11  }
  0x26 PF: > { %s13_s14 = sadd.s32 1, %s595_s14   ;;  %s728_s12 = smov %s591_s13 }
  0x27   : > { %p10_p5 = scmp.ge.s32.totalorder %s13_s14, 6   ;;  %s729_s13 = smov %s731_s15 }
  0x29   :  { %12 = sbr.rel (!%p10_p5) target bundleno = 2 (0x2), region = 62 }

// kernel: generator_forward.15
= control target key start
LH: loop header
LB: loop body
LE: loop exit
PB: predicated region body
PF: predicated region fallthrough
CT: control target
= control target key end

     0   :  { %s2924_s9 = smov 0   ;;  %s2926_s10 = smov 0   ;;  %s3227_s0 = inlined_call_operand.vmem [shape: bf16[4,512,512], index: 0, kind: input, shape index: {}]   ;;  %s3228_s1 = inlined_call_operand.vmem [shape: bf16[4,512,128], index: 1, kind: input, shape index: {}]   ;;  %s3229_s2 = inlined_call_operand.vmem [shape: f32[4,512,128], index: 2, kind: output, shape index: {}]  }
   0x1   :  { %s2928_s11 = smov 0  }
   0x2 LB: > { %s38_s12 = sadd.s32 1, %s2902_s10  ;;  %p2399_p0 = scmp.ge.s32.totalorder %s2906_s11, 1  ;;  %s2906_s11 = sphi %s2928_s11, %s12_s11   ;;  %s2902_s10 = sphi %s2926_s10, %s3231_s10   ;;  %s2898_s9 = sphi %s2924_s9, %s3230_s9  }
   0x3   : > { %p40_p1 = scmp.ge.s32.totalorder %s38_s12, 4  ;;  %p179_p2 = scmp.lt.s32.totalorder %s2906_s11, 5 }
   0x5   : > { %s3233_s12 = smov (%p40_p1, %s38_s12), 0  ;;  %p180_p3 = pnand %p2399_p0, %p179_p2 }
   0x6   : > { %p231_p4 = scmp.lt.s32.totalorder (!%p180_p3), %s2898_s9, 3  ;;  %v2908_v0 = vmov (!%p180_p3), 0  }
   0x7   : > { %183 = sbr.rel (%p180_p3) target bundleno = 547 (0x223), region = 28  ;;  %1428 = vmatprep.subr.bf16.mxu1 (!%p180_p3), %v2908_v0  ;;  %1717 = vmatprep.subr.bf16.mxu0 (!%p180_p3), %v2908_v0 }
   0xe   : > { %s3235_s9 = smov (!%p231_p4, %s2898_s9), 3 }
   0xf   : > { %s2569_s13 = sshll.u32 %s3235_s9, 8  ;;  %s2568_s17 = sshll.u32 %s3235_s9, 10 }
  0x10   : > { %s2950_s16 = scalar_lea.vmem %s3228_s1, %s2569_s13  ;;  %s2987_s20 = scalar_lea.vmem %s3227_s0, %s2568_s17 }
  0x11   : > { %v2660_v1 = vld [vmem:[%s2950_s16] sm:$0xff]   ;;  %v2662_v3 = vld [vmem:[%s2950_s16 + $0x8] sm:$0xff]   ;;  %v2664_v5 = vld [vmem:[%s2950_s16 + $0x10] sm:$0xff]   ;;  %s2570_s21 = sshll.u32 %s3235_s9, 9 }
  0x12   : > { %v2661_v2 = vld [vmem:[%s2950_s16 + $0x80] sm:$0xff]   ;;  %1429 = vmatpush1.bf16.msra.mxu1 %v2660_v1  ;;  %v2663_v4 = vld [vmem:[%s2950_s16 + $0x88] sm:$0xff]   ;;  %v2665_v6 = vld [vmem:[%s2950_s16 + $0x90] sm:$0xff]   ;;  %s3134_s24 = scalar_lea.vmem %s3229_s2, %s2570_s21 }
  0x13   : > { %1718 = vmatpush1.bf16.msra.mxu0 %v2661_v2  ;;  %1430 = vmatprep.subr.bf16.mxu1 %v2908_v0  ;;  %v2666_v7 = vld [vmem:[%s2950_s16 + $0x18] sm:$0xff]   ;;  %v2668_v9 = vld [vmem:[%s2950_s16 + $0x20] sm:$0xff]   ;;  %v2670_v11 = vld [vmem:[%s2950_s16 + $0x28] sm:$0xff]  }
  0x14   : > { %1719 = vmatprep.subr.bf16.mxu0 %v2908_v0  ;;  %v2667_v8 = vld [vmem:[%s2950_s16 + $0x98] sm:$0xff]   ;;  %v2669_v10 = vld [vmem:[%s2950_s16 + $0xa0] sm:$0xff]   ;;  %v2671_v12 = vld [vmem:[%s2950_s16 + $0xa8] sm:$0xff]  }
  0x15   : > { %v2672_v13 = vld [vmem:[%s2950_s16 + $0x30] sm:$0xff]   ;;  %v2674_v15 = vld [vmem:[%s2950_s16 + $0x38] sm:$0xff]   ;;  %v2676_v17 = vld [vmem:[%s2950_s16 + $0x40] sm:$0xff]  }
  0x16   : > { %1431 = vmatpush1.bf16.msra.mxu1 %v2662_v3  ;;  %v2673_v14 = vld [vmem:[%s2950_s16 + $0xb0] sm:$0xff]   ;;  %v2675_v16 = vld [vmem:[%s2950_s16 + $0xb8] sm:$0xff]   ;;  %v2677_v18 = vld [vmem:[%s2950_s16 + $0xc0] sm:$0xff]  }
  0x17   : > { %1720 = vmatpush1.bf16.msra.mxu0 %v2663_v4  ;;  %1432 = vmatprep.subr.bf16.mxu1 %v2908_v0  ;;  %v2694_v19 = vld [vmem:[%s2987_s20 + $0x4] ss:$16 sps:$4 sm:$0xff]   ;;  %v2678_v20 = vld [vmem:[%s2950_s16 + $0x48] sm:$0xff]   ;;  %v2682_v25 = vld [vmem:[%s2950_s16 + $0x58] sm:$0xff]  }
  0x18   : > { %1721 = vmatprep.subr.bf16.mxu0 %v2908_v0  ;;  %v2697_v21 = vld [vmem:[%s2987_s20 + $0xc] ss:$16 sps:$4 sm:$0xff]   ;;  %1460 = vmatprep.mubr.bf16.mxu1 %v2694_v19  ;;  %v2680_v23 = vld [vmem:[%s2950_s16 + $0x50] sm:$0xff]   ;;  %v2684_v27 = vld [vmem:[%s2950_s16 + $0x60] sm:$0xff]  }
  0x19   : > { %v2679_v22 = vld [vmem:[%s2950_s16 + $0xc8] sm:$0xff]   ;;  %1749 = vmatprep.mubr.bf16.mxu0 %v2697_v21  ;;  %v2681_v24 = vld [vmem:[%s2950_s16 + $0xd0] sm:$0xff]   ;;  %v2683_v26 = vld [vmem:[%s2950_s16 + $0xd8] sm:$0xff]  }
  0x1a   : > { %1433 = vmatpush1.bf16.msra.mxu1 %v2664_v5  ;;  %v2685_v28 = vld [vmem:[%s2950_s16 + $0xe0] sm:$0xff]   ;;  %v2686_v29 = vld [vmem:[%s2950_s16 + $0x68] sm:$0xff]   ;;  %v2688_v31 = vld [vmem:[%s2950_s16 + $0x70] sm:$0xff]  }
  0x1b   : > { %1722 = vmatpush1.bf16.msra.mxu0 %v2665_v6  ;;  %1434 = vmatprep.subr.bf16.mxu1 %v2908_v0  ;;  %v2687_v30 = vld [vmem:[%s2950_s16 + $0xe8] sm:$0xff]   ;;  %v2689_v32 = vld [vmem:[%s2950_s16 + $0xf0] sm:$0xff]   ;;  %v2690_v33 = vld [vmem:[%s2950_s16 + $0x78] sm:$0xff]  }
  0x1c   : > { %1723 = vmatprep.subr.bf16.mxu0 %v2908_v0  ;;  %v2691_v34 = vld [vmem:[%s2950_s16 + $0xf8] sm:$0xff]   ;;  %v2692_v35 = vld [vmem:[%s2987_s20] ss:$16 sps:$4 sm:$0xff]   ;;  %v2698_v37 = vld [vmem:[%s2987_s20 + $0x24] ss:$16 sps:$4 sm:$0xff]  }
  0x1d   : > { %v2695_v36 = vld [vmem:[%s2987_s20 + $0x8] ss:$16 sps:$4 sm:$0xff]   ;;  %v2700_v38 = vld [vmem:[%s2987_s20 + $0x2c] ss:$16 sps:$4 sm:$0xff]   ;;  %v2702_v39 = vld [vmem:[%s2987_s20 + $0x20] ss:$16 sps:$4 sm:$0xff]  }
  0x1e   : > { %1435 = vmatpush1.bf16.msra.mxu1 %v2666_v7  ;;  %v2703_v40 = vld [vmem:[%s2987_s20 + $0x28] ss:$16 sps:$4 sm:$0xff]   ;;  %v2704_v41 = vld [vmem:[%s2987_s20 + $0x44] ss:$16 sps:$4 sm:$0xff]   ;;  %v2706_v42 = vld [vmem:[%s2987_s20 + $0x4c] ss:$16 sps:$4 sm:$0xff]  }
  0x1f   : > { %1724 = vmatpush1.bf16.msra.mxu0 %v2667_v8  ;;  %1436 = vmatprep.subr.bf16.mxu1 %v2908_v0  ;;  %v2708_v43 = vld [vmem:[%s2987_s20 + $0x40] ss:$16 sps:$4 sm:$0xff]   ;;  %v2709_v44 = vld [vmem:[%s2987_s20 + $0x48] ss:$16 sps:$4 sm:$0xff]   ;;  %v2710_v45 = vld [vmem:[%s2987_s20 + $0x64] ss:$16 sps:$4 sm:$0xff]  }
  0x20   : > { %1725 = vmatprep.subr.bf16.mxu0 %v2908_v0  ;;  %v2712_v46 = vld [vmem:[%s2987_s20 + $0x6c] ss:$16 sps:$4 sm:$0xff]   ;;  %v2714_v47 = vld [vmem:[%s2987_s20 + $0x60] ss:$16 sps:$4 sm:$0xff]   ;;  %v2715_v48 = vld [vmem:[%s2987_s20 + $0x68] ss:$16 sps:$4 sm:$0xff]  }
  0x21   : > { %v2716_v49 = vld [vmem:[%s2987_s20 + $0x84] ss:$16 sps:$4 sm:$0xff]   ;;  %v2718_v50 = vld [vmem:[%s2987_s20 + $0x8c] ss:$16 sps:$4 sm:$0xff]   ;;  %v2720_v51 = vld [vmem:[%s2987_s20 + $0x80] ss:$16 sps:$4 sm:$0xff]  }
  0x22   : > { %1437 = vmatpush1.bf16.msra.mxu1 %v2668_v9  ;;  %v2721_v52 = vld [vmem:[%s2987_s20 + $0x88] ss:$16 sps:$4 sm:$0xff]   ;;  %v2722_v53 = vld [vmem:[%s2987_s20 + $0xa4] ss:$16 sps:$4 sm:$0xff]   ;;  %v2724_v54 = vld [vmem:[%s2987_s20 + $0xac] ss:$16 sps:$4 sm:$0xff]  }
  0x23   : > { %1726 = vmatpush1.bf16.msra.mxu0 %v2669_v10  ;;  %1438 = vmatprep.subr.bf16.mxu1 %v2908_v0  ;;  %v2726_v55 = vld [vmem:[%s2987_s20 + $0xa0] ss:$16 sps:$4 sm:$0xff]   ;;  %v2727_v56 = vld [vmem:[%s2987_s20 + $0xa8] ss:$16 sps:$4 sm:$0xff]   ;;  %v2728_v57 = vld [vmem:[%s2987_s20 + $0xc4] ss:$16 sps:$4 sm:$0xff]  }
  0x24   : > { %1727 = vmatprep.subr.bf16.mxu0 %v2908_v0  ;;  %v2730_v58 = vld [vmem:[%s2987_s20 + $0xcc] ss:$16 sps:$4 sm:$0xff]   ;;  %v2732_v59 = vld [vmem:[%s2987_s20 + $0xc0] ss:$16 sps:$4 sm:$0xff]   ;;  %v2733_v60 = vld [vmem:[%s2987_s20 + $0xc8] ss:$16 sps:$4 sm:$0xff]  }
  0x25   : > { %v2734_v61 = vld [vmem:[%s2987_s20 + $0xe4] ss:$16 sps:$4 sm:$0xff]   ;;  %v2736_v62 = vld [vmem:[%s2987_s20 + $0xec] ss:$16 sps:$4 sm:$0xff]   ;;  %v2738_v63 = vld [vmem:[%s2987_s20 + $0xe0] ss:$16 sps:$4 sm:$0xff]  }
  0x26   : > { %1439 = vmatpush1.bf16.msra.mxu1 %v2670_v11  ;;  %v2740_v1 = vld [vmem:[%s2987_s20 + $0x104] ss:$16 sps:$4 sm:$0xff]   ;;  %v2742_v2 = vld [vmem:[%s2987_s20 + $0x10c] ss:$16 sps:$4 sm:$0xff]   ;;  %v2744_v3 = vld [vmem:[%s2987_s20 + $0x100] ss:$16 sps:$4 sm:$0xff]  }
  0x27   : > { %1728 = vmatpush1.bf16.msra.mxu0 %v2671_v12  ;;  %1440 = vmatprep.subr.bf16.mxu1 %v2908_v0  ;;  %v2745_v4 = vld [vmem:[%s2987_s20 + $0x108] ss:$16 sps:$4 sm:$0xff]   ;;  %v2746_v5 = vld [vmem:[%s2987_s20 + $0x124] ss:$16 sps:$4 sm:$0xff]   ;;  %v2748_v6 = vld [vmem:[%s2987_s20 + $0x12c] ss:$16 sps:$4 sm:$0xff]  }
  0x28   : > { %1729 = vmatprep.subr.bf16.mxu0 %v2908_v0  ;;  %v2750_v7 = vld [vmem:[%s2987_s20 + $0x120] ss:$16 sps:$4 sm:$0xff]   ;;  %v2751_v8 = vld [vmem:[%s2987_s20 + $0x128] ss:$16 sps:$4 sm:$0xff]   ;;  %v2752_v9 = vld [vmem:[%s2987_s20 + $0x144] ss:$16 sps:$4 sm:$0xff]  }
  0x29   : > { %v2754_v10 = vld [vmem:[%s2987_s20 + $0x14c] ss:$16 sps:$4 sm:$0xff]   ;;  %v2756_v11 = vld [vmem:[%s2987_s20 + $0x140] ss:$16 sps:$4 sm:$0xff]   ;;  %v2757_v12 = vld [vmem:[%s2987_s20 + $0x148] ss:$16 sps:$4 sm:$0xff]  }
  0x2a   : > { %1441 = vmatpush1.bf16.msra.mxu1 %v2672_v13  ;;  %v2758_v13 = vld [vmem:[%s2987_s20 + $0x164] ss:$16 sps:$4 sm:$0xff]   ;;  %v2768_v19 = vld [vmem:[%s2987_s20 + $0x180] ss:$16 sps:$4 sm:$0xff]  }
  0x2b   : > { %1730 = vmatpush1.bf16.msra.mxu0 %v2673_v14  ;;  %1442 = vmatprep.subr.bf16.mxu1 %v2908_v0  ;;  %v2760_v14 = vld [vmem:[%s2987_s20 + $0x16c] ss:$16 sps:$4 sm:$0xff]   ;;  %v2770_v21 = vld [vmem:[%s2987_s20 + $0x1a4] ss:$16 sps:$4 sm:$0xff]  }
  0x2c   : > { %1731 = vmatprep.subr.bf16.mxu0 %v2908_v0 }
  0x2e   : > { %1443 = vmatpush1.bf16.msra.mxu1 %v2674_v15  ;;  %v2762_v15 = vld [vmem:[%s2987_s20 + $0x160] ss:$16 sps:$4 sm:$0xff]  }
  0x2f   : > { %1732 = vmatpush1.bf16.msra.mxu0 %v2675_v16  ;;  %1444 = vmatprep.subr.bf16.mxu1 %v2908_v0  ;;  %v2763_v16 = vld [vmem:[%s2987_s20 + $0x168] ss:$16 sps:$4 sm:$0xff]  }
  0x30   : > { %1733 = vmatprep.subr.bf16.mxu0 %v2908_v0 }
  0x32   : > { %1445 = vmatpush1.bf16.msra.mxu1 %v2676_v17  ;;  %v2764_v17 = vld [vmem:[%s2987_s20 + $0x184] ss:$16 sps:$4 sm:$0xff]  }
  0x33   : > { %1734 = vmatpush1.bf16.msra.mxu0 %v2677_v18  ;;  %1446 = vmatprep.subr.bf16.mxu1 %v2908_v0  ;;  %v2766_v18 = vld [vmem:[%s2987_s20 + $0x18c] ss:$16 sps:$4 sm:$0xff]  }
  0x34   : > { %1735 = vmatprep.subr.bf16.mxu0 %v2908_v0 }
  0x36   : > { %1447 = vmatpush1.bf16.msra.mxu1 %v2678_v20  ;;  %v2769_v20 = vld [vmem:[%s2987_s20 + $0x188] ss:$16 sps:$4 sm:$0xff]  }
  0x37   : > { %1736 = vmatpush1.bf16.msra.mxu0 %v2679_v22  ;;  %1448 = vmatprep.subr.bf16.mxu1 %v2908_v0  ;;  %v2772_v22 = vld [vmem:[%s2987_s20 + $0x1ac] ss:$16 sps:$4 sm:$0xff]  }
  0x38   : > { %1737 = vmatprep.subr.bf16.mxu0 %v2908_v0 }
  0x3a   : > { %1449 = vmatpush1.bf16.msra.mxu1 %v2680_v23  ;;  %v2774_v23 = vld [vmem:[%s2987_s20 + $0x1a0] ss:$16 sps:$4 sm:$0xff]  }
  0x3b   : > { %1738 = vmatpush1.bf16.msra.mxu0 %v2681_v24  ;;  %1450 = vmatprep.subr.bf16.mxu1 %v2908_v0  ;;  %v2775_v24 = vld [vmem:[%s2987_s20 + $0x1a8] ss:$16 sps:$4 sm:$0xff]  }
  0x3c   : > { %1739 = vmatprep.subr.bf16.mxu0 %v2908_v0 }
  0x3e   : > { %1451 = vmatpush1.bf16.msra.mxu1 %v2682_v25  ;;  %v2776_v25 = vld [vmem:[%s2987_s20 + $0x1c4] ss:$16 sps:$4 sm:$0xff]  }
  0x3f   : > { %1740 = vmatpush1.bf16.msra.mxu0 %v2683_v26  ;;  %1452 = vmatprep.subr.bf16.mxu1 %v2908_v0  ;;  %v2778_v26 = vld [vmem:[%s2987_s20 + $0x1cc] ss:$16 sps:$4 sm:$0xff]  }
  0x40   : > { %1741 = vmatprep.subr.bf16.mxu0 %v2908_v0 }
  0x42   : > { %1453 = vmatpush1.bf16.msra.mxu1 %v2684_v27  ;;  %v2780_v27 = vld [vmem:[%s2987_s20 + $0x1c0] ss:$16 sps:$4 sm:$0xff]  }
  0x43   : > { %1742 = vmatpush1.bf16.msra.mxu0 %v2685_v28  ;;  %1454 = vmatprep.subr.bf16.mxu1 %v2908_v0  ;;  %v2781_v28 = vld [vmem:[%s2987_s20 + $0x1c8] ss:$16 sps:$4 sm:$0xff]  }
  0x44   : > { %1743 = vmatprep.subr.bf16.mxu0 %v2908_v0 }
  0x46   : > { %1455 = vmatpush1.bf16.msra.mxu1 %v2686_v29  ;;  %v2782_v29 = vld [vmem:[%s2987_s20 + $0x1e4] ss:$16 sps:$4 sm:$0xff]  }
  0x47   : > { %1744 = vmatpush1.bf16.msra.mxu0 %v2687_v30  ;;  %1456 = vmatprep.subr.bf16.mxu1 %v2908_v0  ;;  %v2784_v30 = vld [vmem:[%s2987_s20 + $0x1ec] ss:$16 sps:$4 sm:$0xff]  }
  0x48   : > { %1745 = vmatprep.subr.bf16.mxu0 %v2908_v0 }
  0x4a   : > { %1457 = vmatpush1.bf16.msra.mxu1 %v2688_v31  ;;  %v2786_v31 = vld [vmem:[%s2987_s20 + $0x1e0] ss:$16 sps:$4 sm:$0xff]  }
  0x4b   : > { %1746 = vmatpush1.bf16.msra.mxu0 %v2689_v32  ;;  %1458 = vmatprep.subr.bf16.mxu1 %v2908_v0  ;;  %v2787_v32 = vld [vmem:[%s2987_s20 + $0x1e8] ss:$16 sps:$4 sm:$0xff]  }
  0x4c   : > { %1747 = vmatprep.subr.bf16.mxu0 %v2908_v0  ;;  %v2739_v0 = vld [vmem:[%s2987_s20 + $0xe8] ss:$16 sps:$4 sm:$0xff]  }
  0x4e   : > { %1459 = vmatpush1.bf16.msra.mxu1 %v2690_v33  ;;  %v2788_v33 = vld [vmem:[%s2987_s20 + $0x204] ss:$16 sps:$4 sm:$0xff]  }
  0x4f   : > { %1748 = vmatpush1.bf16.msra.mxu0 %v2691_v34  ;;  %v2790_v34 = vld [vmem:[%s2987_s20 + $0x20c] ss:$16 sps:$4 sm:$0xff]  }
  0x51   : > { %1461 = vmatmul.mubr.bf16.vlgmr.msra.gmra.mrb[0].mxu1 %v2692_v35  ;;  %v2792_v35 = vld [vmem:[%s2987_s20 + $0x200] ss:$16 sps:$4 sm:$0xff]  }
  0x52   : > { %1750 = vmatmul.mubr.bf16.vlgmr.msra.gmra.mrb[0].mxu0 %v2695_v36  ;;  %1468 = vmatprep.mubr.bf16.mxu1 %v2698_v37  ;;  %v2793_v36 = vld [vmem:[%s2987_s20 + $0x208] ss:$16 sps:$4 sm:$0xff]   ;;  %v2794_v37 = vld [vmem:[%s2987_s20 + $0x224] ss:$16 sps:$4 sm:$0xff]  }
  0x53   : > { %1757 = vmatprep.mubr.bf16.mxu0 %v2700_v38  ;;  %v2796_v38 = vld [vmem:[%s2987_s20 + $0x22c] ss:$16 sps:$4 sm:$0xff]  }
  0x59   : > { %1469 = vmatmul.mubr.bf16.gmra.mrb[4].mxu1 %v2702_v39  ;;  %v2798_v39 = vld [vmem:[%s2987_s20 + $0x220] ss:$16 sps:$4 sm:$0xff]  }
  0x5a   : > { %1758 = vmatmul.mubr.bf16.gmra.mrb[4].mxu0 %v2703_v40  ;;  %1476 = vmatprep.mubr.bf16.mxu1 %v2704_v41  ;;  %v2799_v40 = vld [vmem:[%s2987_s20 + $0x228] ss:$16 sps:$4 sm:$0xff]   ;;  %v2800_v41 = vld [vmem:[%s2987_s20 + $0x244] ss:$16 sps:$4 sm:$0xff]  }
  0x5b   : > { %1765 = vmatprep.mubr.bf16.mxu0 %v2706_v42  ;;  %v2802_v42 = vld [vmem:[%s2987_s20 + $0x24c] ss:$16 sps:$4 sm:$0xff]  }
  0x61   : > { %1477 = vmatmul.mubr.bf16.gmra.mrb[8].mxu1 %v2708_v43  ;;  %v2804_v43 = vld [vmem:[%s2987_s20 + $0x240] ss:$16 sps:$4 sm:$0xff]  }
  0x62   : > { %1766 = vmatmul.mubr.bf16.gmra.mrb[8].mxu0 %v2709_v44  ;;  %1484 = vmatprep.mubr.bf16.mxu1 %v2710_v45  ;;  %v2805_v44 = vld [vmem:[%s2987_s20 + $0x248] ss:$16 sps:$4 sm:$0xff]   ;;  %v2806_v45 = vld [vmem:[%s2987_s20 + $0x264] ss:$16 sps:$4 sm:$0xff]  }
  0x63   : > { %1773 = vmatprep.mubr.bf16.mxu0 %v2712_v46  ;;  %v2808_v46 = vld [vmem:[%s2987_s20 + $0x26c] ss:$16 sps:$4 sm:$0xff]  }
  0x69   : > { %1485 = vmatmul.mubr.bf16.gmra.mrb[12].mxu1 %v2714_v47  ;;  %v2810_v47 = vld [vmem:[%s2987_s20 + $0x260] ss:$16 sps:$4 sm:$0xff]  }
  0x6a   : > { %1774 = vmatmul.mubr.bf16.gmra.mrb[12].mxu0 %v2715_v48  ;;  %1492 = vmatprep.mubr.bf16.mxu1 %v2716_v49  ;;  %v2811_v48 = vld [vmem:[%s2987_s20 + $0x268] ss:$16 sps:$4 sm:$0xff]   ;;  %v2812_v49 = vld [vmem:[%s2987_s20 + $0x284] ss:$16 sps:$4 sm:$0xff]  }
  0x6b   : > { %1781 = vmatprep.mubr.bf16.mxu0 %v2718_v50  ;;  %v2814_v50 = vld [vmem:[%s2987_s20 + $0x28c] ss:$16 sps:$4 sm:$0xff]  }
  0x71   : > { %1493 = vmatmul.mubr.bf16.gmra.mrb[16].mxu1 %v2720_v51  ;;  %v2816_v51 = vld [vmem:[%s2987_s20 + $0x280] ss:$16 sps:$4 sm:$0xff]  }
  0x72   : > { %1782 = vmatmul.mubr.bf16.gmra.mrb[16].mxu0 %v2721_v52  ;;  %1500 = vmatprep.mubr.bf16.mxu1 %v2722_v53  ;;  %v2817_v52 = vld [vmem:[%s2987_s20 + $0x288] ss:$16 sps:$4 sm:$0xff]   ;;  %v2818_v53 = vld [vmem:[%s2987_s20 + $0x2a4] ss:$16 sps:$4 sm:$0xff]  }
  0x73   : > { %1789 = vmatprep.mubr.bf16.mxu0 %v2724_v54  ;;  %v2820_v54 = vld [vmem:[%s2987_s20 + $0x2ac] ss:$16 sps:$4 sm:$0xff]  }
  0x79   : > { %1501 = vmatmul.mubr.bf16.gmra.mrb[20].mxu1 %v2726_v55  ;;  %v2822_v55 = vld [vmem:[%s2987_s20 + $0x2a0] ss:$16 sps:$4 sm:$0xff]  }
  0x7a   : > { %1790 = vmatmul.mubr.bf16.gmra.mrb[20].mxu0 %v2727_v56  ;;  %1508 = vmatprep.mubr.bf16.mxu1 %v2728_v57  ;;  %v2823_v56 = vld [vmem:[%s2987_s20 + $0x2a8] ss:$16 sps:$4 sm:$0xff]   ;;  %v2824_v57 = vld [vmem:[%s2987_s20 + $0x2c4] ss:$16 sps:$4 sm:$0xff]  }
  0x7b   : > { %1797 = vmatprep.mubr.bf16.mxu0 %v2730_v58  ;;  %v2826_v58 = vld [vmem:[%s2987_s20 + $0x2cc] ss:$16 sps:$4 sm:$0xff]  }
  0x81   : > { %1509 = vmatmul.mubr.bf16.gmra.mrb[24].mxu1 %v2732_v59  ;;  %v2828_v59 = vld [vmem:[%s2987_s20 + $0x2c0] ss:$16 sps:$4 sm:$0xff]  }
  0x82   : > { %1798 = vmatmul.mubr.bf16.gmra.mrb[24].mxu0 %v2733_v60  ;;  %1516 = vmatprep.mubr.bf16.mxu1 %v2734_v61  ;;  %v2829_v60 = vld [vmem:[%s2987_s20 + $0x2c8] ss:$16 sps:$4 sm:$0xff]   ;;  %v2830_v61 = vld [vmem:[%s2987_s20 + $0x2e4] ss:$16 sps:$4 sm:$0xff]  }
  0x83   : > { %1805 = vmatprep.mubr.bf16.mxu0 %v2736_v62  ;;  %v2832_v62 = vld [vmem:[%s2987_s20 + $0x2ec] ss:$16 sps:$4 sm:$0xff]  }
  0x89   : > { %1517 = vmatmul.mubr.bf16.gmra.mrb[28].mxu1 %v2738_v63  ;;  %v2834_v63 = vld [vmem:[%s2987_s20 + $0x2e0] ss:$16 sps:$4 sm:$0xff]  }
  0x8a   : > { %1806 = vmatmul.mubr.bf16.gmra.mrb[28].mxu0 %v2739_v0  ;;  %1524 = vmatprep.mubr.bf16.mxu1 %v2740_v1  ;;  %v2835_v0 = vld [vmem:[%s2987_s20 + $0x2e8] ss:$16 sps:$4 sm:$0xff]   ;;  %v2836_v1 = vld [vmem:[%s2987_s20 + $0x304] ss:$16 sps:$4 sm:$0xff]  }
  0x8b   : > { %1813 = vmatprep.mubr.bf16.mxu0 %v2742_v2  ;;  %v2838_v2 = vld [vmem:[%s2987_s20 + $0x30c] ss:$16 sps:$4 sm:$0xff]  }
  0x91   : > { %1525 = vmatmul.mubr.bf16.gmra.mrb[32].mxu1 %v2744_v3  ;;  %v2840_v3 = vld [vmem:[%s2987_s20 + $0x300] ss:$16 sps:$4 sm:$0xff]  }
  0x92   : > { %1814 = vmatmul.mubr.bf16.gmra.mrb[32].mxu0 %v2745_v4  ;;  %1532 = vmatprep.mubr.bf16.mxu1 %v2746_v5  ;;  %v2841_v4 = vld [vmem:[%s2987_s20 + $0x308] ss:$16 sps:$4 sm:$0xff]   ;;  %v2842_v5 = vld [vmem:[%s2987_s20 + $0x324] ss:$16 sps:$4 sm:$0xff]  }
  0x93   : > { %1821 = vmatprep.mubr.bf16.mxu0 %v2748_v6  ;;  %v2844_v6 = vld [vmem:[%s2987_s20 + $0x32c] ss:$16 sps:$4 sm:$0xff]  }
  0x99   : > { %1533 = vmatmul.mubr.bf16.gmra.mrb[36].mxu1 %v2750_v7  ;;  %v2846_v7 = vld [vmem:[%s2987_s20 + $0x320] ss:$16 sps:$4 sm:$0xff]  }
  0x9a   : > { %1822 = vmatmul.mubr.bf16.gmra.mrb[36].mxu0 %v2751_v8  ;;  %1540 = vmatprep.mubr.bf16.mxu1 %v2752_v9  ;;  %v2847_v8 = vld [vmem:[%s2987_s20 + $0x328] ss:$16 sps:$4 sm:$0xff]   ;;  %v2848_v9 = vld [vmem:[%s2987_s20 + $0x344] ss:$16 sps:$4 sm:$0xff]  }
  0x9b   : > { %1829 = vmatprep.mubr.bf16.mxu0 %v2754_v10  ;;  %v2850_v10 = vld [vmem:[%s2987_s20 + $0x34c] ss:$16 sps:$4 sm:$0xff]  }
  0xa1   : > { %1541 = vmatmul.mubr.bf16.gmra.mrb[40].mxu1 %v2756_v11  ;;  %v2852_v11 = vld [vmem:[%s2987_s20 + $0x340] ss:$16 sps:$4 sm:$0xff]  }
  0xa2   : > { %1830 = vmatmul.mubr.bf16.gmra.mrb[40].mxu0 %v2757_v12  ;;  %1548 = vmatprep.mubr.bf16.mxu1 %v2758_v13  ;;  %v2853_v12 = vld [vmem:[%s2987_s20 + $0x348] ss:$16 sps:$4 sm:$0xff]   ;;  %v2854_v13 = vld [vmem:[%s2987_s20 + $0x364] ss:$16 sps:$4 sm:$0xff]  }
  0xa3   : > { %1837 = vmatprep.mubr.bf16.mxu0 %v2760_v14  ;;  %v2856_v14 = vld [vmem:[%s2987_s20 + $0x36c] ss:$16 sps:$4 sm:$0xff]  }
  0xa9   : > { %1549 = vmatmul.mubr.bf16.gmra.mrb[44].mxu1 %v2762_v15 }
  0xaa   : > { %1838 = vmatmul.mubr.bf16.gmra.mrb[44].mxu0 %v2763_v16  ;;  %1556 = vmatprep.mubr.bf16.mxu1 %v2764_v17 }
  0xab   : > { %1845 = vmatprep.mubr.bf16.mxu0 %v2766_v18  ;;  %v2858_v18 = vld [vmem:[%s2987_s20 + $0x360] ss:$16 sps:$4 sm:$0xff]  }
  0xb1   : > { %1557 = vmatmul.mubr.bf16.gmra.mrb[48].mxu1 %v2768_v19 }
  0xb2   : > { %1846 = vmatmul.mubr.bf16.gmra.mrb[48].mxu0 %v2769_v20  ;;  %1564 = vmatprep.mubr.bf16.mxu1 %v2770_v21 }
  0xb3   : > { %1853 = vmatprep.mubr.bf16.mxu0 %v2772_v22  ;;  %v2859_v22 = vld [vmem:[%s2987_s20 + $0x368] ss:$16 sps:$4 sm:$0xff]  }
  0xb9   : > { %1565 = vmatmul.mubr.bf16.gmra.mrb[52].mxu1 %v2774_v23  ;;  %v2860_v23 = vld [vmem:[%s2987_s20 + $0x384] ss:$16 sps:$4 sm:$0xff]  }
  0xba   : > { %1854 = vmatmul.mubr.bf16.gmra.mrb[52].mxu0 %v2775_v24  ;;  %1572 = vmatprep.mubr.bf16.mxu1 %v2776_v25 }
  0xbb   : > { %1861 = vmatprep.mubr.bf16.mxu0 %v2778_v26  ;;  %v2862_v26 = vld [vmem:[%s2987_s20 + $0x38c] ss:$16 sps:$4 sm:$0xff]  }
  0xc1   : > { %1573 = vmatmul.mubr.bf16.gmra.mrb[56].mxu1 %v2780_v27 }
  0xc2   : > { %1862 = vmatmul.mubr.bf16.gmra.mrb[56].mxu0 %v2781_v28  ;;  %1580 = vmatprep.mubr.bf16.mxu1 %v2782_v29 }
  0xc3   : > { %1869 = vmatprep.mubr.bf16.mxu0 %v2784_v30 }
  0xc9   : > { %1581 = vmatmul.mubr.bf16.gmra.mrb[60].mxu1 %v2786_v31 }
  0xca   : > { %1870 = vmatmul.mubr.bf16.gmra.mrb[60].mxu0 %v2787_v32  ;;  %1588 = vmatprep.mubr.bf16.mxu1 %v2788_v33  ;;  %v2864_v32 = vld [vmem:[%s2987_s20 + $0x380] ss:$16 sps:$4 sm:$0xff]  }
  0xcb   : > { %1877 = vmatprep.mubr.bf16.mxu0 %v2790_v34 }
  0xd1   : > { %1589 = vmatmul.mubr.bf16.gmra.mrb[64].mxu1 %v2792_v35 }
  0xd2   : > { %1878 = vmatmul.mubr.bf16.gmra.mrb[64].mxu0 %v2793_v36  ;;  %1596 = vmatprep.mubr.bf16.mxu1 %v2794_v37  ;;  %v2865_v36 = vld [vmem:[%s2987_s20 + $0x388] ss:$16 sps:$4 sm:$0xff]   ;;  %v2866_v37 = vld [vmem:[%s2987_s20 + $0x3a4] ss:$16 sps:$4 sm:$0xff]  }
  0xd3   : > { %1885 = vmatprep.mubr.bf16.mxu0 %v2796_v38 }
  0xd9   : > { %1597 = vmatmul.mubr.bf16.gmra.mrb[68].mxu1 %v2798_v39 }
  0xda   : > { %1886 = vmatmul.mubr.bf16.gmra.mrb[68].mxu0 %v2799_v40  ;;  %1604 = vmatprep.mubr.bf16.mxu1 %v2800_v41  ;;  %v2868_v40 = vld [vmem:[%s2987_s20 + $0x3ac] ss:$16 sps:$4 sm:$0xff]  }
  0xdb   : > { %1893 = vmatprep.mubr.bf16.mxu0 %v2802_v42 }
  0xe1   : > { %1605 = vmatmul.mubr.bf16.gmra.mrb[72].mxu1 %v2804_v43 }
  0xe2   : > { %1894 = vmatmul.mubr.bf16.gmra.mrb[72].mxu0 %v2805_v44  ;;  %1612 = vmatprep.mubr.bf16.mxu1 %v2806_v45 }
  0xe3   : > { %1901 = vmatprep.mubr.bf16.mxu0 %v2808_v46  ;;  %v2870_v46 = vld [vmem:[%s2987_s20 + $0x3a0] ss:$16 sps:$4 sm:$0xff]  }
  0xe9   : > { %1613 = vmatmul.mubr.bf16.gmra.mrb[76].mxu1 %v2810_v47 }
  0xea   : > { %1902 = vmatmul.mubr.bf16.gmra.mrb[76].mxu0 %v2811_v48  ;;  %1620 = vmatprep.mubr.bf16.mxu1 %v2812_v49 }
  0xeb   : > { %1909 = vmatprep.mubr.bf16.mxu0 %v2814_v50  ;;  %v2871_v50 = vld [vmem:[%s2987_s20 + $0x3a8] ss:$16 sps:$4 sm:$0xff]  }
  0xf1   : > { %1621 = vmatmul.mubr.bf16.gmra.mrb[80].mxu1 %v2816_v51  ;;  %v2872_v51 = vld [vmem:[%s2987_s20 + $0x3c4] ss:$16 sps:$4 sm:$0xff]  }
  0xf2   : > { %1910 = vmatmul.mubr.bf16.gmra.mrb[80].mxu0 %v2817_v52  ;;  %1628 = vmatprep.mubr.bf16.mxu1 %v2818_v53 }
  0xf3   : > { %1917 = vmatprep.mubr.bf16.mxu0 %v2820_v54  ;;  %v2874_v54 = vld [vmem:[%s2987_s20 + $0x3cc] ss:$16 sps:$4 sm:$0xff]  }
  0xf9   : > { %1629 = vmatmul.mubr.bf16.gmra.mrb[84].mxu1 %v2822_v55 }
  0xfa   : > { %1918 = vmatmul.mubr.bf16.gmra.mrb[84].mxu0 %v2823_v56  ;;  %1636 = vmatprep.mubr.bf16.mxu1 %v2824_v57 }
  0xfb   : > { %1925 = vmatprep.mubr.bf16.mxu0 %v2826_v58 }
 0x101   : > { %1637 = vmatmul.mubr.bf16.gmra.mrb[88].mxu1 %v2828_v59 }
 0x102   : > { %1926 = vmatmul.mubr.bf16.gmra.mrb[88].mxu0 %v2829_v60  ;;  %1644 = vmatprep.mubr.bf16.mxu1 %v2830_v61  ;;  %v2876_v60 = vld [vmem:[%s2987_s20 + $0x3c0] ss:$16 sps:$4 sm:$0xff]  }
 0x103   : > { %1933 = vmatprep.mubr.bf16.mxu0 %v2832_v62 }
 0x109   : > { %1645 = vmatmul.mubr.bf16.gmra.mrb[92].mxu1 %v2834_v63 }
 0x10a   : > { %1934 = vmatmul.mubr.bf16.gmra.mrb[92].mxu0 %v2835_v0  ;;  %1652 = vmatprep.mubr.bf16.mxu1 %v2836_v1  ;;  %v2877_v0 = vld [vmem:[%s2987_s20 + $0x3c8] ss:$16 sps:$4 sm:$0xff]   ;;  %v2878_v1 = vld [vmem:[%s2987_s20 + $0x3e4] ss:$16 sps:$4 sm:$0xff]  }
 0x10b   : > { %1941 = vmatprep.mubr.bf16.mxu0 %v2838_v2 }
 0x111   : > { %1653 = vmatmul.mubr.bf16.gmra.mrb[96].mxu1 %v2840_v3 }
 0x112   : > { %1942 = vmatmul.mubr.bf16.gmra.mrb[96].mxu0 %v2841_v4  ;;  %1660 = vmatprep.mubr.bf16.mxu1 %v2842_v5  ;;  %v2880_v4 = vld [vmem:[%s2987_s20 + $0x3ec] ss:$16 sps:$4 sm:$0xff]  }
 0x113   : > { %1949 = vmatprep.mubr.bf16.mxu0 %v2844_v6 }
 0x119   : > { %1661 = vmatmul.mubr.bf16.gmra.mrb[100].mxu1 %v2846_v7 }
 0x11a   : > { %1950 = vmatmul.mubr.bf16.gmra.mrb[100].mxu0 %v2847_v8  ;;  %1668 = vmatprep.mubr.bf16.mxu1 %v2848_v9 }
 0x11b   : > { %1957 = vmatprep.mubr.bf16.mxu0 %v2850_v10  ;;  %v2882_v10 = vld [vmem:[%s2987_s20 + $0x3e0] ss:$16 sps:$4 sm:$0xff]  }
 0x121   : > { %1669 = vmatmul.mubr.bf16.gmra.mrb[104].mxu1 %v2852_v11 }
 0x122   : > { %1958 = vmatmul.mubr.bf16.gmra.mrb[104].mxu0 %v2853_v12  ;;  %1676 = vmatprep.mubr.bf16.mxu1 %v2854_v13 }
 0x123   : > { %1965 = vmatprep.mubr.bf16.mxu0 %v2856_v14  ;;  %v2883_v14 = vld [vmem:[%s2987_s20 + $0x3e8] ss:$16 sps:$4 sm:$0xff]  }
 0x124   : > { %v1462_v15 = vpop.f32.mrb[0].mxu1 }
 0x125   : > { %v1751_v16 = vpop.f32.mrb[0].mxu0  ;;  %v1464_v17 = vpop.f32.mrb[1].mxu1 }
 0x126   : > { %v1752_v19 = vadd.f32 %v1751_v16, %v1462_v15  ;;  %v1753_v20 = vpop.f32.mrb[1].mxu0  ;;  %v1465_v21 = vpop.f32.mrb[2].mxu1 }
 0x127   : > { %v1754_v24 = vpop.f32.mrb[2].mxu0  ;;  %v1467_v25 = vpop.f32.mrb[3].mxu1 }
 0x128   : > { %2201 = vst [vmem:[%s3134_s24] sm:$0xff] %v1752_v19  ;;  %v1755_v27 = vadd.f32 %v1754_v24, %v1465_v21  ;;  %v1756_v28 = vpop.f32.mrb[3].mxu0 }
 0x129   : > { %1677 = vmatmul.mubr.bf16.gmra.mrb[108].mxu1 %v2858_v18 }
 0x12a   : > { %2202 = vst [vmem:[%s3134_s24 + $0x8] sm:$0xff] %v1755_v27  ;;  %1966 = vmatmul.mubr.bf16.gmra.mrb[108].mxu0 %v2859_v22  ;;  %1684 = vmatprep.mubr.bf16.mxu1 %v2860_v23 }
 0x12b   : > { %1973 = vmatprep.mubr.bf16.mxu0 %v2862_v26 }
 0x12c   : > { %v1470_v29 = vpop.f32.mrb[4].mxu1 }
 0x12d   : > { %v1759_v30 = vpop.f32.mrb[4].mxu0  ;;  %v1472_v31 = vpop.f32.mrb[5].mxu1 }
 0x12e   : > { %v1760_v33 = vadd.f32 %v1759_v30, %v1470_v29  ;;  %v1761_v34 = vpop.f32.mrb[5].mxu0  ;;  %v1473_v35 = vpop.f32.mrb[6].mxu1 }
 0x12f   : > { %v1762_v38 = vpop.f32.mrb[6].mxu0  ;;  %v1475_v39 = vpop.f32.mrb[7].mxu1 }
 0x130   : > { %2203 = vst [vmem:[%s3134_s24 + $0x10] sm:$0xff] %v1760_v33  ;;  %v1763_v41 = vadd.f32 %v1762_v38, %v1473_v35  ;;  %v1764_v42 = vpop.f32.mrb[7].mxu0 }
 0x131   : > { %1685 = vmatmul.mubr.bf16.gmra.mrb[112].mxu1 %v2864_v32 }
 0x132   : > { %2204 = vst [vmem:[%s3134_s24 + $0x18] sm:$0xff] %v1763_v41  ;;  %1974 = vmatmul.mubr.bf16.gmra.mrb[112].mxu0 %v2865_v36  ;;  %1692 = vmatprep.mubr.bf16.mxu1 %v2866_v37 }
 0x133   : > { %1981 = vmatprep.mubr.bf16.mxu0 %v2868_v40 }
 0x134   : > { %v1478_v43 = vpop.f32.mrb[8].mxu1 }
 0x135   : > { %v1767_v44 = vpop.f32.mrb[8].mxu0  ;;  %v1480_v45 = vpop.f32.mrb[9].mxu1 }
 0x136   : > { %v1768_v47 = vadd.f32 %v1767_v44, %v1478_v43  ;;  %v1769_v48 = vpop.f32.mrb[9].mxu0  ;;  %v1481_v49 = vpop.f32.mrb[10].mxu1 }
 0x137   : > { %v1770_v52 = vpop.f32.mrb[10].mxu0  ;;  %v1483_v53 = vpop.f32.mrb[11].mxu1 }
 0x138   : > { %2205 = vst [vmem:[%s3134_s24 + $0x20] sm:$0xff] %v1768_v47  ;;  %v1771_v55 = vadd.f32 %v1770_v52, %v1481_v49  ;;  %v1772_v56 = vpop.f32.mrb[11].mxu0 }
 0x139   : > { %1693 = vmatmul.mubr.bf16.gmra.mrb[116].mxu1 %v2870_v46 }
 0x13a   : > { %2206 = vst [vmem:[%s3134_s24 + $0x28] sm:$0xff] %v1771_v55  ;;  %1982 = vmatmul.mubr.bf16.gmra.mrb[116].mxu0 %v2871_v50  ;;  %1700 = vmatprep.mubr.bf16.mxu1 %v2872_v51 }
 0x13b   : > { %1989 = vmatprep.mubr.bf16.mxu0 %v2874_v54 }
 0x13c   : > { %v1486_v57 = vpop.f32.mrb[12].mxu1 }
 0x13d   : > { %v1775_v58 = vpop.f32.mrb[12].mxu0  ;;  %v1488_v59 = vpop.f32.mrb[13].mxu1 }
 0x13e   : > { %v1776_v61 = vadd.f32 %v1775_v58, %v1486_v57  ;;  %v1777_v62 = vpop.f32.mrb[13].mxu0  ;;  %v1489_v63 = vpop.f32.mrb[14].mxu1 }
 0x13f   : > { %v1778_v2 = vpop.f32.mrb[14].mxu0  ;;  %v1491_v3 = vpop.f32.mrb[15].mxu1 }
 0x140   : > { %2207 = vst [vmem:[%s3134_s24 + $0x30] sm:$0xff] %v1776_v61  ;;  %v1779_v5 = vadd.f32 %v1778_v2, %v1489_v63  ;;  %v1780_v6 = vpop.f32.mrb[15].mxu0 }
 0x141   : > { %1701 = vmatmul.mubr.bf16.gmra.mrb[120].mxu1 %v2876_v60 }
 0x142   : > { %2208 = vst [vmem:[%s3134_s24 + $0x38] sm:$0xff] %v1779_v5  ;;  %1990 = vmatmul.mubr.bf16.gmra.mrb[120].mxu0 %v2877_v0  ;;  %1708 = vmatprep.mubr.bf16.mxu1 %v2878_v1 }
 0x143   : > { %1997 = vmatprep.mubr.bf16.mxu0 %v2880_v4 }
 0x144   : > { %v1494_v7 = vpop.f32.mrb[16].mxu1 }
 0x145   : > { %v1783_v8 = vpop.f32.mrb[16].mxu0  ;;  %v1496_v9 = vpop.f32.mrb[17].mxu1 }
 0x146   : > { %v1784_v11 = vadd.f32 %v1783_v8, %v1494_v7  ;;  %v1785_v12 = vpop.f32.mrb[17].mxu0  ;;  %v1497_v13 = vpop.f32.mrb[18].mxu1 }
 0x147   : > { %v1786_v15 = vpop.f32.mrb[18].mxu0  ;;  %v1499_v16 = vpop.f32.mrb[19].mxu1 }
 0x148   : > { %2209 = vst [vmem:[%s3134_s24 + $0x40] sm:$0xff] %v1784_v11  ;;  %v1787_v17 = vadd.f32 %v1786_v15, %v1497_v13  ;;  %v1788_v18 = vpop.f32.mrb[19].mxu0 }
 0x149   : > { %1709 = vmatmul.mubr.bf16.gmra.mrb[124].mxu1 %v2882_v10 }
 0x14a   : > { %2210 = vst [vmem:[%s3134_s24 + $0x48] sm:$0xff] %v1787_v17  ;;  %1998 = vmatmul.mubr.bf16.gmra.mrb[124].mxu0 %v2883_v14 }
 0x14c   : > { %v1502_v19 = vpop.f32.mrb[20].mxu1 }
 0x14d   : > { %v1791_v20 = vpop.f32.mrb[20].mxu0  ;;  %v1504_v21 = vpop.f32.mrb[21].mxu1 }
 0x14e   : > { %v1792_v22 = vadd.f32 %v1791_v20, %v1502_v19  ;;  %v1793_v23 = vpop.f32.mrb[21].mxu0  ;;  %v1505_v24 = vpop.f32.mrb[22].mxu1 }
 0x14f   : > { %v1794_v25 = vpop.f32.mrb[22].mxu0  ;;  %v1507_v26 = vpop.f32.mrb[23].mxu1 }
 0x150   : > { %2211 = vst [vmem:[%s3134_s24 + $0x50] sm:$0xff] %v1792_v22  ;;  %v1795_v27 = vadd.f32 %v1794_v25, %v1505_v24  ;;  %v1796_v28 = vpop.f32.mrb[23].mxu0 }
 0x152   : > { %2212 = vst [vmem:[%s3134_s24 + $0x58] sm:$0xff] %v1795_v27 }
 0x154   : > { %v1510_v29 = vpop.f32.mrb[24].mxu1 }
 0x155   : > { %v1799_v30 = vpop.f32.mrb[24].mxu0  ;;  %v1512_v31 = vpop.f32.mrb[25].mxu1 }
 0x156   : > { %v1800_v32 = vadd.f32 %v1799_v30, %v1510_v29  ;;  %v1801_v33 = vpop.f32.mrb[25].mxu0  ;;  %v1513_v34 = vpop.f32.mrb[26].mxu1 }
 0x157   : > { %v1802_v35 = vpop.f32.mrb[26].mxu0  ;;  %v1515_v36 = vpop.f32.mrb[27].mxu1 }
 0x158   : > { %2213 = vst [vmem:[%s3134_s24 + $0x60] sm:$0xff] %v1800_v32  ;;  %v1803_v37 = vadd.f32 %v1802_v35, %v1513_v34  ;;  %v1804_v38 = vpop.f32.mrb[27].mxu0 }
 0x15a   : > { %2214 = vst [vmem:[%s3134_s24 + $0x68] sm:$0xff] %v1803_v37 }
 0x15c   : > { %v1518_v39 = vpop.f32.mrb[28].mxu1 }
 0x15d   : > { %v1807_v40 = vpop.f32.mrb[28].mxu0  ;;  %v1520_v41 = vpop.f32.mrb[29].mxu1 }
 0x15e   : > { %v1808_v42 = vadd.f32 %v1807_v40, %v1518_v39  ;;  %v1809_v43 = vpop.f32.mrb[29].mxu0  ;;  %v1521_v44 = vpop.f32.mrb[30].mxu1 }
 0x15f   : > { %v1810_v45 = vpop.f32.mrb[30].mxu0  ;;  %v1523_v46 = vpop.f32.mrb[31].mxu1 }
 0x160   : > { %2215 = vst [vmem:[%s3134_s24 + $0x70] sm:$0xff] %v1808_v42  ;;  %v1811_v47 = vadd.f32 %v1810_v45, %v1521_v44  ;;  %v1812_v48 = vpop.f32.mrb[31].mxu0 }
 0x162   : > { %2216 = vst [vmem:[%s3134_s24 + $0x78] sm:$0xff] %v1811_v47 }
 0x164   : > { %v1526_v49 = vpop.f32.mrb[32].mxu1 }
 0x165   : > { %v1815_v50 = vpop.f32.mrb[32].mxu0  ;;  %v1528_v51 = vpop.f32.mrb[33].mxu1 }
 0x166   : > { %v1816_v52 = vadd.f32 %v1815_v50, %v1526_v49  ;;  %v1817_v53 = vpop.f32.mrb[33].mxu0  ;;  %v1529_v54 = vpop.f32.mrb[34].mxu1 }
 0x167   : > { %v1818_v55 = vpop.f32.mrb[34].mxu0  ;;  %v1531_v56 = vpop.f32.mrb[35].mxu1 }
 0x168   : > { %2217 = vst [vmem:[%s3134_s24 + $0x80] sm:$0xff] %v1816_v52  ;;  %v1819_v57 = vadd.f32 %v1818_v55, %v1529_v54  ;;  %v1820_v58 = vpop.f32.mrb[35].mxu0 }
 0x16a   : > { %2218 = vst [vmem:[%s3134_s24 + $0x88] sm:$0xff] %v1819_v57 }
 0x16c   : > { %v1534_v59 = vpop.f32.mrb[36].mxu1 }
 0x16d   : > { %v1823_v60 = vpop.f32.mrb[36].mxu0  ;;  %v1536_v61 = vpop.f32.mrb[37].mxu1 }
 0x16e   : > { %v1824_v62 = vadd.f32 %v1823_v60, %v1534_v59  ;;  %v1825_v63 = vpop.f32.mrb[37].mxu0  ;;  %v1537_v0 = vpop.f32.mrb[38].mxu1 }
 0x16f   : > { %v1826_v1 = vpop.f32.mrb[38].mxu0  ;;  %v1539_v2 = vpop.f32.mrb[39].mxu1 }
 0x170   : > { %2219 = vst [vmem:[%s3134_s24 + $0x90] sm:$0xff] %v1824_v62  ;;  %v1827_v3 = vadd.f32 %v1826_v1, %v1537_v0  ;;  %v1828_v4 = vpop.f32.mrb[39].mxu0 }
 0x172   : > { %2220 = vst [vmem:[%s3134_s24 + $0x98] sm:$0xff] %v1827_v3 }
 0x174   : > { %v1542_v5 = vpop.f32.mrb[40].mxu1 }
 0x175   : > { %v1831_v6 = vpop.f32.mrb[40].mxu0  ;;  %v1544_v7 = vpop.f32.mrb[41].mxu1 }
 0x176   : > { %v1832_v8 = vadd.f32 %v1831_v6, %v1542_v5  ;;  %v1833_v9 = vpop.f32.mrb[41].mxu0  ;;  %v1545_v10 = vpop.f32.mrb[42].mxu1 }
 0x177   : > { %v1834_v11 = vpop.f32.mrb[42].mxu0  ;;  %v1547_v12 = vpop.f32.mrb[43].mxu1 }
 0x178   : > { %2221 = vst [vmem:[%s3134_s24 + $0xa0] sm:$0xff] %v1832_v8  ;;  %v1835_v13 = vadd.f32 %v1834_v11, %v1545_v10  ;;  %v1836_v14 = vpop.f32.mrb[43].mxu0 }
 0x17a   : > { %2222 = vst [vmem:[%s3134_s24 + $0xa8] sm:$0xff] %v1835_v13 }
 0x17c   : > { %v1550_v15 = vpop.f32.mrb[44].mxu1 }
 0x17d   : > { %v1839_v16 = vpop.f32.mrb[44].mxu0  ;;  %v1552_v17 = vpop.f32.mrb[45].mxu1 }
 0x17e   : > { %v1840_v18 = vadd.f32 %v1839_v16, %v1550_v15  ;;  %v1841_v19 = vpop.f32.mrb[45].mxu0  ;;  %v1553_v20 = vpop.f32.mrb[46].mxu1 }
 0x17f   : > { %v1842_v21 = vpop.f32.mrb[46].mxu0  ;;  %v1555_v22 = vpop.f32.mrb[47].mxu1 }
 0x180   : > { %2223 = vst [vmem:[%s3134_s24 + $0xb0] sm:$0xff] %v1840_v18  ;;  %v1843_v23 = vadd.f32 %v1842_v21, %v1553_v20  ;;  %v1844_v24 = vpop.f32.mrb[47].mxu0 }
 0x182   : > { %2224 = vst [vmem:[%s3134_s24 + $0xb8] sm:$0xff] %v1843_v23 }
 0x184   : > { %v1558_v25 = vpop.f32.mrb[48].mxu1 }
 0x185   : > { %v1847_v26 = vpop.f32.mrb[48].mxu0  ;;  %v1560_v27 = vpop.f32.mrb[49].mxu1 }
 0x186   : > { %v1848_v28 = vadd.f32 %v1847_v26, %v1558_v25  ;;  %v1849_v29 = vpop.f32.mrb[49].mxu0  ;;  %v1561_v30 = vpop.f32.mrb[50].mxu1 }
 0x187   : > { %v1850_v31 = vpop.f32.mrb[50].mxu0  ;;  %v1563_v32 = vpop.f32.mrb[51].mxu1 }
 0x188   : > { %2225 = vst [vmem:[%s3134_s24 + $0xc0] sm:$0xff] %v1848_v28  ;;  %v1851_v33 = vadd.f32 %v1850_v31, %v1561_v30  ;;  %v1852_v34 = vpop.f32.mrb[51].mxu0 }
 0x18a   : > { %2226 = vst [vmem:[%s3134_s24 + $0xc8] sm:$0xff] %v1851_v33 }
 0x18c   : > { %v1566_v35 = vpop.f32.mrb[52].mxu1 }
 0x18d   : > { %v1855_v36 = vpop.f32.mrb[52].mxu0  ;;  %v1568_v37 = vpop.f32.mrb[53].mxu1 }
 0x18e   : > { %v1856_v38 = vadd.f32 %v1855_v36, %v1566_v35  ;;  %v1857_v39 = vpop.f32.mrb[53].mxu0  ;;  %v1569_v40 = vpop.f32.mrb[54].mxu1 }
 0x18f   : > { %v1858_v41 = vpop.f32.mrb[54].mxu0  ;;  %v1571_v42 = vpop.f32.mrb[55].mxu1 }
 0x190   : > { %2227 = vst [vmem:[%s3134_s24 + $0xd0] sm:$0xff] %v1856_v38  ;;  %v1859_v43 = vadd.f32 %v1858_v41, %v1569_v40  ;;  %v1860_v44 = vpop.f32.mrb[55].mxu0 }
 0x192   : > { %2228 = vst [vmem:[%s3134_s24 + $0xd8] sm:$0xff] %v1859_v43 }
 0x194   : > { %v1574_v45 = vpop.f32.mrb[56].mxu1 }
 0x195   : > { %v1863_v46 = vpop.f32.mrb[56].mxu0  ;;  %v1576_v47 = vpop.f32.mrb[57].mxu1 }
 0x196   : > { %v1864_v48 = vadd.f32 %v1863_v46, %v1574_v45  ;;  %v1865_v49 = vpop.f32.mrb[57].mxu0  ;;  %v1577_v50 = vpop.f32.mrb[58].mxu1 }
 0x197   : > { %v1866_v51 = vpop.f32.mrb[58].mxu0  ;;  %v1579_v52 = vpop.f32.mrb[59].mxu1 }
 0x198   : > { %2229 = vst [vmem:[%s3134_s24 + $0xe0] sm:$0xff] %v1864_v48  ;;  %v1867_v53 = vadd.f32 %v1866_v51, %v1577_v50  ;;  %v1868_v54 = vpop.f32.mrb[59].mxu0 }
 0x19a   : > { %2230 = vst [vmem:[%s3134_s24 + $0xe8] sm:$0xff] %v1867_v53 }
 0x19c   : > { %v1582_v55 = vpop.f32.mrb[60].mxu1 }
 0x19d   : > { %v1871_v56 = vpop.f32.mrb[60].mxu0  ;;  %v1584_v57 = vpop.f32.mrb[61].mxu1 }
 0x19e   : > { %v1872_v58 = vadd.f32 %v1871_v56, %v1582_v55  ;;  %v1873_v59 = vpop.f32.mrb[61].mxu0  ;;  %v1585_v60 = vpop.f32.mrb[62].mxu1 }
 0x19f   : > { %v1874_v61 = vpop.f32.mrb[62].mxu0  ;;  %v1587_v62 = vpop.f32.mrb[63].mxu1 }
 0x1a0   : > { %2231 = vst [vmem:[%s3134_s24 + $0xf0] sm:$0xff] %v1872_v58  ;;  %v1875_v63 = vadd.f32 %v1874_v61, %v1585_v60  ;;  %v1876_v0 = vpop.f32.mrb[63].mxu0 }
 0x1a2   : > { %2232 = vst [vmem:[%s3134_s24 + $0xf8] sm:$0xff] %v1875_v63 }
 0x1a4   : > { %v1590_v1 = vpop.f32.mrb[64].mxu1 }
 0x1a5   : > { %v1879_v2 = vpop.f32.mrb[64].mxu0  ;;  %v1592_v3 = vpop.f32.mrb[65].mxu1 }
 0x1a6   : > { %v1880_v4 = vadd.f32 %v1879_v2, %v1590_v1  ;;  %v1881_v5 = vpop.f32.mrb[65].mxu0  ;;  %v1593_v6 = vpop.f32.mrb[66].mxu1 }
 0x1a7   : > { %v1882_v7 = vpop.f32.mrb[66].mxu0  ;;  %v1595_v8 = vpop.f32.mrb[67].mxu1 }
 0x1a8   : > { %2233 = vst [vmem:[%s3134_s24 + $0x100] sm:$0xff] %v1880_v4  ;;  %v1883_v9 = vadd.f32 %v1882_v7, %v1593_v6  ;;  %v1884_v10 = vpop.f32.mrb[67].mxu0 }
 0x1aa   : > { %2234 = vst [vmem:[%s3134_s24 + $0x108] sm:$0xff] %v1883_v9 }
 0x1ac   : > { %v1598_v11 = vpop.f32.mrb[68].mxu1 }
 0x1ad   : > { %v1887_v12 = vpop.f32.mrb[68].mxu0  ;;  %v1600_v13 = vpop.f32.mrb[69].mxu1 }
 0x1ae   : > { %v1888_v14 = vadd.f32 %v1887_v12, %v1598_v11  ;;  %v1889_v15 = vpop.f32.mrb[69].mxu0  ;;  %v1601_v16 = vpop.f32.mrb[70].mxu1 }
 0x1af   : > { %v1890_v17 = vpop.f32.mrb[70].mxu0  ;;  %v1603_v18 = vpop.f32.mrb[71].mxu1 }
 0x1b0   : > { %2235 = vst [vmem:[%s3134_s24 + $0x110] sm:$0xff] %v1888_v14  ;;  %v1891_v19 = vadd.f32 %v1890_v17, %v1601_v16  ;;  %v1892_v20 = vpop.f32.mrb[71].mxu0 }
 0x1b2   : > { %2236 = vst [vmem:[%s3134_s24 + $0x118] sm:$0xff] %v1891_v19 }
 0x1b4   : > { %v1606_v21 = vpop.f32.mrb[72].mxu1 }
 0x1b5   : > { %v1895_v22 = vpop.f32.mrb[72].mxu0  ;;  %v1608_v23 = vpop.f32.mrb[73].mxu1 }
 0x1b6   : > { %v1896_v24 = vadd.f32 %v1895_v22, %v1606_v21  ;;  %v1897_v25 = vpop.f32.mrb[73].mxu0  ;;  %v1609_v26 = vpop.f32.mrb[74].mxu1 }
 0x1b7   : > { %v1898_v27 = vpop.f32.mrb[74].mxu0  ;;  %v1611_v28 = vpop.f32.mrb[75].mxu1 }
 0x1b8   : > { %2237 = vst [vmem:[%s3134_s24 + $0x120] sm:$0xff] %v1896_v24  ;;  %v1899_v29 = vadd.f32 %v1898_v27, %v1609_v26  ;;  %v1900_v30 = vpop.f32.mrb[75].mxu0 }
 0x1ba   : > { %2238 = vst [vmem:[%s3134_s24 + $0x128] sm:$0xff] %v1899_v29 }
 0x1bc   : > { %v1614_v31 = vpop.f32.mrb[76].mxu1 }
 0x1bd   : > { %v1903_v32 = vpop.f32.mrb[76].mxu0  ;;  %v1616_v33 = vpop.f32.mrb[77].mxu1 }
 0x1be   : > { %v1904_v34 = vadd.f32 %v1903_v32, %v1614_v31  ;;  %v1905_v35 = vpop.f32.mrb[77].mxu0  ;;  %v1617_v36 = vpop.f32.mrb[78].mxu1 }
 0x1bf   : > { %v1906_v37 = vpop.f32.mrb[78].mxu0  ;;  %v1619_v38 = vpop.f32.mrb[79].mxu1 }
 0x1c0   : > { %2239 = vst [vmem:[%s3134_s24 + $0x130] sm:$0xff] %v1904_v34  ;;  %v1907_v39 = vadd.f32 %v1906_v37, %v1617_v36  ;;  %v1908_v40 = vpop.f32.mrb[79].mxu0 }
 0x1c2   : > { %2240 = vst [vmem:[%s3134_s24 + $0x138] sm:$0xff] %v1907_v39 }
 0x1c4   : > { %v1622_v41 = vpop.f32.mrb[80].mxu1 }
 0x1c5   : > { %v1911_v42 = vpop.f32.mrb[80].mxu0  ;;  %v1624_v43 = vpop.f32.mrb[81].mxu1 }
 0x1c6   : > { %v1912_v44 = vadd.f32 %v1911_v42, %v1622_v41  ;;  %v1913_v45 = vpop.f32.mrb[81].mxu0  ;;  %v1625_v46 = vpop.f32.mrb[82].mxu1 }
 0x1c7   : > { %v1914_v47 = vpop.f32.mrb[82].mxu0  ;;  %v1627_v48 = vpop.f32.mrb[83].mxu1 }
 0x1c8   : > { %2241 = vst [vmem:[%s3134_s24 + $0x140] sm:$0xff] %v1912_v44  ;;  %v1915_v49 = vadd.f32 %v1914_v47, %v1625_v46  ;;  %v1916_v50 = vpop.f32.mrb[83].mxu0 }
 0x1ca   : > { %2242 = vst [vmem:[%s3134_s24 + $0x148] sm:$0xff] %v1915_v49 }
 0x1cc   : > { %v1630_v51 = vpop.f32.mrb[84].mxu1 }
 0x1cd   : > { %v1919_v52 = vpop.f32.mrb[84].mxu0  ;;  %v1632_v53 = vpop.f32.mrb[85].mxu1 }
 0x1ce   : > { %v1920_v54 = vadd.f32 %v1919_v52, %v1630_v51  ;;  %v1921_v55 = vpop.f32.mrb[85].mxu0  ;;  %v1633_v56 = vpop.f32.mrb[86].mxu1 }
 0x1cf   : > { %v1922_v57 = vpop.f32.mrb[86].mxu0  ;;  %v1635_v58 = vpop.f32.mrb[87].mxu1 }
 0x1d0   : > { %2243 = vst [vmem:[%s3134_s24 + $0x150] sm:$0xff] %v1920_v54  ;;  %v1923_v59 = vadd.f32 %v1922_v57, %v1633_v56  ;;  %v1924_v60 = vpop.f32.mrb[87].mxu0 }
 0x1d2   : > { %2244 = vst [vmem:[%s3134_s24 + $0x158] sm:$0xff] %v1923_v59 }
 0x1d4   : > { %v1638_v61 = vpop.f32.mrb[88].mxu1 }
 0x1d5   : > { %v1927_v62 = vpop.f32.mrb[88].mxu0  ;;  %v1640_v63 = vpop.f32.mrb[89].mxu1 }
 0x1d6   : > { %v1928_v0 = vadd.f32 %v1927_v62, %v1638_v61  ;;  %v1929_v1 = vpop.f32.mrb[89].mxu0  ;;  %v1641_v2 = vpop.f32.mrb[90].mxu1 }
 0x1d7   : > { %v1930_v3 = vpop.f32.mrb[90].mxu0  ;;  %v1643_v4 = vpop.f32.mrb[91].mxu1 }
 0x1d8   : > { %2245 = vst [vmem:[%s3134_s24 + $0x160] sm:$0xff] %v1928_v0  ;;  %v1931_v5 = vadd.f32 %v1930_v3, %v1641_v2  ;;  %v1932_v6 = vpop.f32.mrb[91].mxu0 }
 0x1da   : > { %2246 = vst [vmem:[%s3134_s24 + $0x168] sm:$0xff] %v1931_v5 }
 0x1dc   : > { %v1646_v7 = vpop.f32.mrb[92].mxu1 }
 0x1dd   : > { %v1935_v8 = vpop.f32.mrb[92].mxu0  ;;  %v1648_v9 = vpop.f32.mrb[93].mxu1 }
 0x1de   : > { %v1936_v10 = vadd.f32 %v1935_v8, %v1646_v7  ;;  %v1937_v11 = vpop.f32.mrb[93].mxu0  ;;  %v1649_v12 = vpop.f32.mrb[94].mxu1 }
 0x1df   : > { %v1938_v13 = vpop.f32.mrb[94].mxu0  ;;  %v1651_v14 = vpop.f32.mrb[95].mxu1 }
 0x1e0   : > { %2247 = vst [vmem:[%s3134_s24 + $0x170] sm:$0xff] %v1936_v10  ;;  %v1939_v15 = vadd.f32 %v1938_v13, %v1649_v12  ;;  %v1940_v16 = vpop.f32.mrb[95].mxu0 }
 0x1e2   : > { %2248 = vst [vmem:[%s3134_s24 + $0x178] sm:$0xff] %v1939_v15 }
 0x1e4   : > { %v1654_v17 = vpop.f32.mrb[96].mxu1 }
 0x1e5   : > { %v1943_v18 = vpop.f32.mrb[96].mxu0  ;;  %v1656_v19 = vpop.f32.mrb[97].mxu1 }
 0x1e6   : > { %v1944_v20 = vadd.f32 %v1943_v18, %v1654_v17  ;;  %v1945_v21 = vpop.f32.mrb[97].mxu0  ;;  %v1657_v22 = vpop.f32.mrb[98].mxu1 }
 0x1e7   : > { %v1946_v23 = vpop.f32.mrb[98].mxu0  ;;  %v1659_v24 = vpop.f32.mrb[99].mxu1 }
 0x1e8   : > { %2249 = vst [vmem:[%s3134_s24 + $0x180] sm:$0xff] %v1944_v20  ;;  %v1947_v25 = vadd.f32 %v1946_v23, %v1657_v22  ;;  %v1948_v26 = vpop.f32.mrb[99].mxu0 }
 0x1ea   : > { %2250 = vst [vmem:[%s3134_s24 + $0x188] sm:$0xff] %v1947_v25 }
 0x1ec   : > { %v1662_v27 = vpop.f32.mrb[100].mxu1 }
 0x1ed   : > { %v1951_v28 = vpop.f32.mrb[100].mxu0  ;;  %v1664_v29 = vpop.f32.mrb[101].mxu1 }
 0x1ee   : > { %v1952_v30 = vadd.f32 %v1951_v28, %v1662_v27  ;;  %v1953_v31 = vpop.f32.mrb[101].mxu0  ;;  %v1665_v32 = vpop.f32.mrb[102].mxu1 }
 0x1ef   : > { %v1954_v33 = vpop.f32.mrb[102].mxu0  ;;  %v1667_v34 = vpop.f32.mrb[103].mxu1 }
 0x1f0   : > { %2251 = vst [vmem:[%s3134_s24 + $0x190] sm:$0xff] %v1952_v30  ;;  %v1955_v35 = vadd.f32 %v1954_v33, %v1665_v32  ;;  %v1956_v36 = vpop.f32.mrb[103].mxu0 }
 0x1f2   : > { %2252 = vst [vmem:[%s3134_s24 + $0x198] sm:$0xff] %v1955_v35 }
 0x1f4   : > { %v1670_v37 = vpop.f32.mrb[104].mxu1 }
 0x1f5   : > { %v1959_v38 = vpop.f32.mrb[104].mxu0  ;;  %v1672_v39 = vpop.f32.mrb[105].mxu1 }
 0x1f6   : > { %v1960_v40 = vadd.f32 %v1959_v38, %v1670_v37  ;;  %v1961_v41 = vpop.f32.mrb[105].mxu0  ;;  %v1673_v42 = vpop.f32.mrb[106].mxu1 }
 0x1f7   : > { %v1962_v43 = vpop.f32.mrb[106].mxu0  ;;  %v1675_v44 = vpop.f32.mrb[107].mxu1 }
 0x1f8   : > { %2253 = vst [vmem:[%s3134_s24 + $0x1a0] sm:$0xff] %v1960_v40  ;;  %v1963_v45 = vadd.f32 %v1962_v43, %v1673_v42  ;;  %v1964_v46 = vpop.f32.mrb[107].mxu0 }
 0x1fa   : > { %2254 = vst [vmem:[%s3134_s24 + $0x1a8] sm:$0xff] %v1963_v45 }
 0x1fc   : > { %v1678_v47 = vpop.f32.mrb[108].mxu1 }
 0x1fd   : > { %v1967_v48 = vpop.f32.mrb[108].mxu0  ;;  %v1680_v49 = vpop.f32.mrb[109].mxu1 }
 0x1fe   : > { %v1968_v50 = vadd.f32 %v1967_v48, %v1678_v47  ;;  %v1969_v51 = vpop.f32.mrb[109].mxu0  ;;  %v1681_v52 = vpop.f32.mrb[110].mxu1 }
 0x1ff   : > { %v1970_v53 = vpop.f32.mrb[110].mxu0  ;;  %v1683_v54 = vpop.f32.mrb[111].mxu1 }
 0x200   : > { %2255 = vst [vmem:[%s3134_s24 + $0x1b0] sm:$0xff] %v1968_v50  ;;  %v1971_v55 = vadd.f32 %v1970_v53, %v1681_v52  ;;  %v1972_v56 = vpop.f32.mrb[111].mxu0 }
 0x202   : > { %2256 = vst [vmem:[%s3134_s24 + $0x1b8] sm:$0xff] %v1971_v55 }
 0x204   : > { %v1686_v57 = vpop.f32.mrb[112].mxu1 }
 0x205   : > { %v1975_v58 = vpop.f32.mrb[112].mxu0  ;;  %v1688_v59 = vpop.f32.mrb[113].mxu1 }
 0x206   : > { %v1976_v60 = vadd.f32 %v1975_v58, %v1686_v57  ;;  %v1977_v61 = vpop.f32.mrb[113].mxu0  ;;  %v1689_v62 = vpop.f32.mrb[114].mxu1 }
 0x207   : > { %v1978_v63 = vpop.f32.mrb[114].mxu0  ;;  %v1691_v0 = vpop.f32.mrb[115].mxu1 }
 0x208   : > { %2257 = vst [vmem:[%s3134_s24 + $0x1c0] sm:$0xff] %v1976_v60  ;;  %v1979_v1 = vadd.f32 %v1978_v63, %v1689_v62  ;;  %v1980_v2 = vpop.f32.mrb[115].mxu0 }
 0x20a   : > { %2258 = vst [vmem:[%s3134_s24 + $0x1c8] sm:$0xff] %v1979_v1 }
 0x20c   : > { %v1694_v3 = vpop.f32.mrb[116].mxu1 }
 0x20d   : > { %v1983_v4 = vpop.f32.mrb[116].mxu0  ;;  %v1696_v5 = vpop.f32.mrb[117].mxu1 }
 0x20e   : > { %v1984_v6 = vadd.f32 %v1983_v4, %v1694_v3  ;;  %v1985_v7 = vpop.f32.mrb[117].mxu0  ;;  %v1697_v8 = vpop.f32.mrb[118].mxu1 }
 0x20f   : > { %v1986_v9 = vpop.f32.mrb[118].mxu0  ;;  %v1699_v10 = vpop.f32.mrb[119].mxu1 }
 0x210   : > { %2259 = vst [vmem:[%s3134_s24 + $0x1d0] sm:$0xff] %v1984_v6  ;;  %v1987_v11 = vadd.f32 %v1986_v9, %v1697_v8  ;;  %v1988_v12 = vpop.f32.mrb[119].mxu0 }
 0x212   : > { %2260 = vst [vmem:[%s3134_s24 + $0x1d8] sm:$0xff] %v1987_v11 }
 0x214   : > { %v1702_v13 = vpop.f32.mrb[120].mxu1 }
 0x215   : > { %v1991_v14 = vpop.f32.mrb[120].mxu0  ;;  %v1704_v15 = vpop.f32.mrb[121].mxu1 }
 0x216   : > { %v1992_v16 = vadd.f32 %v1991_v14, %v1702_v13  ;;  %v1993_v17 = vpop.f32.mrb[121].mxu0  ;;  %v1705_v18 = vpop.f32.mrb[122].mxu1 }
 0x217   : > { %v1994_v19 = vpop.f32.mrb[122].mxu0  ;;  %v1707_v20 = vpop.f32.mrb[123].mxu1 }
 0x218   : > { %2261 = vst [vmem:[%s3134_s24 + $0x1e0] sm:$0xff] %v1992_v16  ;;  %v1995_v21 = vadd.f32 %v1994_v19, %v1705_v18  ;;  %v1996_v22 = vpop.f32.mrb[123].mxu0 }
 0x21a   : > { %2262 = vst [vmem:[%s3134_s24 + $0x1e8] sm:$0xff] %v1995_v21 }
 0x21c   : > { %v1710_v23 = vpop.f32.mrb[124].mxu1 }
 0x21d   : > { %v1999_v24 = vpop.f32.mrb[124].mxu0  ;;  %v1712_v25 = vpop.f32.mrb[125].mxu1 }
 0x21e   : > { %v2000_v26 = vadd.f32 %v1999_v24, %v1710_v23  ;;  %v2001_v27 = vpop.f32.mrb[125].mxu0  ;;  %v1713_v28 = vpop.f32.mrb[126].mxu1 }
 0x21f   : > { %v2002_v29 = vpop.f32.mrb[126].mxu0  ;;  %v1715_v30 = vpop.f32.mrb[127].mxu1 }
 0x220   : > { %2263 = vst [vmem:[%s3134_s24 + $0x1f0] sm:$0xff] %v2000_v26  ;;  %v2003_v31 = vadd.f32 %v2002_v29, %v1713_v28  ;;  %v2004_v32 = vpop.f32.mrb[127].mxu0 }
 0x222   : > { %2264 = vst [vmem:[%s3134_s24 + $0x1f8] sm:$0xff] %v2003_v31 }
 0x223 PF: > { %s12_s11 = sadd.s32 1, %s2906_s11   ;;  %s3230_s9 = smov %s2902_s10 }
 0x224   : > { %p9_p5 = scmp.ge.s32.totalorder %s12_s11, 6   ;;  %s3231_s10 = smov %s3233_s12 }
 0x226   :  { %11 = sbr.rel (!%p9_p5) target bundleno = 2 (0x2), region = 69 }

// kernel: generator_forward.16
= control target key start
LH: loop header
LB: loop body
LE: loop exit
PB: predicated region body
PF: predicated region fallthrough
CT: control target
= control target key end

     0   :  { %s1289_s12 = smov 0   ;;  %s1291_s13 = smov 0   ;;  %s1564_s0 = inlined_call_operand.vmem [shape: f32[4,512,128], index: 0, kind: input, shape index: {}]   ;;  %s1565_s1 = inlined_call_operand.vmem [shape: f32[1,1,128], index: 1, kind: input, shape index: {}]   ;;  %s1566_s2 = inlined_call_operand.vmem [shape: f32[1,1,128], index: 2, kind: input, shape index: {}]   ;;  %s1567_s3 = inlined_call_operand.vmem [shape: bf16[4,512,128], index: 3, kind: output, shape index: {}]  }
   0x1   :  { %s1293_s14 = smov 0  }
   0x2 LB: > { %s25_s15 = sadd.s32 1, %s1263_s13  ;;  %p891_p0 = scmp.ge.s32.totalorder %s1267_s14, 1  ;;  %s1267_s14 = sphi %s1293_s14, %s13_s14   ;;  %s1263_s13 = sphi %s1291_s13, %s1569_s13   ;;  %s1259_s12 = sphi %s1289_s12, %s1568_s12  }
   0x3   : > { %p27_p1 = scmp.ge.s32.totalorder %s25_s15, 4  ;;  %p158_p2 = scmp.lt.s32.totalorder %s1267_s14, 5 }
   0x5   : > { %s1571_s15 = smov (%p27_p1, %s25_s15), 0  ;;  %p159_p3 = pnand %p891_p0, %p158_p2 }
   0x6   : > { %p191_p4 = scmp.lt.s32.totalorder (!%p159_p3), %s1259_s12, 3  ;;  %v1313_v0 = vld [vmem:[%s1565_s1] ss:$0 sm:$0xff] (!%p159_p3) }
   0x7   : > { %162 = sbr.rel (%p159_p3) target bundleno = 80 (0x50), region = 32  ;;  %v1323_v1 = vld [vmem:[%s1566_s2] ss:$0 sm:$0xff] (!%p159_p3) }
   0xe   : > { %s1573_s12 = smov (!%p191_p4, %s1259_s12), 3 }
   0xf   : > { %s964_s16 = sshll.u32 %s1573_s12, 9  ;;  %s965_s24 = sshll.u32 %s1573_s12, 8 }
  0x10   : > { %s1318_s21 = scalar_lea.vmem %s1564_s0, %s964_s16  ;;  %s1355_s27 = scalar_lea.vmem %s1567_s3, %s965_s24 }
  0x11   : > { %v210_v2 = vld [vmem:[%s1318_s21] sm:$0xff]  ;;  %v211_v3 = vld [vmem:[%s1318_s21 + $0x8] sm:$0xff]  ;;  %v212_v4 = vld [vmem:[%s1318_s21 + $0x10] sm:$0xff] }
  0x12   : > { %v281_v5 = vmul.f32 %v1313_v0, %v210_v2  ;;  %v282_v6 = vmul.f32 %v1313_v0, %v211_v3  ;;  %v213_v7 = vld [vmem:[%s1318_s21 + $0x18] sm:$0xff]  ;;  %v283_v8 = vmul.f32 %v1313_v0, %v212_v4  ;;  %v214_v9 = vld [vmem:[%s1318_s21 + $0x20] sm:$0xff]  ;;  %v215_v10 = vld [vmem:[%s1318_s21 + $0x28] sm:$0xff] }
  0x13   : > { %v284_v11 = vmul.f32 %v1313_v0, %v213_v7  ;;  %v285_v12 = vmul.f32 %v1313_v0, %v214_v9  ;;  %v286_v13 = vmul.f32 %v1313_v0, %v215_v10  ;;  %v216_v14 = vld [vmem:[%s1318_s21 + $0x30] sm:$0xff]  ;;  %v217_v15 = vld [vmem:[%s1318_s21 + $0x38] sm:$0xff]  ;;  %v218_v24 = vld [vmem:[%s1318_s21 + $0x40] sm:$0xff] }
  0x14   : > { %v352_v16 = vadd.f32 %v1323_v1, %v281_v5  ;;  %v353_v17 = vadd.f32 %v1323_v1, %v282_v6  ;;  %v354_v18 = vadd.f32 %v1323_v1, %v283_v8  ;;  %v287_v19 = vmul.f32 %v1313_v0, %v216_v14  ;;  %v219_v25 = vld [vmem:[%s1318_s21 + $0x48] sm:$0xff]  ;;  %v220_v30 = vld [vmem:[%s1318_s21 + $0x50] sm:$0xff]  ;;  %v221_v35 = vld [vmem:[%s1318_s21 + $0x58] sm:$0xff] }
  0x15   : > { %v355_v20 = vadd.f32 %v1323_v1, %v284_v11  ;;  %v356_v21 = vadd.f32 %v1323_v1, %v285_v12  ;;  %v357_v22 = vadd.f32 %v1323_v1, %v286_v13  ;;  %v288_v23 = vmul.f32 %v1313_v0, %v217_v15  ;;  %v222_v36 = vld [vmem:[%s1318_s21 + $0x60] sm:$0xff]  ;;  %v223_v41 = vld [vmem:[%s1318_s21 + $0x68] sm:$0xff]  ;;  %v224_v42 = vld [vmem:[%s1318_s21 + $0x70] sm:$0xff] }
  0x16   : > { %v416_v26 = vmax.f32 %v352_v16, 0.0  ;;  %v417_v27 = vmax.f32 %v353_v17, 0.0  ;;  %v418_v28 = vmax.f32 %v354_v18, 0.0  ;;  %v358_v29 = vadd.f32 %v1323_v1, %v287_v19  ;;  %v225_v51 = vld [vmem:[%s1318_s21 + $0x78] sm:$0xff]  ;;  %v226_v56 = vld [vmem:[%s1318_s21 + $0x80] sm:$0xff]  ;;  %v227_v61 = vld [vmem:[%s1318_s21 + $0x88] sm:$0xff] }
  0x17   : > { %v419_v31 = vmax.f32 %v355_v20, 0.0  ;;  %v420_v32 = vmax.f32 %v356_v21, 0.0  ;;  %v421_v33 = vmax.f32 %v357_v22, 0.0  ;;  %v359_v34 = vadd.f32 %v1323_v1, %v288_v23  ;;  %v228_v4 = vld [vmem:[%s1318_s21 + $0x90] sm:$0xff]  ;;  %v229_v5 = vld [vmem:[%s1318_s21 + $0x98] sm:$0xff]  ;;  %v230_v10 = vld [vmem:[%s1318_s21 + $0xa0] sm:$0xff] }
  0x18   : > { %v1033_v37 = vpack.c.bf16 %v417_v27, %v416_v26  ;;  %v422_v38 = vmax.f32 %v358_v29, 0.0  ;;  %v289_v39 = vmul.f32 %v1313_v0, %v218_v24  ;;  %v290_v40 = vmul.f32 %v1313_v0, %v219_v25  ;;  %v231_v15 = vld [vmem:[%s1318_s21 + $0xa8] sm:$0xff]  ;;  %v232_v20 = vld [vmem:[%s1318_s21 + $0xb0] sm:$0xff]  ;;  %v233_v25 = vld [vmem:[%s1318_s21 + $0xb8] sm:$0xff] }
  0x19   : > { %v1038_v43 = vpack.c.bf16 %v419_v31, %v418_v28  ;;  %v1043_v44 = vpack.c.bf16 %v421_v33, %v420_v32  ;;  %v423_v45 = vmax.f32 %v359_v34, 0.0  ;;  %v291_v46 = vmul.f32 %v1313_v0, %v220_v30  ;;  %v234_v30 = vld [vmem:[%s1318_s21 + $0xc0] sm:$0xff] }
  0x1a   : > { %1034 = vst [vmem:[%s1355_s27] sm:$0xff] %v1033_v37   ;;  %v360_v47 = vadd.f32 %v1323_v1, %v289_v39  ;;  %v361_v48 = vadd.f32 %v1323_v1, %v290_v40  ;;  %v292_v49 = vmul.f32 %v1313_v0, %v221_v35  ;;  %v293_v50 = vmul.f32 %v1313_v0, %v222_v36  ;;  %v235_v35 = vld [vmem:[%s1318_s21 + $0xc8] sm:$0xff]  ;;  %v236_v40 = vld [vmem:[%s1318_s21 + $0xd0] sm:$0xff] }
  0x1b   : > { %1190 = vst [vmem:[%s1355_s27 + $0x8] sm:$0xff] %v1038_v43   ;;  %1191 = vst [vmem:[%s1355_s27 + $0x10] sm:$0xff] %v1043_v44   ;;  %v1048_v52 = vpack.c.bf16 %v423_v45, %v422_v38  ;;  %v362_v53 = vadd.f32 %v1323_v1, %v291_v46  ;;  %v294_v54 = vmul.f32 %v1313_v0, %v223_v41  ;;  %v237_v41 = vld [vmem:[%s1318_s21 + $0xd8] sm:$0xff]  ;;  %v238_v46 = vld [vmem:[%s1318_s21 + $0xe0] sm:$0xff] }
  0x1c   : > { %v295_v55 = vmul.f32 %v1313_v0, %v224_v42  ;;  %v424_v57 = vmax.f32 %v360_v47, 0.0  ;;  %v425_v58 = vmax.f32 %v361_v48, 0.0  ;;  %v363_v59 = vadd.f32 %v1323_v1, %v292_v49 }
  0x1d   : > { %v364_v60 = vadd.f32 %v1323_v1, %v293_v50  ;;  %1192 = vst [vmem:[%s1355_s27 + $0x18] sm:$0xff] %v1048_v52   ;;  %v426_v62 = vmax.f32 %v362_v53, 0.0  ;;  %v365_v63 = vadd.f32 %v1323_v1, %v294_v54  ;;  %v296_v2 = vmul.f32 %v1313_v0, %v225_v51  ;;  %v239_v51 = vld [vmem:[%s1318_s21 + $0xe8] sm:$0xff] }
  0x1e   : > { %v366_v3 = vadd.f32 %v1323_v1, %v295_v55  ;;  %v1053_v6 = vpack.c.bf16 %v425_v58, %v424_v57  ;;  %v427_v7 = vmax.f32 %v363_v59, 0.0  ;;  %v297_v9 = vmul.f32 %v1313_v0, %v226_v56  ;;  %v240_v56 = vld [vmem:[%s1318_s21 + $0xf0] sm:$0xff] }
  0x1f   : > { %v428_v8 = vmax.f32 %v364_v60, 0.0  ;;  %v429_v11 = vmax.f32 %v365_v63, 0.0  ;;  %v367_v12 = vadd.f32 %v1323_v1, %v296_v2  ;;  %v298_v14 = vmul.f32 %v1313_v0, %v227_v61  ;;  %v241_v61 = vld [vmem:[%s1318_s21 + $0xf8] sm:$0xff] }
  0x20   : > { %v430_v13 = vmax.f32 %v366_v3, 0.0  ;;  %1193 = vst [vmem:[%s1355_s27 + $0x20] sm:$0xff] %v1053_v6   ;;  %v1058_v16 = vpack.c.bf16 %v427_v7, %v426_v62  ;;  %v368_v17 = vadd.f32 %v1323_v1, %v297_v9  ;;  %v299_v18 = vmul.f32 %v1313_v0, %v228_v4  ;;  %v242_v4 = vld [vmem:[%s1318_s21 + $0x100] sm:$0xff]  ;;  %v243_v9 = vld [vmem:[%s1318_s21 + $0x108] sm:$0xff] }
  0x21   : > { %v300_v19 = vmul.f32 %v1313_v0, %v229_v5  ;;  %v1063_v21 = vpack.c.bf16 %v429_v11, %v428_v8  ;;  %v431_v22 = vmax.f32 %v367_v12, 0.0  ;;  %v369_v23 = vadd.f32 %v1323_v1, %v298_v14  ;;  %v244_v14 = vld [vmem:[%s1318_s21 + $0x110] sm:$0xff] }
  0x22   : > { %v301_v24 = vmul.f32 %v1313_v0, %v230_v10  ;;  %1194 = vst [vmem:[%s1355_s27 + $0x28] sm:$0xff] %v1058_v16   ;;  %v432_v26 = vmax.f32 %v368_v17, 0.0  ;;  %v370_v27 = vadd.f32 %v1323_v1, %v299_v18  ;;  %v302_v29 = vmul.f32 %v1313_v0, %v231_v15  ;;  %v245_v15 = vld [vmem:[%s1318_s21 + $0x118] sm:$0xff] }
  0x23   : > { %v371_v28 = vadd.f32 %v1323_v1, %v300_v19  ;;  %1195 = vst [vmem:[%s1355_s27 + $0x30] sm:$0xff] %v1063_v21   ;;  %v1068_v31 = vpack.c.bf16 %v431_v22, %v430_v13  ;;  %v433_v32 = vmax.f32 %v369_v23, 0.0  ;;  %v303_v34 = vmul.f32 %v1313_v0, %v232_v20  ;;  %v246_v20 = vld [vmem:[%s1318_s21 + $0x120] sm:$0xff] }
  0x24   : > { %v372_v33 = vadd.f32 %v1323_v1, %v301_v24  ;;  %v434_v36 = vmax.f32 %v370_v27, 0.0  ;;  %v373_v38 = vadd.f32 %v1323_v1, %v302_v29  ;;  %v304_v39 = vmul.f32 %v1313_v0, %v233_v25  ;;  %v247_v25 = vld [vmem:[%s1318_s21 + $0x128] sm:$0xff] }
  0x25   : > { %v435_v37 = vmax.f32 %v371_v28, 0.0  ;;  %1196 = vst [vmem:[%s1355_s27 + $0x38] sm:$0xff] %v1068_v31   ;;  %v1073_v42 = vpack.c.bf16 %v433_v32, %v432_v26  ;;  %v374_v44 = vadd.f32 %v1323_v1, %v303_v34  ;;  %v305_v45 = vmul.f32 %v1313_v0, %v234_v30  ;;  %v248_v30 = vld [vmem:[%s1318_s21 + $0x130] sm:$0xff] }
  0x26   : > { %v436_v43 = vmax.f32 %v372_v33, 0.0  ;;  %v437_v48 = vmax.f32 %v373_v38, 0.0  ;;  %v375_v49 = vadd.f32 %v1323_v1, %v304_v39  ;;  %v306_v50 = vmul.f32 %v1313_v0, %v235_v35  ;;  %v249_v35 = vld [vmem:[%s1318_s21 + $0x138] sm:$0xff] }
  0x27   : > { %v1078_v47 = vpack.c.bf16 %v435_v37, %v434_v36  ;;  %1197 = vst [vmem:[%s1355_s27 + $0x40] sm:$0xff] %v1073_v42   ;;  %v438_v52 = vmax.f32 %v374_v44, 0.0  ;;  %v376_v53 = vadd.f32 %v1323_v1, %v305_v45  ;;  %v307_v54 = vmul.f32 %v1313_v0, %v236_v40  ;;  %v250_v40 = vld [vmem:[%s1318_s21 + $0x140] sm:$0xff]  ;;  %v251_v45 = vld [vmem:[%s1318_s21 + $0x148] sm:$0xff] }
  0x28   : > { %v308_v55 = vmul.f32 %v1313_v0, %v237_v41  ;;  %v1083_v57 = vpack.c.bf16 %v437_v48, %v436_v43  ;;  %v439_v58 = vmax.f32 %v375_v49, 0.0  ;;  %v377_v59 = vadd.f32 %v1323_v1, %v306_v50  ;;  %v252_v50 = vld [vmem:[%s1318_s21 + $0x150] sm:$0xff] }
  0x29   : > { %1198 = vst [vmem:[%s1355_s27 + $0x48] sm:$0xff] %v1078_v47   ;;  %v309_v60 = vmul.f32 %v1313_v0, %v238_v46  ;;  %v440_v62 = vmax.f32 %v376_v53, 0.0  ;;  %v378_v63 = vadd.f32 %v1323_v1, %v307_v54  ;;  %v310_v3 = vmul.f32 %v1313_v0, %v239_v51  ;;  %v253_v51 = vld [vmem:[%s1318_s21 + $0x158] sm:$0xff] }
  0x2a   : > { %v379_v2 = vadd.f32 %v1323_v1, %v308_v55  ;;  %1199 = vst [vmem:[%s1355_s27 + $0x50] sm:$0xff] %v1083_v57   ;;  %v1088_v5 = vpack.c.bf16 %v439_v58, %v438_v52  ;;  %v441_v6 = vmax.f32 %v377_v59, 0.0  ;;  %v311_v8 = vmul.f32 %v1313_v0, %v240_v56  ;;  %v254_v56 = vld [vmem:[%s1318_s21 + $0x160] sm:$0xff] }
  0x2b   : > { %v380_v7 = vadd.f32 %v1323_v1, %v309_v60  ;;  %v442_v10 = vmax.f32 %v378_v63, 0.0  ;;  %v381_v12 = vadd.f32 %v1323_v1, %v310_v3  ;;  %v312_v13 = vmul.f32 %v1313_v0, %v241_v61  ;;  %v255_v61 = vld [vmem:[%s1318_s21 + $0x168] sm:$0xff] }
  0x2c   : > { %v443_v11 = vmax.f32 %v379_v2, 0.0  ;;  %1200 = vst [vmem:[%s1355_s27 + $0x58] sm:$0xff] %v1088_v5   ;;  %v1093_v16 = vpack.c.bf16 %v441_v6, %v440_v62  ;;  %v382_v18 = vadd.f32 %v1323_v1, %v311_v8  ;;  %v313_v19 = vmul.f32 %v1313_v0, %v242_v4  ;;  %v256_v4 = vld [vmem:[%s1318_s21 + $0x170] sm:$0xff] }
  0x2d   : > { %v444_v17 = vmax.f32 %v380_v7, 0.0  ;;  %v445_v22 = vmax.f32 %v381_v12, 0.0  ;;  %v383_v23 = vadd.f32 %v1323_v1, %v312_v13  ;;  %v314_v24 = vmul.f32 %v1313_v0, %v243_v9  ;;  %v257_v9 = vld [vmem:[%s1318_s21 + $0x178] sm:$0xff] }
  0x2e   : > { %v1098_v21 = vpack.c.bf16 %v443_v11, %v442_v10  ;;  %1201 = vst [vmem:[%s1355_s27 + $0x60] sm:$0xff] %v1093_v16   ;;  %v446_v26 = vmax.f32 %v382_v18, 0.0  ;;  %v384_v27 = vadd.f32 %v1323_v1, %v313_v19  ;;  %v315_v28 = vmul.f32 %v1313_v0, %v244_v14  ;;  %v258_v14 = vld [vmem:[%s1318_s21 + $0x180] sm:$0xff]  ;;  %v259_v19 = vld [vmem:[%s1318_s21 + $0x188] sm:$0xff] }
  0x2f   : > { %v316_v29 = vmul.f32 %v1313_v0, %v245_v15  ;;  %v1103_v31 = vpack.c.bf16 %v445_v22, %v444_v17  ;;  %v447_v32 = vmax.f32 %v383_v23, 0.0  ;;  %v385_v33 = vadd.f32 %v1323_v1, %v314_v24  ;;  %v260_v24 = vld [vmem:[%s1318_s21 + $0x190] sm:$0xff] }
  0x30   : > { %1202 = vst [vmem:[%s1355_s27 + $0x68] sm:$0xff] %v1098_v21   ;;  %v317_v34 = vmul.f32 %v1313_v0, %v246_v20  ;;  %v448_v36 = vmax.f32 %v384_v27, 0.0  ;;  %v386_v37 = vadd.f32 %v1323_v1, %v315_v28  ;;  %v318_v39 = vmul.f32 %v1313_v0, %v247_v25  ;;  %v261_v25 = vld [vmem:[%s1318_s21 + $0x198] sm:$0xff] }
  0x31   : > { %v387_v38 = vadd.f32 %v1323_v1, %v316_v29  ;;  %1203 = vst [vmem:[%s1355_s27 + $0x70] sm:$0xff] %v1103_v31   ;;  %v1108_v41 = vpack.c.bf16 %v447_v32, %v446_v26  ;;  %v449_v42 = vmax.f32 %v385_v33, 0.0  ;;  %v319_v44 = vmul.f32 %v1313_v0, %v248_v30  ;;  %v262_v30 = vld [vmem:[%s1318_s21 + $0x1a0] sm:$0xff] }
  0x32   : > { %v388_v43 = vadd.f32 %v1323_v1, %v317_v34  ;;  %v450_v46 = vmax.f32 %v386_v37, 0.0  ;;  %v389_v48 = vadd.f32 %v1323_v1, %v318_v39  ;;  %v320_v49 = vmul.f32 %v1313_v0, %v249_v35  ;;  %v263_v35 = vld [vmem:[%s1318_s21 + $0x1a8] sm:$0xff] }
  0x33   : > { %v451_v47 = vmax.f32 %v387_v38, 0.0  ;;  %1204 = vst [vmem:[%s1355_s27 + $0x78] sm:$0xff] %v1108_v41   ;;  %v1113_v52 = vpack.c.bf16 %v449_v42, %v448_v36  ;;  %v390_v54 = vadd.f32 %v1323_v1, %v319_v44  ;;  %v321_v55 = vmul.f32 %v1313_v0, %v250_v40  ;;  %v264_v40 = vld [vmem:[%s1318_s21 + $0x1b0] sm:$0xff] }
  0x34   : > { %v452_v53 = vmax.f32 %v388_v43, 0.0  ;;  %v453_v58 = vmax.f32 %v389_v48, 0.0  ;;  %v391_v59 = vadd.f32 %v1323_v1, %v320_v49  ;;  %v322_v60 = vmul.f32 %v1313_v0, %v251_v45  ;;  %v265_v45 = vld [vmem:[%s1318_s21 + $0x1b8] sm:$0xff] }
  0x35   : > { %v1118_v57 = vpack.c.bf16 %v451_v47, %v450_v46  ;;  %1205 = vst [vmem:[%s1355_s27 + $0x80] sm:$0xff] %v1113_v52   ;;  %v454_v62 = vmax.f32 %v390_v54, 0.0  ;;  %v392_v63 = vadd.f32 %v1323_v1, %v321_v55  ;;  %v323_v2 = vmul.f32 %v1313_v0, %v252_v50  ;;  %v266_v50 = vld [vmem:[%s1318_s21 + $0x1c0] sm:$0xff]  ;;  %v267_v55 = vld [vmem:[%s1318_s21 + $0x1c8] sm:$0xff] }
  0x36   : > { %v324_v3 = vmul.f32 %v1313_v0, %v253_v51  ;;  %v1123_v5 = vpack.c.bf16 %v453_v58, %v452_v53  ;;  %v455_v6 = vmax.f32 %v391_v59, 0.0  ;;  %v393_v7 = vadd.f32 %v1323_v1, %v322_v60  ;;  %v268_v60 = vld [vmem:[%s1318_s21 + $0x1d0] sm:$0xff] }
  0x37   : > { %1206 = vst [vmem:[%s1355_s27 + $0x88] sm:$0xff] %v1118_v57   ;;  %v325_v8 = vmul.f32 %v1313_v0, %v254_v56  ;;  %v456_v10 = vmax.f32 %v392_v63, 0.0  ;;  %v394_v11 = vadd.f32 %v1323_v1, %v323_v2  ;;  %v326_v13 = vmul.f32 %v1313_v0, %v255_v61  ;;  %v269_v61 = vld [vmem:[%s1318_s21 + $0x1d8] sm:$0xff] }
  0x38   : > { %v395_v12 = vadd.f32 %v1323_v1, %v324_v3  ;;  %1207 = vst [vmem:[%s1355_s27 + $0x90] sm:$0xff] %v1123_v5   ;;  %v1128_v15 = vpack.c.bf16 %v455_v6, %v454_v62  ;;  %v457_v16 = vmax.f32 %v393_v7, 0.0  ;;  %v327_v18 = vmul.f32 %v1313_v0, %v256_v4  ;;  %v270_v4 = vld [vmem:[%s1318_s21 + $0x1e0] sm:$0xff] }
  0x39   : > { %v396_v17 = vadd.f32 %v1323_v1, %v325_v8  ;;  %v458_v20 = vmax.f32 %v394_v11, 0.0  ;;  %v397_v22 = vadd.f32 %v1323_v1, %v326_v13  ;;  %v328_v23 = vmul.f32 %v1313_v0, %v257_v9  ;;  %v271_v9 = vld [vmem:[%s1318_s21 + $0x1e8] sm:$0xff] }
  0x3a   : > { %v459_v21 = vmax.f32 %v395_v12, 0.0  ;;  %1208 = vst [vmem:[%s1355_s27 + $0x98] sm:$0xff] %v1128_v15   ;;  %v1133_v26 = vpack.c.bf16 %v457_v16, %v456_v10  ;;  %v398_v28 = vadd.f32 %v1323_v1, %v327_v18  ;;  %v329_v29 = vmul.f32 %v1313_v0, %v258_v14  ;;  %v272_v14 = vld [vmem:[%s1318_s21 + $0x1f0] sm:$0xff] }
  0x3b   : > { %v460_v27 = vmax.f32 %v396_v17, 0.0  ;;  %v461_v32 = vmax.f32 %v397_v22, 0.0  ;;  %v399_v33 = vadd.f32 %v1323_v1, %v328_v23  ;;  %v330_v34 = vmul.f32 %v1313_v0, %v259_v19  ;;  %v273_v19 = vld [vmem:[%s1318_s21 + $0x1f8] sm:$0xff] }
  0x3c   : > { %v1138_v31 = vpack.c.bf16 %v459_v21, %v458_v20  ;;  %1209 = vst [vmem:[%s1355_s27 + $0xa0] sm:$0xff] %v1133_v26   ;;  %v462_v36 = vmax.f32 %v398_v28, 0.0  ;;  %v400_v37 = vadd.f32 %v1323_v1, %v329_v29  ;;  %v331_v38 = vmul.f32 %v1313_v0, %v260_v24 }
  0x3d   : > { %v332_v39 = vmul.f32 %v1313_v0, %v261_v25  ;;  %v1143_v41 = vpack.c.bf16 %v461_v32, %v460_v27  ;;  %v463_v42 = vmax.f32 %v399_v33, 0.0  ;;  %v401_v43 = vadd.f32 %v1323_v1, %v330_v34 }
  0x3e   : > { %1210 = vst [vmem:[%s1355_s27 + $0xa8] sm:$0xff] %v1138_v31   ;;  %v333_v44 = vmul.f32 %v1313_v0, %v262_v30  ;;  %v464_v46 = vmax.f32 %v400_v37, 0.0  ;;  %v402_v47 = vadd.f32 %v1323_v1, %v331_v38  ;;  %v334_v49 = vmul.f32 %v1313_v0, %v263_v35 }
  0x3f   : > { %v403_v48 = vadd.f32 %v1323_v1, %v332_v39  ;;  %1211 = vst [vmem:[%s1355_s27 + $0xb0] sm:$0xff] %v1143_v41   ;;  %v1148_v51 = vpack.c.bf16 %v463_v42, %v462_v36  ;;  %v465_v52 = vmax.f32 %v401_v43, 0.0  ;;  %v335_v54 = vmul.f32 %v1313_v0, %v264_v40 }
  0x40   : > { %v404_v53 = vadd.f32 %v1323_v1, %v333_v44  ;;  %v466_v56 = vmax.f32 %v402_v47, 0.0  ;;  %v405_v58 = vadd.f32 %v1323_v1, %v334_v49  ;;  %v336_v59 = vmul.f32 %v1313_v0, %v265_v45 }
  0x41   : > { %v467_v57 = vmax.f32 %v403_v48, 0.0  ;;  %1212 = vst [vmem:[%s1355_s27 + $0xb8] sm:$0xff] %v1148_v51   ;;  %v1153_v62 = vpack.c.bf16 %v465_v52, %v464_v46  ;;  %v406_v2 = vadd.f32 %v1323_v1, %v335_v54  ;;  %v337_v3 = vmul.f32 %v1313_v0, %v266_v50 }
  0x42   : > { %v468_v63 = vmax.f32 %v404_v53, 0.0  ;;  %v469_v6 = vmax.f32 %v405_v58, 0.0  ;;  %v407_v7 = vadd.f32 %v1323_v1, %v336_v59  ;;  %v338_v8 = vmul.f32 %v1313_v0, %v267_v55 }
  0x43   : > { %v1158_v5 = vpack.c.bf16 %v467_v57, %v466_v56  ;;  %1213 = vst [vmem:[%s1355_s27 + $0xc0] sm:$0xff] %v1153_v62   ;;  %v470_v10 = vmax.f32 %v406_v2, 0.0  ;;  %v408_v11 = vadd.f32 %v1323_v1, %v337_v3  ;;  %v339_v12 = vmul.f32 %v1313_v0, %v268_v60 }
  0x44   : > { %v340_v13 = vmul.f32 %v1313_v0, %v269_v61  ;;  %v1163_v15 = vpack.c.bf16 %v469_v6, %v468_v63  ;;  %v471_v16 = vmax.f32 %v407_v7, 0.0  ;;  %v409_v17 = vadd.f32 %v1323_v1, %v338_v8 }
  0x45   : > { %1214 = vst [vmem:[%s1355_s27 + $0xc8] sm:$0xff] %v1158_v5   ;;  %v341_v18 = vmul.f32 %v1313_v0, %v270_v4  ;;  %v472_v20 = vmax.f32 %v408_v11, 0.0  ;;  %v410_v21 = vadd.f32 %v1323_v1, %v339_v12  ;;  %v342_v23 = vmul.f32 %v1313_v0, %v271_v9 }
  0x46   : > { %v411_v22 = vadd.f32 %v1323_v1, %v340_v13  ;;  %1215 = vst [vmem:[%s1355_s27 + $0xd0] sm:$0xff] %v1163_v15   ;;  %v1168_v24 = vpack.c.bf16 %v471_v16, %v470_v10  ;;  %v473_v25 = vmax.f32 %v409_v17, 0.0  ;;  %v343_v27 = vmul.f32 %v1313_v0, %v272_v14 }
  0x47   : > { %v412_v26 = vadd.f32 %v1323_v1, %v341_v18  ;;  %v474_v28 = vmax.f32 %v410_v21, 0.0  ;;  %v413_v30 = vadd.f32 %v1323_v1, %v342_v23  ;;  %v344_v31 = vmul.f32 %v1313_v0, %v273_v19 }
  0x48   : > { %v475_v29 = vmax.f32 %v411_v22, 0.0  ;;  %1216 = vst [vmem:[%s1355_s27 + $0xd8] sm:$0xff] %v1168_v24   ;;  %v1173_v32 = vpack.c.bf16 %v473_v25, %v472_v20  ;;  %v414_v34 = vadd.f32 %v1323_v1, %v343_v27 }
  0x49   : > { %v476_v33 = vmax.f32 %v412_v26, 0.0  ;;  %v477_v36 = vmax.f32 %v413_v30, 0.0  ;;  %v415_v37 = vadd.f32 %v1323_v1, %v344_v31 }
  0x4a   : > { %v1178_v35 = vpack.c.bf16 %v475_v29, %v474_v28  ;;  %1217 = vst [vmem:[%s1355_s27 + $0xe0] sm:$0xff] %v1173_v32   ;;  %v478_v38 = vmax.f32 %v414_v34, 0.0 }
  0x4b   : > { %v1183_v39 = vpack.c.bf16 %v477_v36, %v476_v33  ;;  %v479_v40 = vmax.f32 %v415_v37, 0.0 }
  0x4c   : > { %1218 = vst [vmem:[%s1355_s27 + $0xe8] sm:$0xff] %v1178_v35  }
  0x4d   : > { %1219 = vst [vmem:[%s1355_s27 + $0xf0] sm:$0xff] %v1183_v39   ;;  %v1188_v41 = vpack.c.bf16 %v479_v40, %v478_v38 }
  0x4f   : > { %1220 = vst [vmem:[%s1355_s27 + $0xf8] sm:$0xff] %v1188_v41  }
  0x50 PF: > { %s13_s14 = sadd.s32 1, %s1267_s14   ;;  %s1568_s12 = smov %s1263_s13 }
  0x51   : > { %p10_p5 = scmp.ge.s32.totalorder %s13_s14, 6   ;;  %s1569_s13 = smov %s1571_s15 }
  0x53   :  { %12 = sbr.rel (!%p10_p5) target bundleno = 2 (0x2), region = 62 }

// kernel: generator_forward.17
= control target key start
LH: loop header
LB: loop body
LE: loop exit
PB: predicated region body
PF: predicated region fallthrough
CT: control target
= control target key end

     0   :  { %s2127_s9 = smov 0   ;;  %s2129_s10 = smov 0   ;;  %s2375_s0 = inlined_call_operand.vmem [shape: bf16[4,2048,256], index: 0, kind: input, shape index: {}]   ;;  %s2376_s1 = inlined_call_operand.vmem [shape: bf16[4,256,128], index: 1, kind: input, shape index: {}]   ;;  %s2377_s2 = inlined_call_operand.vmem [shape: f32[4,2048,128], index: 2, kind: output, shape index: {}]  }
   0x1   :  { %s2131_s11 = smov 0   ;;  %s2133_s12 = smov 0  }
   0x2   :  { %s2135_s13 = smov 0  }
   0x3 LB: > { %s34_s14 = sadd.s32 1, %s2101_s11  ;;  %s38_s15 = sadd.s32 1, %s2105_s12  ;;  %s2109_s13 = sphi %s2135_s13, %s12_s13   ;;  %s2105_s12 = sphi %s2133_s12, %s2381_s12   ;;  %s2101_s11 = sphi %s2131_s11, %s2380_s11   ;;  %s2097_s10 = sphi %s2129_s10, %s2379_s10   ;;  %s2093_s9 = sphi %s2127_s9, %s2378_s9  }
   0x4   : > { %p36_p0 = scmp.ge.s32.totalorder %s34_s14, 4  ;;  %p1665_p1 = scmp.ge.s32.totalorder %s2109_s13, 1 }
   0x5   : > { %p179_p2 = scmp.lt.s32.totalorder %s2109_s13, 17 }
   0x6   : > { %s2383_s14 = smov (%p36_p0, %s34_s14), 0  ;;  %s2385_s15 = smov (!%p36_p0, %s38_s15), %s2105_s12 }
   0x7   : > { %p180_p3 = pnand %p1665_p1, %p179_p2  ;;  %p40_p4 = scmp.ge.s32.totalorder %s2385_s15, 4 }
   0x8   : > { %p231_p5 = scmp.lt.s32.totalorder (!%p180_p3), %s2097_s10, 3  ;;  %s1666_s16 = sshll.u32 (!%p180_p3), %s2093_s9, 6  ;;  %v2111_v0 = vmov (!%p180_p3), 0  }
   0x9   : > { %s2387_s15 = smov (%p40_p4, %s2385_s15), 0  ;;  %183 = sbr.rel (%p180_p3) target bundleno = 430 (0x1ae), region = 28 }
   0xa   : > { %916 = vmatprep.subr.bf16.mxu0 (!%p180_p3), %v2111_v0  ;;  %1758 = vmatprep.subr.bf16.mxu1 (!%p180_p3), %v2111_v0  ;;  %p233_p6 = scmp.lt.s32.totalorder (!%p180_p3), %s1666_s16, 255 }
  0x10   : > { %s2389_s10 = smov (!%p231_p5, %s2097_s10), 3  ;;  %s2391_s16 = smov (!%p233_p6, %s1666_s16), 255 }
  0x11   : > { %s1757_s17 = sshll.u32 %s2389_s10, 7  ;;  %s1667_s21 = sshll.u32 %s2391_s16, 1 }
  0x12   : > { %s2165_s20 = scalar_lea.vmem %s2376_s1, %s1757_s17  ;;  %s1668_s22 = sshll.u32 %s2389_s10, 9 }
  0x13   : > { %v1831_v1 = vld [vmem:[%s2165_s20] sm:$0xff]   ;;  %v1832_v2 = vld [vmem:[%s2165_s20 + $0x8] sm:$0xff]   ;;  %v1833_v3 = vld [vmem:[%s2165_s20 + $0x10] sm:$0xff]   ;;  %s240_s23 = sadd.s32 %s1668_s22, %s1667_s21  ;;  %s1673_s28 = sshll.u32 %s2389_s10, 8 }
  0x14   : > { %917 = vmatpush1.bf16.msra.mxu0 %v1831_v1  ;;  %1774 = vmatpush1.bf16.msra.mxu1 %v1831_v1  ;;  %v1834_v4 = vld [vmem:[%s2165_s20 + $0x18] sm:$0xff]   ;;  %s1669_s24 = sshll.u32 %s240_s23, 2  ;;  %v1835_v5 = vld [vmem:[%s2165_s20 + $0x20] sm:$0xff]   ;;  %v1836_v7 = vld [vmem:[%s2165_s20 + $0x28] sm:$0xff]   ;;  %s2224_s29 = sadd.s32 %s1673_s28, %s2391_s16 }
  0x15   : > { %918 = vmatprep.subr.bf16.mxu0 %v2111_v0  ;;  %1759 = vmatprep.subr.bf16.mxu1 %v2111_v0  ;;  %s2185_s27 = scalar_lea.vmem %s2375_s0, %s1669_s24  ;;  %v1837_v9 = vld [vmem:[%s2165_s20 + $0x30] sm:$0xff]   ;;  %v1838_v10 = vld [vmem:[%s2165_s20 + $0x38] sm:$0xff]   ;;  %v1839_v11 = vld [vmem:[%s2165_s20 + $0x40] sm:$0xff]   ;;  %s1674_s30 = sshll.u32 %s2224_s29, 3 }
  0x16   : > { %v1849_v6 = vld [vmem:[%s2185_s27 + $0x4] ss:$8 sps:$4 sm:$0xff]   ;;  %v1841_v13 = vld [vmem:[%s2165_s20 + $0x50] sm:$0xff]   ;;  %v1842_v14 = vld [vmem:[%s2165_s20 + $0x58] sm:$0xff]   ;;  %s2294_s5 = scalar_lea.vmem %s2377_s2, %s1674_s30 }
  0x17   : > { %v1852_v8 = vld [vmem:[%s2185_s27 + $0x104] ss:$8 sps:$4 sm:$0xff]   ;;  %948 = vmatprep.mubr.bf16.mxu0 %v1849_v6  ;;  %v1845_v17 = vld [vmem:[%s2165_s20 + $0x70] sm:$0xff]   ;;  %v1846_v18 = vld [vmem:[%s2165_s20 + $0x78] sm:$0xff]  }
  0x18   : > { %919 = vmatpush1.bf16.msra.mxu0 %v1832_v2  ;;  %1775 = vmatpush1.bf16.msra.mxu1 %v1832_v2  ;;  %v1840_v12 = vld [vmem:[%s2165_s20 + $0x48] sm:$0xff]   ;;  %v1843_v15 = vld [vmem:[%s2165_s20 + $0x60] sm:$0xff]   ;;  %v1853_v21 = vld [vmem:[%s2185_s27 + $0x14] ss:$8 sps:$4 sm:$0xff]  }
  0x19   : > { %920 = vmatprep.subr.bf16.mxu0 %v2111_v0  ;;  %1760 = vmatprep.subr.bf16.mxu1 %v2111_v0  ;;  %v1844_v16 = vld [vmem:[%s2165_s20 + $0x68] sm:$0xff]   ;;  %v1855_v22 = vld [vmem:[%s2185_s27 + $0x114] ss:$8 sps:$4 sm:$0xff]   ;;  %v1857_v23 = vld [vmem:[%s2185_s27 + $0x10] ss:$8 sps:$4 sm:$0xff]  }
  0x1a   : > { %1076 = vmatprep.mubr.bf16.mxu1 %v1852_v8  ;;  %v1847_v19 = vld [vmem:[%s2185_s27] ss:$8 sps:$4 sm:$0xff]   ;;  %v1858_v24 = vld [vmem:[%s2185_s27 + $0x110] ss:$8 sps:$4 sm:$0xff]   ;;  %v1859_v25 = vld [vmem:[%s2185_s27 + $0x24] ss:$8 sps:$4 sm:$0xff]  }
  0x1b   : > { %v1850_v20 = vld [vmem:[%s2185_s27 + $0x100] ss:$8 sps:$4 sm:$0xff]   ;;  %v1861_v26 = vld [vmem:[%s2185_s27 + $0x124] ss:$8 sps:$4 sm:$0xff]   ;;  %v1865_v29 = vld [vmem:[%s2185_s27 + $0x34] ss:$8 sps:$4 sm:$0xff]  }
  0x1c   : > { %921 = vmatpush1.bf16.msra.mxu0 %v1833_v3  ;;  %1776 = vmatpush1.bf16.msra.mxu1 %v1833_v3  ;;  %v1863_v27 = vld [vmem:[%s2185_s27 + $0x20] ss:$8 sps:$4 sm:$0xff]   ;;  %v1867_v30 = vld [vmem:[%s2185_s27 + $0x134] ss:$8 sps:$4 sm:$0xff]   ;;  %v1869_v31 = vld [vmem:[%s2185_s27 + $0x30] ss:$8 sps:$4 sm:$0xff]  }
  0x1d   : > { %922 = vmatprep.subr.bf16.mxu0 %v2111_v0  ;;  %1761 = vmatprep.subr.bf16.mxu1 %v2111_v0  ;;  %v1864_v28 = vld [vmem:[%s2185_s27 + $0x120] ss:$8 sps:$4 sm:$0xff]   ;;  %v1870_v32 = vld [vmem:[%s2185_s27 + $0x130] ss:$8 sps:$4 sm:$0xff]   ;;  %v1871_v33 = vld [vmem:[%s2185_s27 + $0x44] ss:$8 sps:$4 sm:$0xff]  }
  0x1e   : > { %v1873_v34 = vld [vmem:[%s2185_s27 + $0x144] ss:$8 sps:$4 sm:$0xff]   ;;  %v1875_v35 = vld [vmem:[%s2185_s27 + $0x40] ss:$8 sps:$4 sm:$0xff]   ;;  %v1877_v37 = vld [vmem:[%s2185_s27 + $0x54] ss:$8 sps:$4 sm:$0xff]  }
  0x1f   : > { %v1876_v36 = vld [vmem:[%s2185_s27 + $0x140] ss:$8 sps:$4 sm:$0xff]   ;;  %v1879_v38 = vld [vmem:[%s2185_s27 + $0x154] ss:$8 sps:$4 sm:$0xff]   ;;  %v1881_v39 = vld [vmem:[%s2185_s27 + $0x50] ss:$8 sps:$4 sm:$0xff]  }
  0x20   : > { %923 = vmatpush1.bf16.msra.mxu0 %v1834_v4  ;;  %1777 = vmatpush1.bf16.msra.mxu1 %v1834_v4  ;;  %v1882_v40 = vld [vmem:[%s2185_s27 + $0x150] ss:$8 sps:$4 sm:$0xff]   ;;  %v1883_v41 = vld [vmem:[%s2185_s27 + $0x64] ss:$8 sps:$4 sm:$0xff]   ;;  %v1887_v43 = vld [vmem:[%s2185_s27 + $0x60] ss:$8 sps:$4 sm:$0xff]  }
  0x21   : > { %924 = vmatprep.subr.bf16.mxu0 %v2111_v0  ;;  %1762 = vmatprep.subr.bf16.mxu1 %v2111_v0  ;;  %v1885_v42 = vld [vmem:[%s2185_s27 + $0x164] ss:$8 sps:$4 sm:$0xff]   ;;  %v1888_v44 = vld [vmem:[%s2185_s27 + $0x160] ss:$8 sps:$4 sm:$0xff]   ;;  %v1889_v45 = vld [vmem:[%s2185_s27 + $0x74] ss:$8 sps:$4 sm:$0xff]  }
  0x22   : > { %v1891_v46 = vld [vmem:[%s2185_s27 + $0x174] ss:$8 sps:$4 sm:$0xff]   ;;  %v1893_v47 = vld [vmem:[%s2185_s27 + $0x70] ss:$8 sps:$4 sm:$0xff]   ;;  %v1895_v49 = vld [vmem:[%s2185_s27 + $0x84] ss:$8 sps:$4 sm:$0xff]  }
  0x23   : > { %v1894_v48 = vld [vmem:[%s2185_s27 + $0x170] ss:$8 sps:$4 sm:$0xff]   ;;  %v1897_v50 = vld [vmem:[%s2185_s27 + $0x184] ss:$8 sps:$4 sm:$0xff]   ;;  %v1899_v51 = vld [vmem:[%s2185_s27 + $0x80] ss:$8 sps:$4 sm:$0xff]  }
  0x24   : > { %925 = vmatpush1.bf16.msra.mxu0 %v1835_v5  ;;  %1778 = vmatpush1.bf16.msra.mxu1 %v1835_v5  ;;  %v1900_v52 = vld [vmem:[%s2185_s27 + $0x180] ss:$8 sps:$4 sm:$0xff]   ;;  %v1901_v53 = vld [vmem:[%s2185_s27 + $0x94] ss:$8 sps:$4 sm:$0xff]   ;;  %v1905_v55 = vld [vmem:[%s2185_s27 + $0x90] ss:$8 sps:$4 sm:$0xff]  }
  0x25   : > { %926 = vmatprep.subr.bf16.mxu0 %v2111_v0  ;;  %1763 = vmatprep.subr.bf16.mxu1 %v2111_v0  ;;  %v1903_v54 = vld [vmem:[%s2185_s27 + $0x194] ss:$8 sps:$4 sm:$0xff]   ;;  %v1906_v56 = vld [vmem:[%s2185_s27 + $0x190] ss:$8 sps:$4 sm:$0xff]   ;;  %v1907_v57 = vld [vmem:[%s2185_s27 + $0xa4] ss:$8 sps:$4 sm:$0xff]  }
  0x26   : > { %v1909_v58 = vld [vmem:[%s2185_s27 + $0x1a4] ss:$8 sps:$4 sm:$0xff]   ;;  %v1911_v59 = vld [vmem:[%s2185_s27 + $0xa0] ss:$8 sps:$4 sm:$0xff]   ;;  %v1913_v61 = vld [vmem:[%s2185_s27 + $0xb4] ss:$8 sps:$4 sm:$0xff]  }
  0x27   : > { %v1912_v60 = vld [vmem:[%s2185_s27 + $0x1a0] ss:$8 sps:$4 sm:$0xff]   ;;  %v1915_v62 = vld [vmem:[%s2185_s27 + $0x1b4] ss:$8 sps:$4 sm:$0xff]   ;;  %v1917_v63 = vld [vmem:[%s2185_s27 + $0xb0] ss:$8 sps:$4 sm:$0xff]  }
  0x28   : > { %927 = vmatpush1.bf16.msra.mxu0 %v1836_v7  ;;  %1779 = vmatpush1.bf16.msra.mxu1 %v1836_v7  ;;  %v1919_v1 = vld [vmem:[%s2185_s27 + $0xc4] ss:$8 sps:$4 sm:$0xff]   ;;  %v1923_v3 = vld [vmem:[%s2185_s27 + $0xc0] ss:$8 sps:$4 sm:$0xff]   ;;  %v1925_v5 = vld [vmem:[%s2185_s27 + $0xd4] ss:$8 sps:$4 sm:$0xff]  }
  0x29   : > { %928 = vmatprep.subr.bf16.mxu0 %v2111_v0  ;;  %1764 = vmatprep.subr.bf16.mxu1 %v2111_v0  ;;  %v1921_v2 = vld [vmem:[%s2185_s27 + $0x1c4] ss:$8 sps:$4 sm:$0xff]   ;;  %v1924_v4 = vld [vmem:[%s2185_s27 + $0x1c0] ss:$8 sps:$4 sm:$0xff]   ;;  %v1927_v6 = vld [vmem:[%s2185_s27 + $0x1d4] ss:$8 sps:$4 sm:$0xff]  }
  0x2a   : > { %v1929_v7 = vld [vmem:[%s2185_s27 + $0xd0] ss:$8 sps:$4 sm:$0xff]  }
  0x2b   : > { %v1930_v8 = vld [vmem:[%s2185_s27 + $0x1d0] ss:$8 sps:$4 sm:$0xff]  }
  0x2c   : > { %929 = vmatpush1.bf16.msra.mxu0 %v1837_v9  ;;  %1780 = vmatpush1.bf16.msra.mxu1 %v1837_v9  ;;  %v1931_v9 = vld [vmem:[%s2185_s27 + $0xe4] ss:$8 sps:$4 sm:$0xff]  }
  0x2d   : > { %930 = vmatprep.subr.bf16.mxu0 %v2111_v0  ;;  %1765 = vmatprep.subr.bf16.mxu1 %v2111_v0 }
  0x30   : > { %931 = vmatpush1.bf16.msra.mxu0 %v1838_v10  ;;  %1781 = vmatpush1.bf16.msra.mxu1 %v1838_v10  ;;  %v1933_v10 = vld [vmem:[%s2185_s27 + $0x1e4] ss:$8 sps:$4 sm:$0xff]  }
  0x31   : > { %932 = vmatprep.subr.bf16.mxu0 %v2111_v0  ;;  %1766 = vmatprep.subr.bf16.mxu1 %v2111_v0 }
  0x34   : > { %933 = vmatpush1.bf16.msra.mxu0 %v1839_v11  ;;  %1782 = vmatpush1.bf16.msra.mxu1 %v1839_v11  ;;  %v1935_v11 = vld [vmem:[%s2185_s27 + $0xe0] ss:$8 sps:$4 sm:$0xff]  }
  0x35   : > { %934 = vmatprep.subr.bf16.mxu0 %v2111_v0  ;;  %1767 = vmatprep.subr.bf16.mxu1 %v2111_v0 }
  0x38   : > { %935 = vmatpush1.bf16.msra.mxu0 %v1840_v12  ;;  %1783 = vmatpush1.bf16.msra.mxu1 %v1840_v12  ;;  %v1936_v12 = vld [vmem:[%s2185_s27 + $0x1e0] ss:$8 sps:$4 sm:$0xff]  }
  0x39   : > { %936 = vmatprep.subr.bf16.mxu0 %v2111_v0  ;;  %1768 = vmatprep.subr.bf16.mxu1 %v2111_v0 }
  0x3c   : > { %937 = vmatpush1.bf16.msra.mxu0 %v1841_v13  ;;  %1784 = vmatpush1.bf16.msra.mxu1 %v1841_v13  ;;  %v1937_v13 = vld [vmem:[%s2185_s27 + $0xf4] ss:$8 sps:$4 sm:$0xff]  }
  0x3d   : > { %938 = vmatprep.subr.bf16.mxu0 %v2111_v0  ;;  %1769 = vmatprep.subr.bf16.mxu1 %v2111_v0 }
  0x40   : > { %939 = vmatpush1.bf16.msra.mxu0 %v1842_v14  ;;  %1785 = vmatpush1.bf16.msra.mxu1 %v1842_v14  ;;  %v1939_v14 = vld [vmem:[%s2185_s27 + $0x1f4] ss:$8 sps:$4 sm:$0xff]  }
  0x41   : > { %940 = vmatprep.subr.bf16.mxu0 %v2111_v0  ;;  %1770 = vmatprep.subr.bf16.mxu1 %v2111_v0 }
  0x44   : > { %941 = vmatpush1.bf16.msra.mxu0 %v1843_v15  ;;  %1786 = vmatpush1.bf16.msra.mxu1 %v1843_v15  ;;  %v1941_v15 = vld [vmem:[%s2185_s27 + $0xf0] ss:$8 sps:$4 sm:$0xff]  }
  0x45   : > { %942 = vmatprep.subr.bf16.mxu0 %v2111_v0  ;;  %1771 = vmatprep.subr.bf16.mxu1 %v2111_v0 }
  0x48   : > { %943 = vmatpush1.bf16.msra.mxu0 %v1844_v16  ;;  %1787 = vmatpush1.bf16.msra.mxu1 %v1844_v16  ;;  %v1942_v16 = vld [vmem:[%s2185_s27 + $0x1f0] ss:$8 sps:$4 sm:$0xff]  }
  0x49   : > { %944 = vmatprep.subr.bf16.mxu0 %v2111_v0  ;;  %1772 = vmatprep.subr.bf16.mxu1 %v2111_v0 }
  0x4c   : > { %945 = vmatpush1.bf16.msra.mxu0 %v1845_v17  ;;  %1788 = vmatpush1.bf16.msra.mxu1 %v1845_v17 }
  0x4d   : > { %946 = vmatprep.subr.bf16.mxu0 %v2111_v0  ;;  %1773 = vmatprep.subr.bf16.mxu1 %v2111_v0  ;;  %v1918_v0 = vld [vmem:[%s2185_s27 + $0x1b0] ss:$8 sps:$4 sm:$0xff]  }
  0x50   : > { %947 = vmatpush1.bf16.msra.mxu0 %v1846_v18  ;;  %1789 = vmatpush1.bf16.msra.mxu1 %v1846_v18 }
  0x53   : > { %949 = vmatmul.mubr.bf16.vlgmr.msra.gmra.mrb[0].mxu0 %v1847_v19  ;;  %1077 = vmatmul.mubr.bf16.vlgmr.msra.gmra.mrb[0].mxu1 %v1850_v20 }
  0x54   : > { %956 = vmatprep.mubr.bf16.mxu0 %v1853_v21  ;;  %1084 = vmatprep.mubr.bf16.mxu1 %v1855_v22 }
  0x5b   : > { %957 = vmatmul.mubr.bf16.gmra.mrb[4].mxu0 %v1857_v23  ;;  %1085 = vmatmul.mubr.bf16.gmra.mrb[4].mxu1 %v1858_v24 }
  0x5c   : > { %964 = vmatprep.mubr.bf16.mxu0 %v1859_v25  ;;  %1092 = vmatprep.mubr.bf16.mxu1 %v1861_v26 }
  0x63   : > { %965 = vmatmul.mubr.bf16.gmra.mrb[8].mxu0 %v1863_v27  ;;  %1093 = vmatmul.mubr.bf16.gmra.mrb[8].mxu1 %v1864_v28 }
  0x64   : > { %972 = vmatprep.mubr.bf16.mxu0 %v1865_v29  ;;  %1100 = vmatprep.mubr.bf16.mxu1 %v1867_v30 }
  0x6b   : > { %973 = vmatmul.mubr.bf16.gmra.mrb[12].mxu0 %v1869_v31  ;;  %1101 = vmatmul.mubr.bf16.gmra.mrb[12].mxu1 %v1870_v32 }
  0x6c   : > { %980 = vmatprep.mubr.bf16.mxu0 %v1871_v33  ;;  %1108 = vmatprep.mubr.bf16.mxu1 %v1873_v34 }
  0x73   : > { %981 = vmatmul.mubr.bf16.gmra.mrb[16].mxu0 %v1875_v35  ;;  %1109 = vmatmul.mubr.bf16.gmra.mrb[16].mxu1 %v1876_v36 }
  0x74   : > { %988 = vmatprep.mubr.bf16.mxu0 %v1877_v37  ;;  %1116 = vmatprep.mubr.bf16.mxu1 %v1879_v38 }
  0x7b   : > { %989 = vmatmul.mubr.bf16.gmra.mrb[20].mxu0 %v1881_v39  ;;  %1117 = vmatmul.mubr.bf16.gmra.mrb[20].mxu1 %v1882_v40 }
  0x7c   : > { %996 = vmatprep.mubr.bf16.mxu0 %v1883_v41  ;;  %1124 = vmatprep.mubr.bf16.mxu1 %v1885_v42 }
  0x83   : > { %997 = vmatmul.mubr.bf16.gmra.mrb[24].mxu0 %v1887_v43  ;;  %1125 = vmatmul.mubr.bf16.gmra.mrb[24].mxu1 %v1888_v44 }
  0x84   : > { %1004 = vmatprep.mubr.bf16.mxu0 %v1889_v45  ;;  %1132 = vmatprep.mubr.bf16.mxu1 %v1891_v46 }
  0x8b   : > { %1005 = vmatmul.mubr.bf16.gmra.mrb[28].mxu0 %v1893_v47  ;;  %1133 = vmatmul.mubr.bf16.gmra.mrb[28].mxu1 %v1894_v48 }
  0x8c   : > { %1012 = vmatprep.mubr.bf16.mxu0 %v1895_v49  ;;  %1140 = vmatprep.mubr.bf16.mxu1 %v1897_v50 }
  0x93   : > { %1013 = vmatmul.mubr.bf16.gmra.mrb[32].mxu0 %v1899_v51  ;;  %1141 = vmatmul.mubr.bf16.gmra.mrb[32].mxu1 %v1900_v52 }
  0x94   : > { %1020 = vmatprep.mubr.bf16.mxu0 %v1901_v53  ;;  %1148 = vmatprep.mubr.bf16.mxu1 %v1903_v54 }
  0x9b   : > { %1021 = vmatmul.mubr.bf16.gmra.mrb[36].mxu0 %v1905_v55  ;;  %1149 = vmatmul.mubr.bf16.gmra.mrb[36].mxu1 %v1906_v56 }
  0x9c   : > { %1028 = vmatprep.mubr.bf16.mxu0 %v1907_v57  ;;  %1156 = vmatprep.mubr.bf16.mxu1 %v1909_v58 }
  0xa3   : > { %1029 = vmatmul.mubr.bf16.gmra.mrb[40].mxu0 %v1911_v59  ;;  %1157 = vmatmul.mubr.bf16.gmra.mrb[40].mxu1 %v1912_v60 }
  0xa4   : > { %1036 = vmatprep.mubr.bf16.mxu0 %v1913_v61  ;;  %1164 = vmatprep.mubr.bf16.mxu1 %v1915_v62 }
  0xab   : > { %1037 = vmatmul.mubr.bf16.gmra.mrb[44].mxu0 %v1917_v63  ;;  %1165 = vmatmul.mubr.bf16.gmra.mrb[44].mxu1 %v1918_v0 }
  0xac   : > { %1044 = vmatprep.mubr.bf16.mxu0 %v1919_v1  ;;  %1172 = vmatprep.mubr.bf16.mxu1 %v1921_v2 }
  0xb3   : > { %1045 = vmatmul.mubr.bf16.gmra.mrb[48].mxu0 %v1923_v3  ;;  %1173 = vmatmul.mubr.bf16.gmra.mrb[48].mxu1 %v1924_v4 }
  0xb4   : > { %1052 = vmatprep.mubr.bf16.mxu0 %v1925_v5  ;;  %1180 = vmatprep.mubr.bf16.mxu1 %v1927_v6 }
  0xbb   : > { %1053 = vmatmul.mubr.bf16.gmra.mrb[52].mxu0 %v1929_v7  ;;  %1181 = vmatmul.mubr.bf16.gmra.mrb[52].mxu1 %v1930_v8 }
  0xbc   : > { %1060 = vmatprep.mubr.bf16.mxu0 %v1931_v9  ;;  %1188 = vmatprep.mubr.bf16.mxu1 %v1933_v10 }
  0xc3   : > { %1061 = vmatmul.mubr.bf16.gmra.mrb[56].mxu0 %v1935_v11  ;;  %1189 = vmatmul.mubr.bf16.gmra.mrb[56].mxu1 %v1936_v12 }
  0xc4   : > { %1068 = vmatprep.mubr.bf16.mxu0 %v1937_v13  ;;  %1196 = vmatprep.mubr.bf16.mxu1 %v1939_v14 }
  0xcb   : > { %1069 = vmatmul.mubr.bf16.gmra.mrb[60].mxu0 %v1941_v15  ;;  %1197 = vmatmul.mubr.bf16.gmra.mrb[60].mxu1 %v1942_v16 }
 0x126   : > { %v950_v17 = vpop.f32.mrb[0].mxu0  ;;  %v1078_v18 = vpop.f32.mrb[0].mxu1 }
 0x127   : > { %1943 = vtanh.f32 %v950_v17  ;;  %v952_v19 = vpop.f32.mrb[1].mxu0  ;;  %v1080_v20 = vpop.f32.mrb[1].mxu1 }
 0x128   : > { %1945 = vtanh.f32 %v1078_v18  ;;  %v953_v21 = vpop.f32.mrb[2].mxu0  ;;  %v1081_v22 = vpop.f32.mrb[2].mxu1 }
 0x129   : > { %1947 = vtanh.f32 %v953_v21  ;;  %v955_v23 = vpop.f32.mrb[3].mxu0  ;;  %v1083_v24 = vpop.f32.mrb[3].mxu1 }
 0x12a   : > { %1949 = vtanh.f32 %v1081_v22 }
 0x12e   : > { %v958_v25 = vpop.f32.mrb[4].mxu0  ;;  %v1086_v26 = vpop.f32.mrb[4].mxu1 }
 0x12f   : > { %1951 = vtanh.f32 %v958_v25  ;;  %v960_v27 = vpop.f32.mrb[5].mxu0  ;;  %v1088_v28 = vpop.f32.mrb[5].mxu1 }
 0x130   : > { %1953 = vtanh.f32 %v1086_v26  ;;  %v961_v29 = vpop.f32.mrb[6].mxu0  ;;  %v1089_v30 = vpop.f32.mrb[6].mxu1 }
 0x131   : > { %v1944_v31 = vpop.eup %1943  ;;  %1955 = vtanh.f32 %v961_v29  ;;  %v963_v32 = vpop.f32.mrb[7].mxu0 }
 0x132   : > { %v1091_v33 = vpop.f32.mrb[7].mxu1  ;;  %v1946_v34 = vpop.eup %1945  ;;  %1464 = vst [vmem:[%s2294_s5] sm:$0xff] %v1944_v31  ;;  %1957 = vtanh.f32 %v1089_v30 }
 0x133   : > { %v1948_v35 = vpop.eup %1947  ;;  %1496 = vst [vmem:[%s2294_s5 + $0x100] sm:$0xff] %v1946_v34 }
 0x134   : > { %v1950_v36 = vpop.eup %1949  ;;  %1465 = vst [vmem:[%s2294_s5 + $0x8] sm:$0xff] %v1948_v35 }
 0x135   : > { %1497 = vst [vmem:[%s2294_s5 + $0x108] sm:$0xff] %v1950_v36 }
 0x136   : > { %v966_v37 = vpop.f32.mrb[8].mxu0  ;;  %v1094_v38 = vpop.f32.mrb[8].mxu1 }
 0x137   : > { %1959 = vtanh.f32 %v966_v37  ;;  %v968_v39 = vpop.f32.mrb[9].mxu0  ;;  %v1096_v40 = vpop.f32.mrb[9].mxu1 }
 0x138   : > { %1961 = vtanh.f32 %v1094_v38  ;;  %v969_v41 = vpop.f32.mrb[10].mxu0  ;;  %v1097_v42 = vpop.f32.mrb[10].mxu1 }
 0x139   : > { %v1952_v43 = vpop.eup %1951  ;;  %1963 = vtanh.f32 %v969_v41  ;;  %v971_v44 = vpop.f32.mrb[11].mxu0 }
 0x13a   : > { %v1099_v45 = vpop.f32.mrb[11].mxu1  ;;  %v1954_v46 = vpop.eup %1953  ;;  %1466 = vst [vmem:[%s2294_s5 + $0x10] sm:$0xff] %v1952_v43  ;;  %1965 = vtanh.f32 %v1097_v42 }
 0x13b   : > { %v1956_v47 = vpop.eup %1955  ;;  %1498 = vst [vmem:[%s2294_s5 + $0x110] sm:$0xff] %v1954_v46 }
 0x13c   : > { %v1958_v48 = vpop.eup %1957  ;;  %1467 = vst [vmem:[%s2294_s5 + $0x18] sm:$0xff] %v1956_v47 }
 0x13d   : > { %1499 = vst [vmem:[%s2294_s5 + $0x118] sm:$0xff] %v1958_v48 }
 0x13e   : > { %v974_v49 = vpop.f32.mrb[12].mxu0  ;;  %v1102_v50 = vpop.f32.mrb[12].mxu1 }
 0x13f   : > { %1967 = vtanh.f32 %v974_v49  ;;  %v976_v51 = vpop.f32.mrb[13].mxu0  ;;  %v1104_v52 = vpop.f32.mrb[13].mxu1 }
 0x140   : > { %1969 = vtanh.f32 %v1102_v50  ;;  %v977_v53 = vpop.f32.mrb[14].mxu0  ;;  %v1105_v54 = vpop.f32.mrb[14].mxu1 }
 0x141   : > { %v1960_v55 = vpop.eup %1959  ;;  %1971 = vtanh.f32 %v977_v53  ;;  %v979_v56 = vpop.f32.mrb[15].mxu0 }
 0x142   : > { %v1107_v57 = vpop.f32.mrb[15].mxu1  ;;  %v1962_v58 = vpop.eup %1961  ;;  %1468 = vst [vmem:[%s2294_s5 + $0x20] sm:$0xff] %v1960_v55  ;;  %1973 = vtanh.f32 %v1105_v54 }
 0x143   : > { %v1964_v59 = vpop.eup %1963  ;;  %1500 = vst [vmem:[%s2294_s5 + $0x120] sm:$0xff] %v1962_v58 }
 0x144   : > { %v1966_v60 = vpop.eup %1965  ;;  %1469 = vst [vmem:[%s2294_s5 + $0x28] sm:$0xff] %v1964_v59 }
 0x145   : > { %1501 = vst [vmem:[%s2294_s5 + $0x128] sm:$0xff] %v1966_v60 }
 0x146   : > { %v982_v61 = vpop.f32.mrb[16].mxu0  ;;  %v1110_v62 = vpop.f32.mrb[16].mxu1 }
 0x147   : > { %1975 = vtanh.f32 %v982_v61  ;;  %v984_v63 = vpop.f32.mrb[17].mxu0  ;;  %v1112_v0 = vpop.f32.mrb[17].mxu1 }
 0x148   : > { %1977 = vtanh.f32 %v1110_v62  ;;  %v985_v1 = vpop.f32.mrb[18].mxu0  ;;  %v1113_v2 = vpop.f32.mrb[18].mxu1 }
 0x149   : > { %v1968_v3 = vpop.eup %1967  ;;  %1979 = vtanh.f32 %v985_v1  ;;  %v987_v4 = vpop.f32.mrb[19].mxu0 }
 0x14a   : > { %v1115_v5 = vpop.f32.mrb[19].mxu1  ;;  %v1970_v6 = vpop.eup %1969  ;;  %1470 = vst [vmem:[%s2294_s5 + $0x30] sm:$0xff] %v1968_v3  ;;  %1981 = vtanh.f32 %v1113_v2 }
 0x14b   : > { %v1972_v7 = vpop.eup %1971  ;;  %1502 = vst [vmem:[%s2294_s5 + $0x130] sm:$0xff] %v1970_v6 }
 0x14c   : > { %v1974_v8 = vpop.eup %1973  ;;  %1471 = vst [vmem:[%s2294_s5 + $0x38] sm:$0xff] %v1972_v7 }
 0x14d   : > { %1503 = vst [vmem:[%s2294_s5 + $0x138] sm:$0xff] %v1974_v8 }
 0x14e   : > { %v990_v9 = vpop.f32.mrb[20].mxu0  ;;  %v1118_v10 = vpop.f32.mrb[20].mxu1 }
 0x14f   : > { %1983 = vtanh.f32 %v990_v9  ;;  %v992_v11 = vpop.f32.mrb[21].mxu0  ;;  %v1120_v12 = vpop.f32.mrb[21].mxu1 }
 0x150   : > { %1985 = vtanh.f32 %v1118_v10  ;;  %v993_v13 = vpop.f32.mrb[22].mxu0  ;;  %v1121_v14 = vpop.f32.mrb[22].mxu1 }
 0x151   : > { %v1976_v15 = vpop.eup %1975  ;;  %1987 = vtanh.f32 %v993_v13  ;;  %v995_v16 = vpop.f32.mrb[23].mxu0 }
 0x152   : > { %v1123_v17 = vpop.f32.mrb[23].mxu1  ;;  %v1978_v18 = vpop.eup %1977  ;;  %1472 = vst [vmem:[%s2294_s5 + $0x40] sm:$0xff] %v1976_v15  ;;  %1989 = vtanh.f32 %v1121_v14 }
 0x153   : > { %v1980_v19 = vpop.eup %1979  ;;  %1504 = vst [vmem:[%s2294_s5 + $0x140] sm:$0xff] %v1978_v18 }
 0x154   : > { %v1982_v20 = vpop.eup %1981  ;;  %1473 = vst [vmem:[%s2294_s5 + $0x48] sm:$0xff] %v1980_v19 }
 0x155   : > { %1505 = vst [vmem:[%s2294_s5 + $0x148] sm:$0xff] %v1982_v20 }
 0x156   : > { %v998_v21 = vpop.f32.mrb[24].mxu0  ;;  %v1126_v22 = vpop.f32.mrb[24].mxu1 }
 0x157   : > { %1991 = vtanh.f32 %v998_v21  ;;  %v1000_v23 = vpop.f32.mrb[25].mxu0  ;;  %v1128_v24 = vpop.f32.mrb[25].mxu1 }
 0x158   : > { %1993 = vtanh.f32 %v1126_v22  ;;  %v1001_v25 = vpop.f32.mrb[26].mxu0  ;;  %v1129_v26 = vpop.f32.mrb[26].mxu1 }
 0x159   : > { %v1984_v27 = vpop.eup %1983  ;;  %1995 = vtanh.f32 %v1001_v25  ;;  %v1003_v28 = vpop.f32.mrb[27].mxu0 }
 0x15a   : > { %v1131_v29 = vpop.f32.mrb[27].mxu1  ;;  %v1986_v30 = vpop.eup %1985  ;;  %1474 = vst [vmem:[%s2294_s5 + $0x50] sm:$0xff] %v1984_v27  ;;  %1997 = vtanh.f32 %v1129_v26 }
 0x15b   : > { %v1988_v31 = vpop.eup %1987  ;;  %1506 = vst [vmem:[%s2294_s5 + $0x150] sm:$0xff] %v1986_v30 }
 0x15c   : > { %v1990_v32 = vpop.eup %1989  ;;  %1475 = vst [vmem:[%s2294_s5 + $0x58] sm:$0xff] %v1988_v31 }
 0x15d   : > { %1507 = vst [vmem:[%s2294_s5 + $0x158] sm:$0xff] %v1990_v32 }
 0x15e   : > { %v1006_v33 = vpop.f32.mrb[28].mxu0  ;;  %v1134_v34 = vpop.f32.mrb[28].mxu1 }
 0x15f   : > { %1999 = vtanh.f32 %v1006_v33  ;;  %v1008_v35 = vpop.f32.mrb[29].mxu0  ;;  %v1136_v36 = vpop.f32.mrb[29].mxu1 }
 0x160   : > { %2001 = vtanh.f32 %v1134_v34  ;;  %v1009_v37 = vpop.f32.mrb[30].mxu0  ;;  %v1137_v38 = vpop.f32.mrb[30].mxu1 }
 0x161   : > { %v1992_v39 = vpop.eup %1991  ;;  %2003 = vtanh.f32 %v1009_v37  ;;  %v1011_v40 = vpop.f32.mrb[31].mxu0 }
 0x162   : > { %v1139_v41 = vpop.f32.mrb[31].mxu1  ;;  %v1994_v42 = vpop.eup %1993  ;;  %1476 = vst [vmem:[%s2294_s5 + $0x60] sm:$0xff] %v1992_v39  ;;  %2005 = vtanh.f32 %v1137_v38 }
 0x163   : > { %v1996_v43 = vpop.eup %1995  ;;  %1508 = vst [vmem:[%s2294_s5 + $0x160] sm:$0xff] %v1994_v42 }
 0x164   : > { %v1998_v44 = vpop.eup %1997  ;;  %1477 = vst [vmem:[%s2294_s5 + $0x68] sm:$0xff] %v1996_v43 }
 0x165   : > { %1509 = vst [vmem:[%s2294_s5 + $0x168] sm:$0xff] %v1998_v44 }
 0x166   : > { %v1014_v45 = vpop.f32.mrb[32].mxu0  ;;  %v1142_v46 = vpop.f32.mrb[32].mxu1 }
 0x167   : > { %2007 = vtanh.f32 %v1014_v45  ;;  %v1016_v47 = vpop.f32.mrb[33].mxu0  ;;  %v1144_v48 = vpop.f32.mrb[33].mxu1 }
 0x168   : > { %2009 = vtanh.f32 %v1142_v46  ;;  %v1017_v49 = vpop.f32.mrb[34].mxu0  ;;  %v1145_v50 = vpop.f32.mrb[34].mxu1 }
 0x169   : > { %v2000_v51 = vpop.eup %1999  ;;  %2011 = vtanh.f32 %v1017_v49  ;;  %v1019_v52 = vpop.f32.mrb[35].mxu0 }
 0x16a   : > { %v1147_v53 = vpop.f32.mrb[35].mxu1  ;;  %v2002_v54 = vpop.eup %2001  ;;  %1478 = vst [vmem:[%s2294_s5 + $0x70] sm:$0xff] %v2000_v51  ;;  %2013 = vtanh.f32 %v1145_v50 }
 0x16b   : > { %v2004_v55 = vpop.eup %2003  ;;  %1510 = vst [vmem:[%s2294_s5 + $0x170] sm:$0xff] %v2002_v54 }
 0x16c   : > { %v2006_v56 = vpop.eup %2005  ;;  %1479 = vst [vmem:[%s2294_s5 + $0x78] sm:$0xff] %v2004_v55 }
 0x16d   : > { %1511 = vst [vmem:[%s2294_s5 + $0x178] sm:$0xff] %v2006_v56 }
 0x16e   : > { %v1022_v57 = vpop.f32.mrb[36].mxu0  ;;  %v1150_v58 = vpop.f32.mrb[36].mxu1 }
 0x16f   : > { %2015 = vtanh.f32 %v1022_v57  ;;  %v1024_v59 = vpop.f32.mrb[37].mxu0  ;;  %v1152_v60 = vpop.f32.mrb[37].mxu1 }
 0x170   : > { %2017 = vtanh.f32 %v1150_v58  ;;  %v1025_v61 = vpop.f32.mrb[38].mxu0  ;;  %v1153_v62 = vpop.f32.mrb[38].mxu1 }
 0x171   : > { %v2008_v63 = vpop.eup %2007  ;;  %2019 = vtanh.f32 %v1025_v61  ;;  %v1027_v0 = vpop.f32.mrb[39].mxu0 }
 0x172   : > { %v1155_v1 = vpop.f32.mrb[39].mxu1  ;;  %v2010_v2 = vpop.eup %2009  ;;  %1480 = vst [vmem:[%s2294_s5 + $0x80] sm:$0xff] %v2008_v63  ;;  %2021 = vtanh.f32 %v1153_v62 }
 0x173   : > { %v2012_v3 = vpop.eup %2011  ;;  %1512 = vst [vmem:[%s2294_s5 + $0x180] sm:$0xff] %v2010_v2 }
 0x174   : > { %v2014_v4 = vpop.eup %2013  ;;  %1481 = vst [vmem:[%s2294_s5 + $0x88] sm:$0xff] %v2012_v3 }
 0x175   : > { %1513 = vst [vmem:[%s2294_s5 + $0x188] sm:$0xff] %v2014_v4 }
 0x176   : > { %v1030_v5 = vpop.f32.mrb[40].mxu0  ;;  %v1158_v6 = vpop.f32.mrb[40].mxu1 }
 0x177   : > { %2023 = vtanh.f32 %v1030_v5  ;;  %v1032_v7 = vpop.f32.mrb[41].mxu0  ;;  %v1160_v8 = vpop.f32.mrb[41].mxu1 }
 0x178   : > { %2025 = vtanh.f32 %v1158_v6  ;;  %v1033_v9 = vpop.f32.mrb[42].mxu0  ;;  %v1161_v10 = vpop.f32.mrb[42].mxu1 }
 0x179   : > { %v2016_v11 = vpop.eup %2015  ;;  %2027 = vtanh.f32 %v1033_v9  ;;  %v1035_v12 = vpop.f32.mrb[43].mxu0 }
 0x17a   : > { %v1163_v13 = vpop.f32.mrb[43].mxu1  ;;  %v2018_v14 = vpop.eup %2017  ;;  %1482 = vst [vmem:[%s2294_s5 + $0x90] sm:$0xff] %v2016_v11  ;;  %2029 = vtanh.f32 %v1161_v10 }
 0x17b   : > { %v2020_v15 = vpop.eup %2019  ;;  %1514 = vst [vmem:[%s2294_s5 + $0x190] sm:$0xff] %v2018_v14 }
 0x17c   : > { %v2022_v16 = vpop.eup %2021  ;;  %1483 = vst [vmem:[%s2294_s5 + $0x98] sm:$0xff] %v2020_v15 }
 0x17d   : > { %1515 = vst [vmem:[%s2294_s5 + $0x198] sm:$0xff] %v2022_v16 }
 0x17e   : > { %v1038_v17 = vpop.f32.mrb[44].mxu0  ;;  %v1166_v18 = vpop.f32.mrb[44].mxu1 }
 0x17f   : > { %2031 = vtanh.f32 %v1038_v17  ;;  %v1040_v19 = vpop.f32.mrb[45].mxu0  ;;  %v1168_v20 = vpop.f32.mrb[45].mxu1 }
 0x180   : > { %2033 = vtanh.f32 %v1166_v18  ;;  %v1041_v21 = vpop.f32.mrb[46].mxu0  ;;  %v1169_v22 = vpop.f32.mrb[46].mxu1 }
 0x181   : > { %v2024_v23 = vpop.eup %2023  ;;  %2035 = vtanh.f32 %v1041_v21  ;;  %v1043_v24 = vpop.f32.mrb[47].mxu0 }
 0x182   : > { %v1171_v25 = vpop.f32.mrb[47].mxu1  ;;  %v2026_v26 = vpop.eup %2025  ;;  %1484 = vst [vmem:[%s2294_s5 + $0xa0] sm:$0xff] %v2024_v23  ;;  %2037 = vtanh.f32 %v1169_v22 }
 0x183   : > { %v2028_v27 = vpop.eup %2027  ;;  %1516 = vst [vmem:[%s2294_s5 + $0x1a0] sm:$0xff] %v2026_v26 }
 0x184   : > { %v2030_v28 = vpop.eup %2029  ;;  %1485 = vst [vmem:[%s2294_s5 + $0xa8] sm:$0xff] %v2028_v27 }
 0x185   : > { %1517 = vst [vmem:[%s2294_s5 + $0x1a8] sm:$0xff] %v2030_v28 }
 0x186   : > { %v1046_v29 = vpop.f32.mrb[48].mxu0  ;;  %v1174_v30 = vpop.f32.mrb[48].mxu1 }
 0x187   : > { %2039 = vtanh.f32 %v1046_v29  ;;  %v1048_v31 = vpop.f32.mrb[49].mxu0  ;;  %v1176_v32 = vpop.f32.mrb[49].mxu1 }
 0x188   : > { %2041 = vtanh.f32 %v1174_v30  ;;  %v1049_v33 = vpop.f32.mrb[50].mxu0  ;;  %v1177_v34 = vpop.f32.mrb[50].mxu1 }
 0x189   : > { %v2032_v35 = vpop.eup %2031  ;;  %2043 = vtanh.f32 %v1049_v33  ;;  %v1051_v36 = vpop.f32.mrb[51].mxu0 }
 0x18a   : > { %v1179_v37 = vpop.f32.mrb[51].mxu1  ;;  %v2034_v38 = vpop.eup %2033  ;;  %1486 = vst [vmem:[%s2294_s5 + $0xb0] sm:$0xff] %v2032_v35  ;;  %2045 = vtanh.f32 %v1177_v34 }
 0x18b   : > { %v2036_v39 = vpop.eup %2035  ;;  %1518 = vst [vmem:[%s2294_s5 + $0x1b0] sm:$0xff] %v2034_v38 }
 0x18c   : > { %v2038_v40 = vpop.eup %2037  ;;  %1487 = vst [vmem:[%s2294_s5 + $0xb8] sm:$0xff] %v2036_v39 }
 0x18d   : > { %1519 = vst [vmem:[%s2294_s5 + $0x1b8] sm:$0xff] %v2038_v40 }
 0x18e   : > { %v1054_v41 = vpop.f32.mrb[52].mxu0  ;;  %v1182_v42 = vpop.f32.mrb[52].mxu1 }
 0x18f   : > { %2047 = vtanh.f32 %v1054_v41  ;;  %v1056_v43 = vpop.f32.mrb[53].mxu0  ;;  %v1184_v44 = vpop.f32.mrb[53].mxu1 }
 0x190   : > { %2049 = vtanh.f32 %v1182_v42  ;;  %v1057_v45 = vpop.f32.mrb[54].mxu0  ;;  %v1185_v46 = vpop.f32.mrb[54].mxu1 }
 0x191   : > { %v2040_v47 = vpop.eup %2039  ;;  %2051 = vtanh.f32 %v1057_v45  ;;  %v1059_v48 = vpop.f32.mrb[55].mxu0 }
 0x192   : > { %v1187_v49 = vpop.f32.mrb[55].mxu1  ;;  %v2042_v50 = vpop.eup %2041  ;;  %1488 = vst [vmem:[%s2294_s5 + $0xc0] sm:$0xff] %v2040_v47  ;;  %2053 = vtanh.f32 %v1185_v46 }
 0x193   : > { %v2044_v51 = vpop.eup %2043  ;;  %1520 = vst [vmem:[%s2294_s5 + $0x1c0] sm:$0xff] %v2042_v50 }
 0x194   : > { %v2046_v52 = vpop.eup %2045  ;;  %1489 = vst [vmem:[%s2294_s5 + $0xc8] sm:$0xff] %v2044_v51 }
 0x195   : > { %1521 = vst [vmem:[%s2294_s5 + $0x1c8] sm:$0xff] %v2046_v52 }
 0x196   : > { %v1062_v53 = vpop.f32.mrb[56].mxu0  ;;  %v1190_v54 = vpop.f32.mrb[56].mxu1 }
 0x197   : > { %2055 = vtanh.f32 %v1062_v53  ;;  %v1064_v55 = vpop.f32.mrb[57].mxu0  ;;  %v1192_v56 = vpop.f32.mrb[57].mxu1 }
 0x198   : > { %2057 = vtanh.f32 %v1190_v54  ;;  %v1065_v57 = vpop.f32.mrb[58].mxu0  ;;  %v1193_v58 = vpop.f32.mrb[58].mxu1 }
 0x199   : > { %v2048_v59 = vpop.eup %2047  ;;  %2059 = vtanh.f32 %v1065_v57  ;;  %v1067_v60 = vpop.f32.mrb[59].mxu0 }
 0x19a   : > { %v1195_v61 = vpop.f32.mrb[59].mxu1  ;;  %v2050_v62 = vpop.eup %2049  ;;  %1490 = vst [vmem:[%s2294_s5 + $0xd0] sm:$0xff] %v2048_v59  ;;  %2061 = vtanh.f32 %v1193_v58 }
 0x19b   : > { %v2052_v63 = vpop.eup %2051  ;;  %1522 = vst [vmem:[%s2294_s5 + $0x1d0] sm:$0xff] %v2050_v62 }
 0x19c   : > { %v2054_v0 = vpop.eup %2053  ;;  %1491 = vst [vmem:[%s2294_s5 + $0xd8] sm:$0xff] %v2052_v63 }
 0x19d   : > { %1523 = vst [vmem:[%s2294_s5 + $0x1d8] sm:$0xff] %v2054_v0 }
 0x19e   : > { %v1070_v1 = vpop.f32.mrb[60].mxu0  ;;  %v1198_v2 = vpop.f32.mrb[60].mxu1 }
 0x19f   : > { %2063 = vtanh.f32 %v1070_v1  ;;  %v1072_v3 = vpop.f32.mrb[61].mxu0  ;;  %v1200_v4 = vpop.f32.mrb[61].mxu1 }
 0x1a0   : > { %2065 = vtanh.f32 %v1198_v2  ;;  %v1073_v5 = vpop.f32.mrb[62].mxu0  ;;  %v1201_v6 = vpop.f32.mrb[62].mxu1 }
 0x1a1   : > { %v2056_v7 = vpop.eup %2055  ;;  %2067 = vtanh.f32 %v1073_v5  ;;  %v1075_v8 = vpop.f32.mrb[63].mxu0 }
 0x1a2   : > { %v1203_v9 = vpop.f32.mrb[63].mxu1  ;;  %v2058_v10 = vpop.eup %2057  ;;  %1492 = vst [vmem:[%s2294_s5 + $0xe0] sm:$0xff] %v2056_v7  ;;  %2069 = vtanh.f32 %v1201_v6 }
 0x1a3   : > { %v2060_v11 = vpop.eup %2059  ;;  %1524 = vst [vmem:[%s2294_s5 + $0x1e0] sm:$0xff] %v2058_v10 }
 0x1a4   : > { %v2062_v12 = vpop.eup %2061  ;;  %1493 = vst [vmem:[%s2294_s5 + $0xe8] sm:$0xff] %v2060_v11 }
 0x1a5   : > { %1525 = vst [vmem:[%s2294_s5 + $0x1e8] sm:$0xff] %v2062_v12 }
 0x1a9   : > { %v2064_v13 = vpop.eup %2063 }
 0x1aa   : > { %v2066_v14 = vpop.eup %2065  ;;  %1494 = vst [vmem:[%s2294_s5 + $0xf0] sm:$0xff] %v2064_v13 }
 0x1ab   : > { %v2068_v15 = vpop.eup %2067  ;;  %1526 = vst [vmem:[%s2294_s5 + $0x1f0] sm:$0xff] %v2066_v14 }
 0x1ac   : > { %v2070_v16 = vpop.eup %2069  ;;  %1495 = vst [vmem:[%s2294_s5 + $0xf8] sm:$0xff] %v2068_v15 }
 0x1ad   : > { %1527 = vst [vmem:[%s2294_s5 + $0x1f8] sm:$0xff] %v2070_v16 }
 0x1ae PF: > { %s12_s13 = sadd.s32 1, %s2109_s13   ;;  %s2378_s9 = smov %s2101_s11 }
 0x1af   : > { %p9_p7 = scmp.ge.s32.totalorder %s12_s13, 18   ;;  %s2379_s10 = smov %s2105_s12 }
 0x1b0   : > { %s2380_s11 = smov %s2383_s14  ;;  %s2381_s12 = smov %s2387_s15 }
 0x1b1   :  { %11 = sbr.rel (!%p9_p7) target bundleno = 3 (0x3), region = 69 }

</bundles_post_ra>
